<compile_context>
chip_gen: v7x
topology: tpu7x:2x2x1
jax: 0.10.0
libtpu: 0.0.40
codegen_flags: <defaults>
</compile_context>

<pallas_src>
import jax
import jax.numpy as jnp
from jax import lax
from jax.experimental import pallas as pl
from jax.experimental.pallas import tpu as pltpu

K = 3          # conv kernel size
EPS = 1e-5     # BatchNorm2d default eps

# ---- perf knobs (see perf review) -------------------------------------------------
# Matmul operand dtype: jnp.float32 keeps the 1e-2 parity check below; on v6e/v7x set
# to jnp.bfloat16 for ~3x MXU throughput and half the staging-store traffic.
MXU_DTYPE = jnp.float32
# Taps stacked per matmul: 9 -> one K=9*C matmul per conv stage (best on v6e/v7x,
# 256-row MXU); 3 -> three K=3*C matmuls (gentler on v5e's 128-row MXU / 1 store slot).
TAPS_PER_GROUP = 9
assert (K * K) % TAPS_PER_GROUP == 0


def _build_kernel(cin_p, cout_p, n, ho, wo, margin, spad):
    hp, wp = ho + 2, wo + 2
    stot = spad + 2 * margin
    inv_count = 1.0 / float(n * ho * wo)
    # lane offset of tap (kh, kw) relative to the interior origin of the flat layout
    tap_off = tuple((kh - 1) * wp + (kw - 1) for kh in range(K) for kw in range(K))
    n_groups = (K * K) // TAPS_PER_GROUP

    def conv3x3(src_ref, csrc, w_ref, stk_ref):
        # src_ref: (csrc, stot)       zero-haloed flat activation (f32)
        # w_ref:   (cout_p, 9*csrc)   tap-major stacked weights (MXU_DTYPE)
        # stk_ref: (>=9*csrc, spad)   staging scratch for the stacked MXU operand
        #
        # Stage the 9 shifted tap windows into sublane-aligned bands (lane-dense
        # stores).  The loads are lane-unaligned (+-1, +-wp..) -> lane rotates; at
        # wp=35 padding the per-image row stride to 128 lanes is not worth the 3.7x
        # lane blowup (perf-review item 6), so the rotates are accepted here.
        for t, d in enumerate(tap_off):
            lo = margin + d                                   # static lane offset
            stk_ref[t * csrc:(t + 1) * csrc, :] = (
                src_ref[:, lo:lo + spad].astype(stk_ref.dtype))
        gk = TAPS_PER_GROUP * csrc
        acc = None
        for g in range(n_groups):
            part = jnp.dot(w_ref[:, g * gk:(g + 1) * gk],
                           stk_ref[g * gk:(g + 1) * gk, :],
                           preferred_element_type=jnp.float32)    # MXU, K = gk
            acc = part if acc is None else acc + part
        return acc                                            # (cout_p, spad) f32

    def kernel(xa_ref,               # (cin_p, stot)  dilated+padded up-conv input (flat)
               mask_ref,             # (1, spad)      1.0 at interior output pixels
               wup_ref, bup_ref,     # (cout_p, 9*cin_p),  (cout_p, 1)
               w1_ref, b1_ref,       # (cout_p, 9*cout_p), (cout_p, 1)
               w2_ref, b2_ref,       # (cout_p, 9*cout_p), (cout_p, 1)
               gamma_ref, beta_ref,  # (cout_p, 1), (cout_p, 1)
               y_ref,                # out: (cout_p, spad)
               act_ref,              # scratch: (cout_p, stot) reused activation buffer
               stk_ref):             # scratch: (9*max(cin_p,cout_p), spad) MXU operand
        mask = mask_ref[...]                                          # (1, spad)

        # clear only the lane margins of the activation scratch (the interior is fully
        # overwritten below; the in-image halo / lane tail is zeroed via the mask).
        act_ref[:, :margin] = jnp.zeros((cout_p, margin), jnp.float32)
        act_ref[:, margin + spad:] = jnp.zeros((cout_p, stot - margin - spad), jnp.float32)

        # ---- stage A: ConvTranspose2d == valid 3x3 conv over dilated+padded input ----
        # TODO(synk): polyphase-decompose this stage (4 phase convs over the compact
        # input) so the ~75% structural zeros are never staged or multiplied.
        x0 = conv3x3(xa_ref, cin_p, wup_ref, stk_ref) + bup_ref[...]  # (cout_p, spad)
        # Stash the pre-activation skip directly in the output ref.  Halo / lane-tail
        # columns of y_ref hold garbage until the wrapper slice discards them -- never
        # read y_flat outside the interior mask.
        y_ref[...] = x0
        act_ref[:, margin:margin + spad] = jnp.maximum(x0, 0.0) * mask

        # ---- stage B: conv1, padding='same' ----
        h1 = conv3x3(act_ref, cout_p, w1_ref, stk_ref) + b1_ref[...]
        act_ref[:, margin:margin + spad] = jnp.maximum(h1, 0.0) * mask

        # ---- stage C: conv2 + BatchNorm (train-mode batch stats, one pass) + act + skip
        h2 = conv3x3(act_ref, cout_p, w2_ref, stk_ref) + b2_ref[...]  # (cout_p, spad)
        h2m = h2 * mask                           # stats over interior pixels only
        s1 = jnp.sum(h2m, axis=1, keepdims=True)                      # (cout_p, 1)
        s2 = jnp.sum(h2m * h2m, axis=1, keepdims=True)
        mean = s1 * inv_count
        var = jnp.maximum(s2 * inv_count - mean * mean, 0.0)          # biased var (PyTorch BN)
        scale = lax.rsqrt(var + EPS) * gamma_ref[...]                 # (cout_p, 1)
        bn = (h2 - mean) * scale + beta_ref[...]
        # BN/ReLU/skip also touch halo/tail lanes (garbage, discarded by the wrapper).
        y_ref[...] = jnp.maximum(bn, 0.0) + y_ref[...]
        # TODO(synk): BatchNorm2d running_mean/running_var buffer updates (training
        # side effect) are not materialized; they do not affect the forward output.

    return kernel


def upblock_forward(x, params):
    """x: (N, Cin, H, W) float32 (NCHW, like PyTorch). Returns (N, Cout, 2H+1, 2W+1)."""
    n, cin, h, w = x.shape
    w_up, b_up, w1, b1, w2, b2, gamma, beta = params
    cout = w_up.shape[1]
    ho, wo = 2 * h + 1, 2 * w + 1
    hp, wp = ho + 2, wo + 2

    rup = lambda v, m: -(-v // m) * m
    cin_p, cout_p = rup(cin, 8), rup(cout, 8)
    margin = rup(wp + 1, 128)          # lane-aligned margin so tap slices never go OOB
    spad_raw = n * hp * wp
    spad = rup(spad_raw, 128)          # lane-dense flat spatial width (128-multiple)
    stot = spad + 2 * margin
    f32 = jnp.float32

    # --- glue: transposed conv -> valid conv (dilate by stride 2, pad k-1=2) ---
    x_c = jnp.transpose(x, (1, 0, 2, 3)).astype(f32)                     # (Cin, N, H, W)
    x_dil = jnp.zeros((cin, n, 2 * h - 1, 2 * w - 1), f32)
    x_dil = x_dil.at[:, :, ::2, ::2].set(x_c)
    x_padded = jnp.pad(x_dil, ((0, cin_p - cin), (0, 0), (2, 2), (2, 2)))  # (Cin_p,N,Hp,Wp)
    xa = jnp.pad(x_padded.reshape(cin_p, spad_raw),
                 ((0, 0), (margin, margin + spad - spad_raw)))             # (Cin_p, stot)

    # interior mask in the flat padded layout (zeros on halo AND the lane-pad tail)
    mask = jnp.pad(jnp.ones((n, ho, wo), f32),
                   ((0, 0), (1, 1), (1, 1))).reshape(1, spad_raw)
    mask = jnp.pad(mask, ((0, 0), (0, spad - spad_raw)))

    def pad_oc(v):                      # per-channel vector -> (cout_p, 1), zero padded
        return jnp.pad(jnp.asarray(v, f32), (0, cout_p - cout)).reshape(cout_p, 1)

    def stacked_w(wgt, ci_p):           # (co, ci, 3, 3) -> (cout_p, 9*ci_p), tap-major K
        wgt = jnp.asarray(wgt, f32)
        wgt = jnp.pad(wgt, ((0, cout_p - wgt.shape[0]), (0, ci_p - wgt.shape[1]),
                            (0, 0), (0, 0)))
        wgt = jnp.transpose(wgt, (0, 2, 3, 1)).reshape(cout_p, K * K * ci_p)
        return wgt.astype(MXU_DTYPE)

    # ConvTranspose2d weight (Cin, Cout, 3, 3) -> equivalent conv weight (Cout, Cin, 3, 3), flipped
    w_up_eff = jnp.transpose(jnp.asarray(w_up, f32), (1, 0, 2, 3))[:, :, ::-1, ::-1]

    kernel = _build_kernel(cin_p, cout_p, n, ho, wo, margin, spad)
    vmem = lambda: pl.BlockSpec(memory_space=pltpu.MemorySpace.VMEM)
    stk_rows = K * K * max(cin_p, cout_p)
    mxu_isz = jnp.dtype(MXU_DTYPE).itemsize

    # explicit VMEM budget (review item: set vmem_limit_bytes; generous headroom)
    buf_bytes = (4 * (cin_p * stot + spad + cout_p * spad + cout_p * stot)
                 + mxu_isz * stk_rows * spad
                 + mxu_isz * cout_p * K * K * (cin_p + 2 * cout_p) + 6 * 4 * cout_p)
    vmem_limit = int(max(8 << 20, 4 * buf_bytes))

    # TODO(synk): at realistic C/H/W add a batch/spatial grid ("parallel" axis so v7x's
    # two TensorCores are both used, 64 MiB-aware tiles, per-tile partial BN sums with a
    # small finalize step); at this ~1 MiB working set a single gridless program is right.
    y_flat = pl.pallas_call(
        kernel,
        out_shape=jax.ShapeDtypeStruct((cout_p, spad), f32),
        in_specs=[vmem() for _ in range(10)],
        out_specs=vmem(),
        scratch_shapes=[pltpu.VMEM((cout_p, stot), f32),       # reused activation buffer
                        pltpu.VMEM((stk_rows, spad), MXU_DTYPE)],  # stacked MXU operand
        compiler_params=pltpu.CompilerParams(vmem_limit_bytes=vmem_limit),
    )(xa, mask,
      stacked_w(w_up_eff, cin_p), pad_oc(b_up),
      stacked_w(w1, cout_p), pad_oc(b1),
      stacked_w(w2, cout_p), pad_oc(b2),
      pad_oc(gamma), pad_oc(beta))

    y = y_flat[:, :spad_raw].reshape(cout_p, n, hp, wp)[:cout, :, 1:1 + ho, 1:1 + wo]
    return jnp.transpose(y, (1, 0, 2, 3))                   # back to NCHW


def upblock_ref(x, params):
    """Pure-JAX reference (same math as the PyTorch module in training mode, ReLU act)."""
    w_up, b_up, w1, b1, w2, b2, gamma, beta = params
    dn = ('NCHW', 'OIHW', 'NCHW')
    prec = lax.Precision.HIGHEST
    w_up_eff = jnp.transpose(w_up, (1, 0, 2, 3))[:, :, ::-1, ::-1]
    x_up = lax.conv_general_dilated(x, w_up_eff, (1, 1), [(2, 2), (2, 2)],
                                    lhs_dilation=(2, 2), dimension_numbers=dn,
                                    precision=prec)
    x_up = x_up + b_up[None, :, None, None]
    x0 = x_up
    hh = jax.nn.relu(x_up)
    hh = lax.conv_general_dilated(hh, w1, (1, 1), [(1, 1), (1, 1)],
                                  dimension_numbers=dn, precision=prec)
    hh = jax.nn.relu(hh + b1[None, :, None, None])
    hh = lax.conv_general_dilated(hh, w2, (1, 1), [(1, 1), (1, 1)],
                                  dimension_numbers=dn, precision=prec)
    hh = hh + b2[None, :, None, None]
    mean = jnp.mean(hh, axis=(0, 2, 3), keepdims=True)
    var = jnp.mean((hh - mean) ** 2, axis=(0, 2, 3), keepdims=True)
    hh = (hh - mean) * lax.rsqrt(var + EPS)
    hh = gamma[None, :, None, None] * hh + beta[None, :, None, None]
    hh = jax.nn.relu(hh)
    return hh + x0


if __name__ == "__main__":
    key = jax.random.PRNGKey(0)
    N, Cin, Cout, H, W = 2, 4, 8, 16, 16
    ks = jax.random.split(key, 9)

    x = jax.random.normal(ks[0], (N, Cin, H, W), jnp.float32)
    w_up = 0.2 * jax.random.normal(ks[1], (Cin, Cout, K, K), jnp.float32)
    b_up = 0.1 * jax.random.normal(ks[2], (Cout,), jnp.float32)
    w1 = 0.2 * jax.random.normal(ks[3], (Cout, Cout, K, K), jnp.float32)
    b1 = 0.1 * jax.random.normal(ks[4], (Cout,), jnp.float32)
    w2 = 0.2 * jax.random.normal(ks[5], (Cout, Cout, K, K), jnp.float32)
    b2 = 0.1 * jax.random.normal(ks[6], (Cout,), jnp.float32)
    gamma = 1.0 + 0.1 * jax.random.normal(ks[7], (Cout,), jnp.float32)
    beta = 0.1 * jax.random.normal(ks[8], (Cout,), jnp.float32)
    params = (w_up, b_up, w1, b1, w2, b2, gamma, beta)

    y = jax.block_until_ready(upblock_forward(x, params))
    y_ref = jax.block_until_ready(upblock_ref(x, params))

    assert y.shape == (N, Cout, 2 * H + 1, 2 * W + 1), y.shape
    # tolerance allows for the MXU's default f32 contract precision (bf16-pass based);
    # structural bugs would produce errors orders of magnitude larger.  If MXU_DTYPE is
    # flipped to bfloat16 (v6e/v7x perf knob), loosen to ~3e-2.
    if not jnp.allclose(y, y_ref, atol=1e-2, rtol=1e-2):
        raise SystemExit(f"mismatch: max abs err = {float(jnp.max(jnp.abs(y - y_ref)))}")
    print("KERNEL_OK")
</pallas_src>

<mosaic_0001>
module attributes {stable_mosaic.version = 11 : i64} {
  func.func @kernel(%arg0: memref<8x2816xf32, #tpu.memory_space<vmem>>, %arg1: memref<1x2560xf32, #tpu.memory_space<vmem>>, %arg2: memref<8x72xf32, #tpu.memory_space<vmem>>, %arg3: memref<8x1xf32, #tpu.memory_space<vmem>>, %arg4: memref<8x72xf32, #tpu.memory_space<vmem>>, %arg5: memref<8x1xf32, #tpu.memory_space<vmem>>, %arg6: memref<8x72xf32, #tpu.memory_space<vmem>>, %arg7: memref<8x1xf32, #tpu.memory_space<vmem>>, %arg8: memref<8x1xf32, #tpu.memory_space<vmem>>, %arg9: memref<8x1xf32, #tpu.memory_space<vmem>>, %arg10: memref<8x2560xf32, #tpu.memory_space<vmem>>, %arg11: memref<8x2816xf32, #tpu.memory_space<vmem>>, %arg12: memref<72x2560xf32, #tpu.memory_space<vmem>>) attributes {dimension_semantics = [], scalar_prefetch = 0 : i64, scratch_operands = 2 : i64, tpu.core_type = #tpu.core_type<tc>} {
    %c0 = arith.constant 0 : index
    %c0_0 = arith.constant 0 : index
    %0 = vector.load %arg1[%c0, %c0_0] : memref<1x2560xf32, #tpu.memory_space<vmem>>, vector<1x2560xf32>
    %cst = arith.constant 0.000000e+00 : f32
    %1 = vector.broadcast %cst : f32 to vector<8x128xf32>
    %c0_1 = arith.constant 0 : index
    %c0_2 = arith.constant 0 : index
    %2 = vector.load %arg11[%c0_1, %c0_2] : memref<8x2816xf32, #tpu.memory_space<vmem>>, vector<8x128xf32>
    tpu.vector_store %arg11[%c0_1, %c0_2], %1 {strides = array<i32>} : memref<8x2816xf32, #tpu.memory_space<vmem>>, vector<8x128xf32>,
    %cst_3 = arith.constant 0.000000e+00 : f32
    %3 = vector.broadcast %cst_3 : f32 to vector<8x128xf32>
    %c0_4 = arith.constant 0 : index
    %c2688 = arith.constant 2688 : index
    %4 = vector.load %arg11[%c0_4, %c2688] : memref<8x2816xf32, #tpu.memory_space<vmem>>, vector<8x128xf32>
    tpu.vector_store %arg11[%c0_4, %c2688], %3 {strides = array<i32>} : memref<8x2816xf32, #tpu.memory_space<vmem>>, vector<8x128xf32>,
    %c0_5 = arith.constant 0 : index
    %c92 = arith.constant 92 : index
    %5 = vector.load %arg0[%c0_5, %c92] : memref<8x2816xf32, #tpu.memory_space<vmem>>, vector<8x2560xf32>
    %c0_6 = arith.constant 0 : index
    %c0_7 = arith.constant 0 : index
    %6 = vector.load %arg12[%c0_6, %c0_7] : memref<72x2560xf32, #tpu.memory_space<vmem>>, vector<8x2560xf32>
    tpu.vector_store %arg12[%c0_6, %c0_7], %5 {strides = array<i32>} : memref<72x2560xf32, #tpu.memory_space<vmem>>, vector<8x2560xf32>,
    %c0_8 = arith.constant 0 : index
    %c93 = arith.constant 93 : index
    %7 = vector.load %arg0[%c0_8, %c93] : memref<8x2816xf32, #tpu.memory_space<vmem>>, vector<8x2560xf32>
    %c8 = arith.constant 8 : index
    %c0_9 = arith.constant 0 : index
    %8 = vector.load %arg12[%c8, %c0_9] : memref<72x2560xf32, #tpu.memory_space<vmem>>, vector<8x2560xf32>
    tpu.vector_store %arg12[%c8, %c0_9], %7 {strides = array<i32>} : memref<72x2560xf32, #tpu.memory_space<vmem>>, vector<8x2560xf32>,
    %c0_10 = arith.constant 0 : index
    %c94 = arith.constant 94 : index
    %9 = vector.load %arg0[%c0_10, %c94] : memref<8x2816xf32, #tpu.memory_space<vmem>>, vector<8x2560xf32>
    %c16 = arith.constant 16 : index
    %c0_11 = arith.constant 0 : index
    %10 = vector.load %arg12[%c16, %c0_11] : memref<72x2560xf32, #tpu.memory_space<vmem>>, vector<8x2560xf32>
    tpu.vector_store %arg12[%c16, %c0_11], %9 {strides = array<i32>} : memref<72x2560xf32, #tpu.memory_space<vmem>>, vector<8x2560xf32>,
    %c0_12 = arith.constant 0 : index
    %c127 = arith.constant 127 : index
    %11 = vector.load %arg0[%c0_12, %c127] : memref<8x2816xf32, #tpu.memory_space<vmem>>, vector<8x2560xf32>
    %c24 = arith.constant 24 : index
    %c0_13 = arith.constant 0 : index
    %12 = vector.load %arg12[%c24, %c0_13] : memref<72x2560xf32, #tpu.memory_space<vmem>>, vector<8x2560xf32>
    tpu.vector_store %arg12[%c24, %c0_13], %11 {strides = array<i32>} : memref<72x2560xf32, #tpu.memory_space<vmem>>, vector<8x2560xf32>,
    %c0_14 = arith.constant 0 : index
    %c128 = arith.constant 128 : index
    %13 = vector.load %arg0[%c0_14, %c128] : memref<8x2816xf32, #tpu.memory_space<vmem>>, vector<8x2560xf32>
    %c32 = arith.constant 32 : index
    %c0_15 = arith.constant 0 : index
    %14 = vector.load %arg12[%c32, %c0_15] : memref<72x2560xf32, #tpu.memory_space<vmem>>, vector<8x2560xf32>
    tpu.vector_store %arg12[%c32, %c0_15], %13 {strides = array<i32>} : memref<72x2560xf32, #tpu.memory_space<vmem>>, vector<8x2560xf32>,
    %c0_16 = arith.constant 0 : index
    %c129 = arith.constant 129 : index
    %15 = vector.load %arg0[%c0_16, %c129] : memref<8x2816xf32, #tpu.memory_space<vmem>>, vector<8x2560xf32>
    %c40 = arith.constant 40 : index
    %c0_17 = arith.constant 0 : index
    %16 = vector.load %arg12[%c40, %c0_17] : memref<72x2560xf32, #tpu.memory_space<vmem>>, vector<8x2560xf32>
    tpu.vector_store %arg12[%c40, %c0_17], %15 {strides = array<i32>} : memref<72x2560xf32, #tpu.memory_space<vmem>>, vector<8x2560xf32>,
    %c0_18 = arith.constant 0 : index
    %c162 = arith.constant 162 : index
    %17 = vector.load %arg0[%c0_18, %c162] : memref<8x2816xf32, #tpu.memory_space<vmem>>, vector<8x2560xf32>
    %c48 = arith.constant 48 : index
    %c0_19 = arith.constant 0 : index
    %18 = vector.load %arg12[%c48, %c0_19] : memref<72x2560xf32, #tpu.memory_space<vmem>>, vector<8x2560xf32>
    tpu.vector_store %arg12[%c48, %c0_19], %17 {strides = array<i32>} : memref<72x2560xf32, #tpu.memory_space<vmem>>, vector<8x2560xf32>,
    %c0_20 = arith.constant 0 : index
    %c163 = arith.constant 163 : index
    %19 = vector.load %arg0[%c0_20, %c163] : memref<8x2816xf32, #tpu.memory_space<vmem>>, vector<8x2560xf32>
    %c56 = arith.constant 56 : index
    %c0_21 = arith.constant 0 : index
    %20 = vector.load %arg12[%c56, %c0_21] : memref<72x2560xf32, #tpu.memory_space<vmem>>, vector<8x2560xf32>
    tpu.vector_store %arg12[%c56, %c0_21], %19 {strides = array<i32>} : memref<72x2560xf32, #tpu.memory_space<vmem>>, vector<8x2560xf32>,
    %c0_22 = arith.constant 0 : index
    %c164 = arith.constant 164 : index
    %21 = vector.load %arg0[%c0_22, %c164] : memref<8x2816xf32, #tpu.memory_space<vmem>>, vector<8x2560xf32>
    %c64 = arith.constant 64 : index
    %c0_23 = arith.constant 0 : index
    %22 = vector.load %arg12[%c64, %c0_23] : memref<72x2560xf32, #tpu.memory_space<vmem>>, vector<8x2560xf32>
    tpu.vector_store %arg12[%c64, %c0_23], %21 {strides = array<i32>} : memref<72x2560xf32, #tpu.memory_space<vmem>>, vector<8x2560xf32>,
    %c0_24 = arith.constant 0 : index
    %c0_25 = arith.constant 0 : index
    %23 = vector.load %arg2[%c0_24, %c0_25] : memref<8x72xf32, #tpu.memory_space<vmem>>, vector<8x72xf32>
    %c0_26 = arith.constant 0 : index
    %c0_27 = arith.constant 0 : index
    %24 = vector.load %arg12[%c0_26, %c0_27] : memref<72x2560xf32, #tpu.memory_space<vmem>>, vector<72x2560xf32>
    %cst_28 = arith.constant dense<0.000000e+00> : vector<8x2560xf32>
    %25 = tpu.matmul %23, %24, %cst_28 {dimension_numbers = #tpu.dot_dimension_numbers<[1], [0], [0], [1], [0, 0, 1, 1], [], []>} : vector<8x72xf32>, vector<72x2560xf32>, vector<8x2560xf32> -> vector<8x2560xf32>
    %c0_29 = arith.constant 0 : index
    %c0_30 = arith.constant 0 : index
    %26 = vector.load %arg3[%c0_29, %c0_30] : memref<8x1xf32, #tpu.memory_space<vmem>>, vector<8x1xf32>
    %27 = vector.broadcast %26 : vector<8x1xf32> to vector<8x2560xf32>
    %28 = arith.addf %25, %27 : vector<8x2560xf32>
    %c0_31 = arith.constant 0 : index
    %c0_32 = arith.constant 0 : index
    %29 = vector.load %arg10[%c0_31, %c0_32] : memref<8x2560xf32, #tpu.memory_space<vmem>>, vector<8x2560xf32>
    tpu.vector_store %arg10[%c0_31, %c0_32], %28 {strides = array<i32>} : memref<8x2560xf32, #tpu.memory_space<vmem>>, vector<8x2560xf32>,
    %cst_33 = arith.constant 0.000000e+00 : f32
    %30 = vector.broadcast %cst_33 : f32 to vector<8x2560xf32>
    %31 = arith.maximumf %28, %30 : vector<8x2560xf32>
    %32 = vector.broadcast %0 : vector<1x2560xf32> to vector<8x2560xf32>
    %33 = arith.mulf %31, %32 : vector<8x2560xf32>
    %c0_34 = arith.constant 0 : index
    %c128_35 = arith.constant 128 : index
    %34 = vector.load %arg11[%c0_34, %c128_35] : memref<8x2816xf32, #tpu.memory_space<vmem>>, vector<8x2560xf32>
    tpu.vector_store %arg11[%c0_34, %c128_35], %33 {strides = array<i32>} : memref<8x2816xf32, #tpu.memory_space<vmem>>, vector<8x2560xf32>,
    %c0_36 = arith.constant 0 : index
    %c92_37 = arith.constant 92 : index
    %35 = vector.load %arg11[%c0_36, %c92_37] : memref<8x2816xf32, #tpu.memory_space<vmem>>, vector<8x2560xf32>
    %c0_38 = arith.constant 0 : index
    %c0_39 = arith.constant 0 : index
    %36 = vector.load %arg12[%c0_38, %c0_39] : memref<72x2560xf32, #tpu.memory_space<vmem>>, vector<8x2560xf32>
    tpu.vector_store %arg12[%c0_38, %c0_39], %35 {strides = array<i32>} : memref<72x2560xf32, #tpu.memory_space<vmem>>, vector<8x2560xf32>,
    %c0_40 = arith.constant 0 : index
    %c93_41 = arith.constant 93 : index
    %37 = vector.load %arg11[%c0_40, %c93_41] : memref<8x2816xf32, #tpu.memory_space<vmem>>, vector<8x2560xf32>
    %c8_42 = arith.constant 8 : index
    %c0_43 = arith.constant 0 : index
    %38 = vector.load %arg12[%c8_42, %c0_43] : memref<72x2560xf32, #tpu.memory_space<vmem>>, vector<8x2560xf32>
    tpu.vector_store %arg12[%c8_42, %c0_43], %37 {strides = array<i32>} : memref<72x2560xf32, #tpu.memory_space<vmem>>, vector<8x2560xf32>,
    %c0_44 = arith.constant 0 : index
    %c94_45 = arith.constant 94 : index
    %39 = vector.load %arg11[%c0_44, %c94_45] : memref<8x2816xf32, #tpu.memory_space<vmem>>, vector<8x2560xf32>
    %c16_46 = arith.constant 16 : index
    %c0_47 = arith.constant 0 : index
    %40 = vector.load %arg12[%c16_46, %c0_47] : memref<72x2560xf32, #tpu.memory_space<vmem>>, vector<8x2560xf32>
    tpu.vector_store %arg12[%c16_46, %c0_47], %39 {strides = array<i32>} : memref<72x2560xf32, #tpu.memory_space<vmem>>, vector<8x2560xf32>,
    %c0_48 = arith.constant 0 : index
    %c127_49 = arith.constant 127 : index
    %41 = vector.load %arg11[%c0_48, %c127_49] : memref<8x2816xf32, #tpu.memory_space<vmem>>, vector<8x2560xf32>
    %c24_50 = arith.constant 24 : index
    %c0_51 = arith.constant 0 : index
    %42 = vector.load %arg12[%c24_50, %c0_51] : memref<72x2560xf32, #tpu.memory_space<vmem>>, vector<8x2560xf32>
    tpu.vector_store %arg12[%c24_50, %c0_51], %41 {strides = array<i32>} : memref<72x2560xf32, #tpu.memory_space<vmem>>, vector<8x2560xf32>,
    %c0_52 = arith.constant 0 : index
    %c128_53 = arith.constant 128 : index
    %43 = vector.load %arg11[%c0_52, %c128_53] : memref<8x2816xf32, #tpu.memory_space<vmem>>, vector<8x2560xf32>
    %c32_54 = arith.constant 32 : index
    %c0_55 = arith.constant 0 : index
    %44 = vector.load %arg12[%c32_54, %c0_55] : memref<72x2560xf32, #tpu.memory_space<vmem>>, vector<8x2560xf32>
    tpu.vector_store %arg12[%c32_54, %c0_55], %43 {strides = array<i32>} : memref<72x2560xf32, #tpu.memory_space<vmem>>, vector<8x2560xf32>,
    %c0_56 = arith.constant 0 : index
    %c129_57 = arith.constant 129 : index
    %45 = vector.load %arg11[%c0_56, %c129_57] : memref<8x2816xf32, #tpu.memory_space<vmem>>, vector<8x2560xf32>
    %c40_58 = arith.constant 40 : index
    %c0_59 = arith.constant 0 : index
    %46 = vector.load %arg12[%c40_58, %c0_59] : memref<72x2560xf32, #tpu.memory_space<vmem>>, vector<8x2560xf32>
    tpu.vector_store %arg12[%c40_58, %c0_59], %45 {strides = array<i32>} : memref<72x2560xf32, #tpu.memory_space<vmem>>, vector<8x2560xf32>,
    %c0_60 = arith.constant 0 : index
    %c162_61 = arith.constant 162 : index
    %47 = vector.load %arg11[%c0_60, %c162_61] : memref<8x2816xf32, #tpu.memory_space<vmem>>, vector<8x2560xf32>
    %c48_62 = arith.constant 48 : index
    %c0_63 = arith.constant 0 : index
    %48 = vector.load %arg12[%c48_62, %c0_63] : memref<72x2560xf32, #tpu.memory_space<vmem>>, vector<8x2560xf32>
    tpu.vector_store %arg12[%c48_62, %c0_63], %47 {strides = array<i32>} : memref<72x2560xf32, #tpu.memory_space<vmem>>, vector<8x2560xf32>,
    %c0_64 = arith.constant 0 : index
    %c163_65 = arith.constant 163 : index
    %49 = vector.load %arg11[%c0_64, %c163_65] : memref<8x2816xf32, #tpu.memory_space<vmem>>, vector<8x2560xf32>
    %c56_66 = arith.constant 56 : index
    %c0_67 = arith.constant 0 : index
    %50 = vector.load %arg12[%c56_66, %c0_67] : memref<72x2560xf32, #tpu.memory_space<vmem>>, vector<8x2560xf32>
    tpu.vector_store %arg12[%c56_66, %c0_67], %49 {strides = array<i32>} : memref<72x2560xf32, #tpu.memory_space<vmem>>, vector<8x2560xf32>,
    %c0_68 = arith.constant 0 : index
    %c164_69 = arith.constant 164 : index
    %51 = vector.load %arg11[%c0_68, %c164_69] : memref<8x2816xf32, #tpu.memory_space<vmem>>, vector<8x2560xf32>
    %c64_70 = arith.constant 64 : index
    %c0_71 = arith.constant 0 : index
    %52 = vector.load %arg12[%c64_70, %c0_71] : memref<72x2560xf32, #tpu.memory_space<vmem>>, vector<8x2560xf32>
    tpu.vector_store %arg12[%c64_70, %c0_71], %51 {strides = array<i32>} : memref<72x2560xf32, #tpu.memory_space<vmem>>, vector<8x2560xf32>,
    %c0_72 = arith.constant 0 : index
    %c0_73 = arith.constant 0 : index
    %53 = vector.load %arg4[%c0_72, %c0_73] : memref<8x72xf32, #tpu.memory_space<vmem>>, vector<8x72xf32>
    %c0_74 = arith.constant 0 : index
    %c0_75 = arith.constant 0 : index
    %54 = vector.load %arg12[%c0_74, %c0_75] : memref<72x2560xf32, #tpu.memory_space<vmem>>, vector<72x2560xf32>
    %cst_76 = arith.constant dense<0.000000e+00> : vector<8x2560xf32>
    %55 = tpu.matmul %53, %54, %cst_76 {dimension_numbers = #tpu.dot_dimension_numbers<[1], [0], [0], [1], [0, 0, 1, 1], [], []>} : vector<8x72xf32>, vector<72x2560xf32>, vector<8x2560xf32> -> vector<8x2560xf32>
    %c0_77 = arith.constant 0 : index
    %c0_78 = arith.constant 0 : index
    %56 = vector.load %arg5[%c0_77, %c0_78] : memref<8x1xf32, #tpu.memory_space<vmem>>, vector<8x1xf32>
    %57 = vector.broadcast %56 : vector<8x1xf32> to vector<8x2560xf32>
    %58 = arith.addf %55, %57 : vector<8x2560xf32>
    %cst_79 = arith.constant 0.000000e+00 : f32
    %59 = vector.broadcast %cst_79 : f32 to vector<8x2560xf32>
    %60 = arith.maximumf %58, %59 : vector<8x2560xf32>
    %61 = vector.broadcast %0 : vector<1x2560xf32> to vector<8x2560xf32>
    %62 = arith.mulf %60, %61 : vector<8x2560xf32>
    %c0_80 = arith.constant 0 : index
    %c128_81 = arith.constant 128 : index
    %63 = vector.load %arg11[%c0_80, %c128_81] : memref<8x2816xf32, #tpu.memory_space<vmem>>, vector<8x2560xf32>
    tpu.vector_store %arg11[%c0_80, %c128_81], %62 {strides = array<i32>} : memref<8x2816xf32, #tpu.memory_space<vmem>>, vector<8x2560xf32>,
    %c0_82 = arith.constant 0 : index
    %c92_83 = arith.constant 92 : index
    %64 = vector.load %arg11[%c0_82, %c92_83] : memref<8x2816xf32, #tpu.memory_space<vmem>>, vector<8x2560xf32>
    %c0_84 = arith.constant 0 : index
    %c0_85 = arith.constant 0 : index
    %65 = vector.load %arg12[%c0_84, %c0_85] : memref<72x2560xf32, #tpu.memory_space<vmem>>, vector<8x2560xf32>
    tpu.vector_store %arg12[%c0_84, %c0_85], %64 {strides = array<i32>} : memref<72x2560xf32, #tpu.memory_space<vmem>>, vector<8x2560xf32>,
    %c0_86 = arith.constant 0 : index
    %c93_87 = arith.constant 93 : index
    %66 = vector.load %arg11[%c0_86, %c93_87] : memref<8x2816xf32, #tpu.memory_space<vmem>>, vector<8x2560xf32>
    %c8_88 = arith.constant 8 : index
    %c0_89 = arith.constant 0 : index
    %67 = vector.load %arg12[%c8_88, %c0_89] : memref<72x2560xf32, #tpu.memory_space<vmem>>, vector<8x2560xf32>
    tpu.vector_store %arg12[%c8_88, %c0_89], %66 {strides = array<i32>} : memref<72x2560xf32, #tpu.memory_space<vmem>>, vector<8x2560xf32>,
    %c0_90 = arith.constant 0 : index
    %c94_91 = arith.constant 94 : index
    %68 = vector.load %arg11[%c0_90, %c94_91] : memref<8x2816xf32, #tpu.memory_space<vmem>>, vector<8x2560xf32>
    %c16_92 = arith.constant 16 : index
    %c0_93 = arith.constant 0 : index
    %69 = vector.load %arg12[%c16_92, %c0_93] : memref<72x2560xf32, #tpu.memory_space<vmem>>, vector<8x2560xf32>
    tpu.vector_store %arg12[%c16_92, %c0_93], %68 {strides = array<i32>} : memref<72x2560xf32, #tpu.memory_space<vmem>>, vector<8x2560xf32>,
    %c0_94 = arith.constant 0 : index
    %c127_95 = arith.constant 127 : index
    %70 = vector.load %arg11[%c0_94, %c127_95] : memref<8x2816xf32, #tpu.memory_space<vmem>>, vector<8x2560xf32>
    %c24_96 = arith.constant 24 : index
    %c0_97 = arith.constant 0 : index
    %71 = vector.load %arg12[%c24_96, %c0_97] : memref<72x2560xf32, #tpu.memory_space<vmem>>, vector<8x2560xf32>
    tpu.vector_store %arg12[%c24_96, %c0_97], %70 {strides = array<i32>} : memref<72x2560xf32, #tpu.memory_space<vmem>>, vector<8x2560xf32>,
    %c0_98 = arith.constant 0 : index
    %c128_99 = arith.constant 128 : index
    %72 = vector.load %arg11[%c0_98, %c128_99] : memref<8x2816xf32, #tpu.memory_space<vmem>>, vector<8x2560xf32>
    %c32_100 = arith.constant 32 : index
    %c0_101 = arith.constant 0 : index
    %73 = vector.load %arg12[%c32_100, %c0_101] : memref<72x2560xf32, #tpu.memory_space<vmem>>, vector<8x2560xf32>
    tpu.vector_store %arg12[%c32_100, %c0_101], %72 {strides = array<i32>} : memref<72x2560xf32, #tpu.memory_space<vmem>>, vector<8x2560xf32>,
    %c0_102 = arith.constant 0 : index
    %c129_103 = arith.constant 129 : index
    %74 = vector.load %arg11[%c0_102, %c129_103] : memref<8x2816xf32, #tpu.memory_space<vmem>>, vector<8x2560xf32>
    %c40_104 = arith.constant 40 : index
    %c0_105 = arith.constant 0 : index
    %75 = vector.load %arg12[%c40_104, %c0_105] : memref<72x2560xf32, #tpu.memory_space<vmem>>, vector<8x2560xf32>
    tpu.vector_store %arg12[%c40_104, %c0_105], %74 {strides = array<i32>} : memref<72x2560xf32, #tpu.memory_space<vmem>>, vector<8x2560xf32>,
    %c0_106 = arith.constant 0 : index
    %c162_107 = arith.constant 162 : index
    %76 = vector.load %arg11[%c0_106, %c162_107] : memref<8x2816xf32, #tpu.memory_space<vmem>>, vector<8x2560xf32>
    %c48_108 = arith.constant 48 : index
    %c0_109 = arith.constant 0 : index
    %77 = vector.load %arg12[%c48_108, %c0_109] : memref<72x2560xf32, #tpu.memory_space<vmem>>, vector<8x2560xf32>
    tpu.vector_store %arg12[%c48_108, %c0_109], %76 {strides = array<i32>} : memref<72x2560xf32, #tpu.memory_space<vmem>>, vector<8x2560xf32>,
    %c0_110 = arith.constant 0 : index
    %c163_111 = arith.constant 163 : index
    %78 = vector.load %arg11[%c0_110, %c163_111] : memref<8x2816xf32, #tpu.memory_space<vmem>>, vector<8x2560xf32>
    %c56_112 = arith.constant 56 : index
    %c0_113 = arith.constant 0 : index
    %79 = vector.load %arg12[%c56_112, %c0_113] : memref<72x2560xf32, #tpu.memory_space<vmem>>, vector<8x2560xf32>
    tpu.vector_store %arg12[%c56_112, %c0_113], %78 {strides = array<i32>} : memref<72x2560xf32, #tpu.memory_space<vmem>>, vector<8x2560xf32>,
    %c0_114 = arith.constant 0 : index
    %c164_115 = arith.constant 164 : index
    %80 = vector.load %arg11[%c0_114, %c164_115] : memref<8x2816xf32, #tpu.memory_space<vmem>>, vector<8x2560xf32>
    %c64_116 = arith.constant 64 : index
    %c0_117 = arith.constant 0 : index
    %81 = vector.load %arg12[%c64_116, %c0_117] : memref<72x2560xf32, #tpu.memory_space<vmem>>, vector<8x2560xf32>
    tpu.vector_store %arg12[%c64_116, %c0_117], %80 {strides = array<i32>} : memref<72x2560xf32, #tpu.memory_space<vmem>>, vector<8x2560xf32>,
    %c0_118 = arith.constant 0 : index
    %c0_119 = arith.constant 0 : index
    %82 = vector.load %arg6[%c0_118, %c0_119] : memref<8x72xf32, #tpu.memory_space<vmem>>, vector<8x72xf32>
    %c0_120 = arith.constant 0 : index
    %c0_121 = arith.constant 0 : index
    %83 = vector.load %arg12[%c0_120, %c0_121] : memref<72x2560xf32, #tpu.memory_space<vmem>>, vector<72x2560xf32>
    %cst_122 = arith.constant dense<0.000000e+00> : vector<8x2560xf32>
    %84 = tpu.matmul %82, %83, %cst_122 {dimension_numbers = #tpu.dot_dimension_numbers<[1], [0], [0], [1], [0, 0, 1, 1], [], []>} : vector<8x72xf32>, vector<72x2560xf32>, vector<8x2560xf32> -> vector<8x2560xf32>
    %c0_123 = arith.constant 0 : index
    %c0_124 = arith.constant 0 : index
    %85 = vector.load %arg7[%c0_123, %c0_124] : memref<8x1xf32, #tpu.memory_space<vmem>>, vector<8x1xf32>
    %86 = vector.broadcast %85 : vector<8x1xf32> to vector<8x2560xf32>
    %87 = arith.addf %84, %86 : vector<8x2560xf32>
    %88 = vector.broadcast %0 : vector<1x2560xf32> to vector<8x2560xf32>
    %89 = arith.mulf %87, %88 : vector<8x2560xf32>
    %cst_125 = arith.constant dense<0.000000e+00> : vector<8xf32>
    %90 = vector.multi_reduction <add>, %89, %cst_125 [1] : vector<8x2560xf32> to vector<8xf32>
    %91 = vector.shape_cast %90 : vector<8xf32> to vector<8x1xf32>
    %92 = arith.mulf %89, %89 : vector<8x2560xf32>
    %cst_126 = arith.constant dense<0.000000e+00> : vector<8xf32>
    %93 = vector.multi_reduction <add>, %92, %cst_126 [1] : vector<8x2560xf32> to vector<8xf32>
    %94 = vector.shape_cast %93 : vector<8xf32> to vector<8x1xf32>
    %cst_127 = arith.constant 4.5913682E-4 : f32
    %95 = vector.broadcast %cst_127 : f32 to vector<8x1xf32>
    %96 = arith.mulf %91, %95 : vector<8x1xf32>
    %cst_128 = arith.constant 4.5913682E-4 : f32
    %97 = vector.broadcast %cst_128 : f32 to vector<8x1xf32>
    %98 = arith.mulf %94, %97 : vector<8x1xf32>
    %99 = arith.mulf %96, %96 : vector<8x1xf32>
    %100 = arith.subf %98, %99 : vector<8x1xf32>
    %cst_129 = arith.constant 0.000000e+00 : f32
    %101 = vector.broadcast %cst_129 : f32 to vector<8x1xf32>
    %102 = arith.maximumf %100, %101 : vector<8x1xf32>
    %cst_130 = arith.constant 9.99999974E-6 : f32
    %103 = vector.broadcast %cst_130 : f32 to vector<8x1xf32>
    %104 = arith.addf %102, %103 : vector<8x1xf32>
    %105 = math.rsqrt %104 : vector<8x1xf32>
    %c0_131 = arith.constant 0 : index
    %c0_132 = arith.constant 0 : index
    %106 = vector.load %arg8[%c0_131, %c0_132] : memref<8x1xf32, #tpu.memory_space<vmem>>, vector<8x1xf32>
    %107 = arith.mulf %105, %106 : vector<8x1xf32>
    %108 = vector.broadcast %96 : vector<8x1xf32> to vector<8x2560xf32>
    %109 = arith.subf %87, %108 : vector<8x2560xf32>
    %110 = vector.broadcast %107 : vector<8x1xf32> to vector<8x2560xf32>
    %111 = arith.mulf %109, %110 : vector<8x2560xf32>
    %c0_133 = arith.constant 0 : index
    %c0_134 = arith.constant 0 : index
    %112 = vector.load %arg9[%c0_133, %c0_134] : memref<8x1xf32, #tpu.memory_space<vmem>>, vector<8x1xf32>
    %113 = vector.broadcast %112 : vector<8x1xf32> to vector<8x2560xf32>
    %114 = arith.addf %111, %113 : vector<8x2560xf32>
    %cst_135 = arith.constant 0.000000e+00 : f32
    %115 = vector.broadcast %cst_135 : f32 to vector<8x2560xf32>
    %116 = arith.maximumf %114, %115 : vector<8x2560xf32>
    %c0_136 = arith.constant 0 : index
    %c0_137 = arith.constant 0 : index
    %117 = vector.load %arg10[%c0_136, %c0_137] : memref<8x2560xf32, #tpu.memory_space<vmem>>, vector<8x2560xf32>
    %118 = arith.addf %116, %117 : vector<8x2560xf32>
    %c0_138 = arith.constant 0 : index
    %c0_139 = arith.constant 0 : index
    %119 = vector.load %arg10[%c0_138, %c0_139] : memref<8x2560xf32, #tpu.memory_space<vmem>>, vector<8x2560xf32>
    tpu.vector_store %arg10[%c0_138, %c0_139], %118 {strides = array<i32>} : memref<8x2560xf32, #tpu.memory_space<vmem>>, vector<8x2560xf32>,
    return
  }
}

</mosaic_0001>

<bundles_post_ra>
// kernel: tpu_custom_call.1
= control target key start
LH: loop header
LB: loop body
LE: loop exit
PB: predicated region body
PF: predicated region fallthrough
CT: control target
= control target key end

     0   :  { %15 = vsyncpa [#allocation5], 0  ;;  %s11691_s0 = inlined_call_operand.hbm [shape: f32[8,2816], index: 0, kind: input, shape index: {}]   ;;  %s11692_s1 = inlined_call_operand.vmem [shape: f32[1,2560], index: 1, kind: input, shape index: {}]   ;;  %s11693_s2 = inlined_call_operand.vmem [shape: f32[8,72], index: 2, kind: input, shape index: {}]   ;;  %s11694_s3 = inlined_call_operand.vmem [shape: f32[8,1], index: 3, kind: input, shape index: {}]   ;;  %s11695_s4 = inlined_call_operand.vmem [shape: f32[8,72], index: 4, kind: input, shape index: {}]   ;;  %s11696_s5 = inlined_call_operand.vmem [shape: f32[8,1], index: 5, kind: input, shape index: {}]   ;;  %s11697_s6 = inlined_call_operand.vmem [shape: f32[8,72], index: 6, kind: input, shape index: {}]   ;;  %s11698_s7 = inlined_call_operand.vmem [shape: f32[8,1], index: 7, kind: input, shape index: {}]   ;;  %s11699_s8 = inlined_call_operand.vmem [shape: f32[8,1], index: 8, kind: input, shape index: {}]   ;;  %s11700_s9 = inlined_call_operand.vmem [shape: f32[8,1], index: 9, kind: input, shape index: {}]   ;;  %s11701_s10 = inlined_call_operand.hbm [shape: f32[8,2560], index: 10, kind: output, shape index: {}]  }
   0x1   :  { %16 = vsyncpa [#allocation6], 0  ;;  %s8465_s13 = smov [#allocation4]   ;;  %s8417_s17 = scalar_lea.hbm %s11691_s0, 2816 }
   0x2   :  { %s23_s14 = sshll.u32 %s8465_s13, 4  ;;  %p8418_p0 = scmp.ne.s32.totalorder %s11691_s0, %s8417_s17  ;;  %s24_s14 = int_to_ptr.vmem [resolvable:$true] %s23_s14 }
   0x3   :  { %p8421_p1 = scmp.lt.u32.totalorder %s8417_s17, %s11691_s0 }
   0x5   :  { %p8423_p2 = pnand %p8421_p1, %p8418_p0 }
   0x7   :  { %8426 = shalt.err (!%p8423_p2)
}
   0x8   :  { %s8427_s22 = scalar_lea.vmem %s24_s14, 2816  ;;  %p8432_p4 = scmp.lt.s32.totalorder %s24_s14, %s24_s14 }
   0x9   :  { %p8428_p3 = scmp.ne.s32.totalorder %s24_s14, %s8427_s22  ;;  %p8433_p5 = scmp.lt.s32.totalorder %s8427_s22, %s8427_s22 }
   0xb   :  { %p8434_p6 = por %p8433_p5, %p8432_p4 }
   0xd   :  { %p8435_p7 = pnand %p8434_p6, %p8428_p3 }
   0xf   :  { %8438 = shalt.err (!%p8435_p7)
}
  0x10   :  { %26 = dma.hbm_to_vmem [thread:$0]  %s11691_s0, 2816, %s24_s14, [#allocation5]  }
  0x11   :  { %8461 = dma.done.wait [#allocation5], 2816  }
  0x12   :  { %8462 = vsyncadd [#allocation5], 4294964480  ;;  %v8544_v0 = vld [vmem:[#allocation4 + $0x8] sm:$0xff]  ;;  %v8546_v1 = vld [vmem:[#allocation4 + $0x10] sm:$0xff]  ;;  %s8466_s25 = smov 36   ;;  %s8467_s0 = smov 35  }
  0x13   :  { %v53_v2 = vld [vmem:[#allocation4] sm:$0xff]  ;;  %v7360_v3 = vpack.i.bf16 %v8546_v1, %v8544_v0  ;;  %v8550_v4 = vld [vmem:[#allocation4 + $0x18] sm:$0xff]  ;;  %s8468_s26 = smov 34   ;;  %s8469_s27 = smov 1   ;;  %v8561_v7 = vld [vmem:[#allocation4 + $0x28] sm:$0xff]  ;;  %v11702_v15 = vmov 0.0  }
  0x14   :  { %v7370_v5 = vpack.i.bf16 %v8550_v4, %v53_v2  ;;  %v8559_v6 = vld [vmem:[#allocation4 + $0x20] sm:$0xff]  ;;  %v7400_v8 = vpack.i.bf16 %v8550_v4, %v8546_v1  ;;  %s8470_s28 = smov 127   ;;  %s8471_s29 = smov 94   ;;  %v8579_v11 = vld [vmem:[#allocation4 + $0x30] sm:$0xff]  ;;  %v60_v12 = vld [vmem:[#allocation4 + $0x38] sm:$0xff]  ;;  %1508 = vmatprep.mubr.f32.mxu0 %v11702_v15  ;;  %1579 = vmatprep.mubr.f32.mxu1 %v11702_v15  ;;  %vm137_vm0 = vcmask 293888  }
  0x15   :  { %7361 = vrot.lane.b32.xlu0 %v7360_v3, %s8466_s25  ;;  %v7405_v9 = vpack.i.bf16 %v8561_v7, %v8559_v6  ;;  %v7415_v10 = vpack.i.bf16 %v8559_v6, %v8544_v0  ;;  %s8472_s30 = smov 93   ;;  %v7450_v13 = vpack.i.bf16 %v8579_v11, %v8561_v7  ;;  %v7455_v14 = vpack.i.bf16 %v60_v12, %v8579_v11  ;;  %s8474_s11 = smov 92   ;;  %v8599_v16 = vld [vmem:[#allocation4 + $0x40] sm:$0xff]  ;;  %v62_v17 = vld [vmem:[#allocation4 + $0x48] sm:$0xff]  ;;  %v682_v20 = vld [vmem:[#allocation4 + $0x50] sm:$0xff] }
  0x16   :  { %7371 = vrot.lane.b32.xlu1 %v7370_v5, %s8466_s25  ;;  %v7485_v18 = vpack.i.bf16 %v8599_v16, %v60_v12  ;;  %v7490_v19 = vpack.i.bf16 %v62_v17, %v8599_v16  ;;  %v7520_v21 = vpack.i.bf16 %v682_v20, %v62_v17  ;;  %v64_v22 = vld [vmem:[#allocation4 + $0x58] sm:$0xff]  ;;  %v8624_v24 = vld [vmem:[#allocation4 + $0x60] sm:$0xff]  ;;  %v8626_v25 = vld [vmem:[#allocation4 + $0x68] sm:$0xff]  ;;  %vm282_vm1 = vcmask 285696  }
  0x17   :  { %v7525_v23 = vpack.i.bf16 %v64_v22, %v682_v20  ;;  %v7555_v26 = vpack.i.bf16 %v8624_v24, %v64_v22  ;;  %v7560_v27 = vpack.i.bf16 %v8626_v25, %v8624_v24  ;;  %v8640_v28 = vld [vmem:[#allocation4 + $0x70] sm:$0xff]  ;;  %v8646_v30 = vld [vmem:[#allocation4 + $0x78] sm:$0xff]  ;;  %v8678_v44 = vld [vmem:[#allocation4 + $0x80] sm:$0xff]  ;;  %vm427_vm2 = vcmask 277504  }
  0x18   :  { %v7590_v29 = vpack.i.bf16 %v8640_v28, %v8626_v25  ;;  %v7595_v31 = vpack.i.bf16 %v8646_v30, %v8640_v28  ;;  %v8684_v49 = vld [vmem:[#allocation4 + $0x88] sm:$0xff]  ;;  %vm572_vm3 = vcmask 7168   ;;  %v7625_v56 = vpack.i.bf16 %v8678_v44, %v8646_v30 }
  0x19   :  { %7366 = vrot.lane.b32.xlu0 %v7360_v3, %s8467_s0  ;;  %v8698_v57 = vpack.i.bf16 %v8684_v49, %v8678_v44  ;;  %vm757_vm4 = vcmask 1039360   ;;  %vm902_vm5 = vcmask 769024   ;;  %vm1047_vm6 = vcmask 760832  }
  0x1a   :  { %7376 = vrot.lane.b32.xlu1 %v7370_v5, %s8467_s0  ;;  %vm1192_vm7 = vcmask 752640   ;;  %vm1440_vm8 = vcmask 588800  }
  0x1d   :  { %7381 = vrot.lane.b32.xlu0 %v7360_v3, %s8468_s26 }
  0x1e   :  { %7386 = vrot.lane.b32.xlu1 %v7360_v3, %s8469_s27 }
  0x21   :  { %7391 = vrot.lane.b32.xlu0 %v7370_v5, %s8468_s26 }
  0x22   :  { %7396 = vrot.lane.b32.xlu1 %v7370_v5, %s8469_s27 }
  0x25   :  { %7401 = vrot.lane.b32.xlu0 %v7400_v8, %s8470_s28 }
  0x26   :  { %7406 = vrot.lane.b32.xlu1 %v7405_v9, %s8466_s25 }
  0x29   :  { %7411 = vrot.lane.b32.xlu0 %v7405_v9, %s8467_s0 }
  0x2a   :  { %7416 = vrot.lane.b32.xlu1 %v7415_v10, %s8470_s28 }
  0x2d   :  { %7421 = vrot.lane.b32.xlu0 %v7400_v8, %s8471_s29 }
  0x2e   :  { %7426 = vrot.lane.b32.xlu1 %v7400_v8, %s8472_s30 }
  0x31   :  { %7431 = vrot.lane.b32.xlu0 %v7405_v9, %s8468_s26 }
  0x32   :  { %7436 = vrot.lane.b32.xlu1 %v7405_v9, %s8469_s27 }
  0x35   :  { %7441 = vrot.lane.b32.xlu0 %v7415_v10, %s8471_s29 }
  0x36   :  { %7446 = vrot.lane.b32.xlu1 %v7415_v10, %s8472_s30 }
  0x39   :  { %7451 = vrot.lane.b32.xlu0 %v7450_v13, %s8470_s28 }
  0x3a   :  { %7456 = vrot.lane.b32.xlu1 %v7455_v14, %s8466_s25 }
  0x3d   :  { %7461 = vrot.lane.b32.xlu0 %v7455_v14, %s8467_s0 }
  0x3e   :  { %1152 = vrot.lane.b32.xlu1 %v8546_v1, %s8474_s11 }
  0x41   :  { %1154 = vrot.lane.b32.xlu0 %v8550_v4, %s8474_s11 }
  0x42   :  { %1150 = vrot.lane.b32.xlu1 %v8544_v0, %s8474_s11 }
  0x45   :  { %7466 = vrot.lane.b32.xlu0 %v7450_v13, %s8471_s29 }
  0x46   :  { %7471 = vrot.lane.b32.xlu1 %v7450_v13, %s8472_s30 }
  0x49   :  { %7476 = vrot.lane.b32.xlu0 %v7455_v14, %s8468_s26 }
  0x4a   :  { %7481 = vrot.lane.b32.xlu1 %v7455_v14, %s8469_s27 }
  0x4d   :  { %7486 = vrot.lane.b32.xlu0 %v7485_v18, %s8470_s28 }
  0x4e   :  { %7491 = vrot.lane.b32.xlu1 %v7490_v19, %s8466_s25 }
  0x51   :  { %7496 = vrot.lane.b32.xlu0 %v7490_v19, %s8467_s0 }
  0x52   :  { %1156 = vrot.lane.b32.xlu1 %v8559_v6, %s8474_s11 }
  0x55   :  { %1158 = vrot.lane.b32.xlu0 %v8561_v7, %s8474_s11 }
  0x56   :  { %7501 = vrot.lane.b32.xlu1 %v7485_v18, %s8471_s29 }
  0x59   :  { %7506 = vrot.lane.b32.xlu0 %v7485_v18, %s8472_s30 }
  0x5a   :  { %7511 = vrot.lane.b32.xlu1 %v7490_v19, %s8468_s26 }
  0x5d   :  { %7516 = vrot.lane.b32.xlu0 %v7490_v19, %s8469_s27 }
  0x5e   :  { %7521 = vrot.lane.b32.xlu1 %v7520_v21, %s8470_s28 }
  0x61   :  { %7526 = vrot.lane.b32.xlu0 %v7525_v23, %s8466_s25 }
  0x62   :  { %7531 = vrot.lane.b32.xlu1 %v7525_v23, %s8467_s0 }
  0x65   :  { %1160 = vrot.lane.b32.xlu0 %v8579_v11, %s8474_s11 }
  0x66   :  { %1162 = vrot.lane.b32.xlu1 %v60_v12, %s8474_s11 }
  0x69   :  { %7536 = vrot.lane.b32.xlu0 %v7520_v21, %s8471_s29 }
  0x6a   :  { %7541 = vrot.lane.b32.xlu1 %v7520_v21, %s8472_s30 }
  0x6d   :  { %7546 = vrot.lane.b32.xlu0 %v7525_v23, %s8468_s26 }
  0x6e   :  { %7551 = vrot.lane.b32.xlu1 %v7525_v23, %s8469_s27 }
  0x71   :  { %7556 = vrot.lane.b32.xlu0 %v7555_v26, %s8470_s28 }
  0x72   :  { %7561 = vrot.lane.b32.xlu1 %v7560_v27, %s8466_s25 }
  0x75   :  { %7566 = vrot.lane.b32.xlu0 %v7560_v27, %s8467_s0 }
  0x76   :  { %1164 = vrot.lane.b32.xlu1 %v8599_v16, %s8474_s11 }
  0x79   :  { %1166 = vrot.lane.b32.xlu0 %v62_v17, %s8474_s11 }
  0x7a   :  { %7571 = vrot.lane.b32.xlu1 %v7555_v26, %s8471_s29 }
  0x7d   :  { %7576 = vrot.lane.b32.xlu0 %v7555_v26, %s8472_s30 }
  0x7e   :  { %7581 = vrot.lane.b32.xlu1 %v7560_v27, %s8468_s26 }
  0x81   :  { %7586 = vrot.lane.b32.xlu0 %v7560_v27, %s8469_s27 }
  0x82   :  { %7591 = vrot.lane.b32.xlu1 %v7590_v29, %s8470_s28 }
  0x85   :  { %7596 = vrot.lane.b32.xlu0 %v7595_v31, %s8466_s25 }
  0x86   :  { %7601 = vrot.lane.b32.xlu1 %v7595_v31, %s8467_s0 }
  0x87   :  { %v8654_v32 = vpop.permute.xlu0 %7361 }
  0x88   :  { %v8656_v33 = vpop.permute.xlu1 %7371  ;;  %v7364_v34 = vunpack.i.h.bf16 %v8654_v32  ;;  %v7363_v35 = vunpack.i.l.bf16 %v8654_v32 }
  0x89   :  { %1168 = vrot.lane.b32.xlu0 %v682_v20, %s8474_s11  ;;  %v7373_v36 = vunpack.i.l.bf16 %v8656_v33  ;;  %v7374_v21 = vunpack.i.h.bf16 %v8656_v33  ;;  %v8755_v33 = vld [vmem:[#allocation4 + $0x90] sm:$0xff] }
  0x8a   :  { %1170 = vrot.lane.b32.xlu1 %v64_v22, %s8474_s11  ;;  %v139_v42 = vsel %vm137_vm0, %v7363_v35, %v7364_v34 }
  0x8b   :  { %v8663_v37 = vpop.permute.xlu0 %7366  ;;  %v138_v47 = vsel %vm137_vm0, %v7373_v36, %v7363_v35  ;;  %v8475_v35 = vmov 0  }
  0x8c   :  { %v7369_v38 = vunpack.i.h.bf16 %v8663_v37  ;;  %v7368_v39 = vunpack.i.l.bf16 %v8663_v37  ;;  %v8667_v40 = vpop.permute.xlu1 %7376  ;;  %7710 = vset.pattern.permute.xlu0 %v8475_v35  ;;  %8411 = vset.pattern.permute.xlu1 %v8475_v35 }
  0x8d   :  { %v7378_v41 = vunpack.i.l.bf16 %v8667_v40  ;;  %7606 = vrot.lane.b32.xlu0 %v7590_v29, %s8471_s29  ;;  %v7379_v14 = vunpack.i.h.bf16 %v8667_v40 }
  0x8e   :  { %7611 = vrot.lane.b32.xlu1 %v7590_v29, %s8472_s30  ;;  %v284_v43 = vsel %vm282_vm1, %v7368_v39, %v7369_v38 }
  0x8f   :  { %v8680_v45 = vpop.permute.xlu0 %7381  ;;  %v6868_v46 = vpack.c.bf16 %v284_v43, %v139_v42  ;;  %v283_v48 = vsel %vm282_vm1, %v7378_v41, %v7368_v39  ;;  %v285_v27 = vsel %vm282_vm1, %v7369_v38, %v7379_v14  ;;  %v140_v38 = vsel %vm137_vm0, %v7364_v34, %v7374_v21  ;;  %v8777_v34 = vld [vmem:[#allocation4 + $0x98] sm:$0xff] }
  0x90   :  { %v7384_v50 = vunpack.i.h.bf16 %v8680_v45  ;;  %v7383_v51 = vunpack.i.l.bf16 %v8680_v45  ;;  %v8688_v52 = vpop.permute.xlu1 %7386  ;;  %v6870_v53 = vpack.c.bf16 %v283_v48, %v138_v47  ;;  %v6886_v43 = vpack.c.bf16 %v285_v27, %v140_v38 }
  0x91   :  { %v7389_v54 = vunpack.i.h.bf16 %v8688_v52  ;;  %v7388_v55 = vunpack.i.l.bf16 %v8688_v52  ;;  %7616 = vrot.lane.b32.xlu0 %v7595_v31, %s8468_s26  ;;  %6869 = vmatprep.subr.bf16.mxu0 %v6868_v46 }
  0x92   :  { %7621 = vrot.lane.b32.xlu1 %v7595_v31, %s8469_s27  ;;  %6871 = vmatpush1.bf16.msra.mxu0 %v6870_v53  ;;  %v429_v58 = vsel %vm427_vm2, %v7383_v51, %v7384_v50 }
  0x93   :  { %v8703_v59 = vpop.permute.xlu0 %7391  ;;  %v574_v60 = vsel %vm572_vm3, %v7388_v55, %v7389_v54 }
  0x94   :  { %v7393_v61 = vunpack.i.l.bf16 %v8703_v59  ;;  %v8709_v62 = vpop.permute.xlu1 %7396  ;;  %v6872_v63 = vpack.c.bf16 %v574_v60, %v429_v58  ;;  %v7394_v46 = vunpack.i.h.bf16 %v8703_v59  ;;  %v7665_v59 = vpack.i.bf16 %v8777_v34, %v8755_v33 }
  0x95   :  { %v7398_v2 = vunpack.i.l.bf16 %v8709_v62  ;;  %7626 = vrot.lane.b32.xlu0 %v7625_v56, %s8470_s28  ;;  %v7399_v47 = vunpack.i.h.bf16 %v8709_v62 }
  0x96   :  { %7631 = vrot.lane.b32.xlu1 %v8698_v57, %s8466_s25  ;;  %6873 = vmatprep.subr.bf16.mxu0 %v6872_v63  ;;  %v428_v3 = vsel %vm427_vm2, %v7393_v61, %v7383_v51  ;;  %v430_v61 = vsel %vm427_vm2, %v7384_v50, %v7394_v46 }
  0x97   :  { %v8716_v5 = vpop.permute.xlu0 %7401  ;;  %v573_v8 = vsel %vm572_vm3, %v7398_v2, %v7388_v55  ;;  %v575_v62 = vsel %vm572_vm3, %v7389_v54, %v7399_v47 }
  0x98   :  { %v7404_v9 = vunpack.i.h.bf16 %v8716_v5  ;;  %v7403_v10 = vunpack.i.l.bf16 %v8716_v5  ;;  %v8721_v12 = vpop.permute.xlu1 %7406  ;;  %v6874_v13 = vpack.c.bf16 %v573_v8, %v428_v3  ;;  %v6890_v50 = vpack.c.bf16 %v575_v62, %v430_v61 }
  0x99   :  { %7636 = vrot.lane.b32.xlu0 %v8698_v57, %s8467_s0  ;;  %v7408_v17 = vunpack.i.l.bf16 %v8721_v12 }
  0x9a   :  { %1172 = vrot.lane.b32.xlu1 %v8624_v24, %s8474_s11  ;;  %6875 = vmatpush1.bf16.msra.mxu0 %v6874_v13  ;;  %v759_v18 = vsel %vm757_vm4, %v7403_v10, %v7404_v9 }
  0x9b   :  { %v8732_v19 = vpop.permute.xlu0 %7411  ;;  %v6876_v20 = vpack.c.bf16 %v759_v18, %v8546_v1  ;;  %v141_v24 = vsel %vm137_vm0, %v7374_v21, %v7408_v17 }
  0x9c   :  { %v7413_v22 = vunpack.i.l.bf16 %v8732_v19  ;;  %v8737_v23 = vpop.permute.xlu1 %7416 }
  0x9d   :  { %v7418_v26 = vunpack.i.l.bf16 %v8737_v23  ;;  %1174 = vrot.lane.b32.xlu0 %v8626_v25, %s8474_s11  ;;  %6877 = vmatprep.subr.bf16.mxu0 %v6876_v20 }
  0x9e   :  { %7641 = vrot.lane.b32.xlu1 %v7625_v56, %s8471_s29  ;;  %v286_v1 = vsel %vm282_vm1, %v7379_v14, %v7413_v22 }
  0x9f   :  { %v8752_v29 = vpop.permute.xlu0 %7421  ;;  %v758_v31 = vsel %vm757_vm4, %v7418_v26, %v7403_v10  ;;  %v6884_v25 = vpack.c.bf16 %v286_v1, %v141_v24  ;;  %v7419_v10 = vunpack.i.h.bf16 %v8737_v23  ;;  %v7409_v26 = vunpack.i.h.bf16 %v8721_v12  ;;  %v8862_v12 = vld [vmem:[%s11693_s2] sm:$0xff] }
  0xa0   :  { %v7424_v36 = vunpack.i.h.bf16 %v8752_v29  ;;  %v7423_v39 = vunpack.i.l.bf16 %v8752_v29  ;;  %v8759_v40 = vpop.permute.xlu1 %7426  ;;  %v6878_v37 = vpack.c.bf16 %v758_v31, %v8544_v0  ;;  %v7660_v0 = vpack.i.bf16 %v8755_v33, %v8684_v49 }
  0xa1   :  { %v7429_v41 = vunpack.i.h.bf16 %v8759_v40  ;;  %v7428_v42 = vunpack.i.l.bf16 %v8759_v40  ;;  %7646 = vrot.lane.b32.xlu0 %v7625_v56, %s8472_s30  ;;  %6885 = vmatprep.subr.bf16.mxu1 %v6884_v25  ;;  %v760_v21 = vsel %vm757_vm4, %v7404_v9, %v7419_v10  ;;  %v7414_v24 = vunpack.i.h.bf16 %v8732_v19  ;;  %v8844_v25 = vld [vmem:[#allocation4 + $0xa0] sm:$0xff] }
  0xa2   :  { %7651 = vrot.lane.b32.xlu1 %v8698_v57, %s8468_s26  ;;  %6879 = vmatpush1.bf16.msra.mxu0 %v6878_v37  ;;  %v904_v32 = vsel %vm902_vm5, %v7423_v39, %v7424_v36 }
  0xa3   :  { %6887 = vmatpush1.bf16.msra.mxu1 %v6886_v43  ;;  %v8779_v48 = vpop.permute.xlu0 %7431  ;;  %v1049_v51 = vsel %vm1047_vm6, %v7428_v42, %v7429_v41 }
  0xa4   :  { %v7433_v53 = vunpack.i.l.bf16 %v8779_v48  ;;  %v8785_v55 = vpop.permute.xlu1 %7436  ;;  %v6880_v56 = vpack.c.bf16 %v1049_v51, %v904_v32  ;;  %v7434_v51 = vunpack.i.h.bf16 %v8779_v48 }
  0xa5   :  { %v7438_v58 = vunpack.i.l.bf16 %v8785_v55  ;;  %7656 = vrot.lane.b32.xlu0 %v8698_v57, %s8469_s27 }
  0xa6   :  { %7661 = vrot.lane.b32.xlu1 %v7660_v0, %s8470_s28  ;;  %6881 = vmatprep.subr.bf16.mxu0 %v6880_v56  ;;  %v431_v60 = vsel %vm427_vm2, %v7394_v46, %v7433_v53 }
  0xa7   :  { %v8802_v63 = vpop.permute.xlu0 %7441  ;;  %v576_v57 = vsel %vm572_vm3, %v7399_v47, %v7438_v58 }
  0xa8   :  { %v7443_v2 = vunpack.i.l.bf16 %v8802_v63  ;;  %v8808_v3 = vpop.permute.xlu1 %7446  ;;  %v6888_v8 = vpack.c.bf16 %v576_v57, %v431_v60 }
  0xa9   :  { %v7448_v45 = vunpack.i.l.bf16 %v8808_v3  ;;  %7666 = vrot.lane.b32.xlu0 %v7665_v59, %s8466_s25  ;;  %v7449_v43 = vunpack.i.h.bf16 %v8808_v3 }
  0xaa   :  { %7671 = vrot.lane.b32.xlu1 %v7665_v59, %s8467_s0  ;;  %6889 = vmatprep.subr.bf16.mxu1 %v6888_v8  ;;  %v903_v52 = vsel %vm902_vm5, %v7443_v2, %v7423_v39 }
  0xab   :  { %6891 = vmatpush1.bf16.msra.mxu1 %v6890_v50  ;;  %v8815_v54 = vpop.permute.xlu0 %7451  ;;  %v1048_v13 = vsel %vm1047_vm6, %v7448_v45, %v7428_v42  ;;  %v7444_v42 = vunpack.i.h.bf16 %v8802_v63  ;;  %v1050_v62 = vsel %vm1047_vm6, %v7429_v41, %v7449_v43 }
  0xac   :  { %v7453_v14 = vunpack.i.l.bf16 %v8815_v54  ;;  %v8819_v18 = vpop.permute.xlu1 %7456  ;;  %v6882_v20 = vpack.c.bf16 %v1048_v13, %v903_v52  ;;  %v7454_v41 = vunpack.i.h.bf16 %v8815_v54 }
  0xad   :  { %1176 = vrot.lane.b32.xlu0 %v8640_v28, %s8474_s11  ;;  %v7458_v5 = vunpack.i.l.bf16 %v8819_v18  ;;  %v905_v61 = vsel %vm902_vm5, %v7424_v36, %v7444_v42  ;;  %v432_v36 = vsel %vm427_vm2, %v7433_v53, %v7434_v51 }
  0xae   :  { %1178 = vrot.lane.b32.xlu1 %v8646_v30, %s8474_s11  ;;  %6883 = vmatpush1.bf16.msra.mxu0 %v6882_v20  ;;  %v761_v23 = vsel %vm757_vm4, %v7419_v10, %v7453_v14  ;;  %v6894_v30 = vpack.c.bf16 %v760_v21, %v8550_v4  ;;  %v287_v4 = vsel %vm282_vm1, %v7413_v22, %v7414_v24  ;;  %v7459_v20 = vunpack.i.h.bf16 %v8819_v18 }
  0xaf   :  { %v8833_v1 = vpop.permute.xlu0 %7461  ;;  %v6892_v28 = vpack.c.bf16 %v761_v23, %v8559_v6  ;;  %v142_v6 = vsel %vm137_vm0, %v7408_v17, %v7409_v26  ;;  %v143_v38 = vsel %vm137_vm0, %v7409_v26, %v7458_v5  ;;  %v7695_v22 = vpack.i.bf16 %v8844_v25, %v8777_v34 }
  0xb0   :  { %v7463_v9 = vunpack.i.l.bf16 %v8833_v1  ;;  %v1153_v27 = vpop.permute.xlu1 %1152  ;;  %v6902_v46 = vpack.c.bf16 %v287_v4, %v142_v6  ;;  %v6898_v29 = vpack.c.bf16 %v1050_v62, %v905_v61  ;;  %v762_v52 = vsel %vm757_vm4, %v7453_v14, %v7454_v41 }
  0xb1   :  { %7676 = vrot.lane.b32.xlu0 %v7660_v0, %s8471_s29  ;;  %6893 = vmatprep.subr.bf16.mxu1 %v6892_v28  ;;  %v7464_v21 = vunpack.i.h.bf16 %v8833_v1 }
  0xb2   :  { %7681 = vrot.lane.b32.xlu1 %v7660_v0, %s8472_s30  ;;  %6895 = vmatpush1.bf16.msra.mxu1 %v6894_v30  ;;  %v288_v31 = vsel %vm282_vm1, %v7414_v24, %v7463_v9  ;;  %v6910_v24 = vpack.c.bf16 %v762_v52, %v8561_v7 }
  0xb3   :  { %v8852_v35 = vpop.permute.xlu0 %1154  ;;  %v6900_v19 = vpack.c.bf16 %v288_v31, %v143_v38  ;;  %v693_v31 = vld [vmem:[#allocation4 + $0xa8] sm:$0xff] }
  0xb4   :  { %v1151_v39 = vpop.permute.xlu1 %1150  ;;  %v1194_v37 = vsel %vm1192_vm7, %v1153_v27, %v8852_v35 }
  0xb5   :  { %7686 = vrot.lane.b32.xlu0 %v7665_v59, %s8468_s26  ;;  %1460 = vmatprep.subr.mxu0 %v1194_v37  ;;  %v1193_v17 = vsel %vm1192_vm7, %v1151_v39, %v1153_v27  ;;  %v289_v27 = vsel %vm282_vm1, %v7463_v9, %v7464_v21 }
  0xb6   :  { %7691 = vrot.lane.b32.xlu1 %v7665_v59, %s8469_s27  ;;  %1461 = vmatpush1.msra.mxu0 %v1193_v17  ;;  %v7439_v59 = vunpack.i.h.bf16 %v8785_v55 }
  0xb7   :  { %v8871_v47 = vpop.permute.xlu0 %7466  ;;  %6901 = vmatprep.subr.bf16.mxu0 %v6900_v19  ;;  %6838 = vmatmul.mubr.msk.f32.vlgmr.msra.gmra.mrb[0].mxu0 %vm1440_vm8, %v8862_v12 }
  0xb8   :  { %v7468_v0 = vunpack.i.l.bf16 %v8871_v47  ;;  %v8876_v32 = vpop.permute.xlu1 %7471  ;;  %6903 = vmatpush1.bf16.msra.mxu0 %v6902_v46  ;;  %1650 = vmatprep.mubr.f32.mxu0 %v11702_v15  ;;  %v577_v40 = vsel %vm572_vm3, %v7438_v58, %v7439_v59  ;;  %v7469_v18 = vunpack.i.h.bf16 %v8871_v47 }
  0xb9   :  { %v7473_v56 = vunpack.i.l.bf16 %v8876_v32  ;;  %7696 = vrot.lane.b32.xlu0 %v7695_v22, %s8470_s28 }
  0xba   :  { %135 = vrot.lane.b32.xlu1 %v8844_v25, %s8466_s25  ;;  %v906_v60 = vsel %vm902_vm5, %v7444_v42, %v7468_v0 }
  0xbb   :  { %v8894_v63 = vpop.permute.xlu0 %7476  ;;  %v1051_v57 = vsel %vm1047_vm6, %v7449_v43, %v7473_v56 }
  0xbc   :  { %v7478_v2 = vunpack.i.l.bf16 %v8894_v63  ;;  %v8900_v3 = vpop.permute.xlu1 %7481  ;;  %v6896_v8 = vpack.c.bf16 %v1051_v57, %v906_v60  ;;  %v7479_v42 = vunpack.i.h.bf16 %v8894_v63 }
  0xbd   :  { %v7483_v10 = vunpack.i.l.bf16 %v8900_v3  ;;  %280 = vrot.lane.b32.xlu0 %v8844_v25, %s8467_s0  ;;  %v7484_v43 = vunpack.i.h.bf16 %v8900_v3 }
  0xbe   :  { %1180 = vrot.lane.b32.xlu1 %v8678_v44, %s8474_s11  ;;  %6897 = vmatprep.subr.bf16.mxu1 %v6896_v8  ;;  %v433_v45 = vsel %vm427_vm2, %v7434_v51, %v7478_v2  ;;  %v6906_v44 = vpack.c.bf16 %v577_v40, %v432_v36 }
  0xbf   :  { %6899 = vmatpush1.bf16.msra.mxu1 %v6898_v29  ;;  %v8917_v50 = vpop.permute.xlu0 %7486  ;;  %v578_v48 = vsel %vm572_vm3, %v7439_v59, %v7483_v10  ;;  %v579_v61 = vsel %vm572_vm3, %v7483_v10, %v7484_v43 }
  0xc0   :  { %v7488_v53 = vunpack.i.l.bf16 %v8917_v50  ;;  %v8923_v55 = vpop.permute.xlu1 %7491  ;;  %v6904_v58 = vpack.c.bf16 %v578_v48, %v433_v45  ;;  %v639_v48 = vld [vmem:[#allocation4 + $0x38] sm:$0xff] }
  0xc1   :  { %1182 = vrot.lane.b32.xlu0 %v8684_v49, %s8474_s11  ;;  %v7493_v54 = vunpack.i.l.bf16 %v8923_v55 }
  0xc2   :  { %7701 = vrot.lane.b32.xlu1 %v7695_v22, %s8471_s29  ;;  %6905 = vmatprep.subr.bf16.mxu0 %v6904_v58  ;;  %v763_v13 = vsel %vm757_vm4, %v7454_v41, %v7488_v53 }
  0xc3   :  { %6907 = vmatpush1.bf16.msra.mxu0 %v6906_v44  ;;  %v8936_v23 = vpop.permute.xlu0 %7496  ;;  %v6908_v49 = vpack.c.bf16 %v763_v13, %v8579_v11  ;;  %v144_v11 = vsel %vm137_vm0, %v7458_v5, %v7459_v20  ;;  %v145_v4 = vsel %vm137_vm0, %v7459_v20, %v7493_v54  ;;  %v7474_v5 = vunpack.i.h.bf16 %v8876_v32 }
  0xc4   :  { %v7498_v14 = vunpack.i.l.bf16 %v8936_v23  ;;  %v1157_v26 = vpop.permute.xlu1 %1156  ;;  %v6918_v37 = vpack.c.bf16 %v289_v27, %v144_v11  ;;  %v7499_v36 = vunpack.i.h.bf16 %v8936_v23 }
  0xc5   :  { %7706 = vrot.lane.b32.xlu0 %v7695_v22, %s8472_s30  ;;  %6909 = vmatprep.subr.bf16.mxu0 %v6908_v49  ;;  %v1195_v1 = vsel %vm1192_vm7, %v8852_v35, %v1157_v26  ;;  %v907_v35 = vsel %vm902_vm5, %v7468_v0, %v7469_v18  ;;  %v1052_v22 = vsel %vm1047_vm6, %v7473_v56, %v7474_v5  ;;  %v7489_v56 = vunpack.i.h.bf16 %v8917_v50  ;;  %v1434_v50 = vld [vmem:[%s11694_s3] sm:$0xff] }
  0xc6   :  { %425 = vrot.lane.b32.xlu1 %v8844_v25, %s8468_s26  ;;  %v290_v28 = vsel %vm282_vm1, %v7464_v21, %v7498_v14  ;;  %v6914_v60 = vpack.c.bf16 %v1052_v22, %v907_v35  ;;  %v291_v21 = vsel %vm282_vm1, %v7498_v14, %v7499_v36 }
  0xc7   :  { %6911 = vmatpush1.bf16.msra.mxu0 %v6910_v24  ;;  %v8954_v30 = vpop.permute.xlu0 %1158  ;;  %v6916_v9 = vpack.c.bf16 %v290_v28, %v145_v4  ;;  %v764_v29 = vsel %vm757_vm4, %v7488_v53, %v7489_v56 }
  0xc8   :  { %v8956_v7 = vpop.permute.xlu1 %7501  ;;  %v1196_v6 = vsel %vm1192_vm7, %v1157_v26, %v8954_v30  ;;  %v6926_v13 = vpack.c.bf16 %v764_v29, %v639_v48 }
  0xc9   :  { %570 = vrot.lane.b32.xlu0 %v8844_v25, %s8469_s27  ;;  %1531 = vmatprep.subr.mxu1 %v1196_v6  ;;  %v7503_v39 = vunpack.i.l.bf16 %v8956_v7  ;;  %v7504_v49 = vunpack.i.h.bf16 %v8956_v7 }
  0xca   :  { %755 = vrot.lane.b32.xlu1 %v693_v31, %s8470_s28  ;;  %1532 = vmatpush1.msra.mxu1 %v1195_v1 }
  0xcb   :  { %v8971_v38 = vpop.permute.xlu0 %7506  ;;  %6839 = vmatmul.mubr.msk.f32.vlgmr.msra.gmra.mrb[0].mxu1 %vm1440_vm8, %v8862_v12  ;;  %6917 = vmatprep.subr.bf16.mxu1 %v6916_v9  ;;  %v908_v47 = vsel %vm902_vm5, %v7469_v18, %v7503_v39  ;;  %v909_v27 = vsel %vm902_vm5, %v7503_v39, %v7504_v49 }
  0xcc   :  { %v7508_v17 = vunpack.i.l.bf16 %v8971_v38  ;;  %v8976_v19 = vpop.permute.xlu1 %7511  ;;  %6919 = vmatpush1.bf16.msra.mxu1 %v6918_v37  ;;  %1721 = vmatprep.mubr.f32.mxu1 %v11702_v15 }
  0xcd   :  { %1184 = vrot.lane.b32.xlu0 %v8755_v33, %s8474_s11  ;;  %v7513_v46 = vunpack.i.l.bf16 %v8976_v19  ;;  %v7514_v23 = vunpack.i.h.bf16 %v8976_v19 }
  0xce   :  { %1186 = vrot.lane.b32.xlu1 %v8777_v34, %s8474_s11  ;;  %v1053_v0 = vsel %vm1047_vm6, %v7474_v5, %v7508_v17  ;;  %v434_v34 = vsel %vm427_vm2, %v7478_v2, %v7479_v42  ;;  %v7494_v2 = vunpack.i.h.bf16 %v8923_v55  ;;  %v7509_v55 = vunpack.i.h.bf16 %v8971_v38 }
  0xcf   :  { %v8998_v32 = vpop.permute.xlu0 %7516  ;;  %v6912_v51 = vpack.c.bf16 %v1053_v0, %v908_v47  ;;  %v435_v57 = vsel %vm427_vm2, %v7479_v42, %v7513_v46  ;;  %v6922_v45 = vpack.c.bf16 %v579_v61, %v434_v34  ;;  %v436_v5 = vsel %vm427_vm2, %v7513_v46, %v7514_v23 }
  0xd0   :  { %v7518_v33 = vunpack.i.l.bf16 %v8998_v32  ;;  %v9002_v59 = vpop.permute.xlu1 %7521  ;;  %v146_v53 = vsel %vm137_vm0, %v7493_v54, %v7494_v2 }
  0xd1   :  { %v7523_v62 = vunpack.i.l.bf16 %v9002_v59  ;;  %900 = vrot.lane.b32.xlu0 %v693_v31, %s8471_s29  ;;  %6913 = vmatprep.subr.bf16.mxu0 %v6912_v51  ;;  %v6934_v11 = vpack.c.bf16 %v291_v21, %v146_v53  ;;  %v7524_v38 = vunpack.i.h.bf16 %v9002_v59 }
  0xd2   :  { %1045 = vrot.lane.b32.xlu1 %v693_v31, %s8472_s30  ;;  %6915 = vmatpush1.bf16.msra.mxu0 %v6914_v60  ;;  %v580_v63 = vsel %vm572_vm3, %v7484_v43, %v7518_v33  ;;  %v641_v60 = vld [vmem:[#allocation4 + $0x48] sm:$0xff] }
  0xd3   :  { %v9020_v3 = vpop.permute.xlu0 %7526  ;;  %v6920_v8 = vpack.c.bf16 %v580_v63, %v435_v57  ;;  %v765_v10 = vsel %vm757_vm4, %v7489_v56, %v7523_v62  ;;  %v766_v0 = vsel %vm757_vm4, %v7523_v62, %v7524_v38 }
  0xd4   :  { %v7528_v40 = vunpack.i.l.bf16 %v9020_v3  ;;  %v9030_v41 = vpop.permute.xlu1 %7531  ;;  %v6924_v44 = vpack.c.bf16 %v765_v10, %v8599_v16  ;;  %v7529_v61 = vunpack.i.h.bf16 %v9020_v3  ;;  %v6942_v62 = vpack.c.bf16 %v766_v0, %v641_v60  ;;  %v643_v0 = vld [vmem:[#allocation4 + $0x58] sm:$0xff] }
  0xd5   :  { %v7533_v58 = vunpack.i.l.bf16 %v9030_v41  ;;  %6921 = vmatprep.subr.bf16.mxu1 %v6920_v8  ;;  %1188 = vrot.lane.b32.xlu0 %v8844_v25, %s8474_s11  ;;  %v7534_v57 = vunpack.i.h.bf16 %v9030_v41 }
  0xd6   :  { %6923 = vmatpush1.bf16.msra.mxu1 %v6922_v45  ;;  %1190 = vrot.lane.b32.xlu1 %v693_v31, %s8474_s11  ;;  %v147_v20 = vsel %vm137_vm0, %v7494_v2, %v7528_v40  ;;  %v7519_v31 = vunpack.i.h.bf16 %v8998_v32 }
  0xd7   :  { %v1161_v52 = vpop.permute.xlu0 %1160  ;;  %6925 = vmatprep.subr.bf16.mxu1 %v6924_v44  ;;  %v292_v16 = vsel %vm282_vm1, %v7499_v36, %v7533_v58  ;;  %v148_v36 = vsel %vm137_vm0, %v7528_v40, %v7529_v61  ;;  %v293_v45 = vsel %vm282_vm1, %v7533_v58, %v7534_v57 }
  0xd8   :  { %v9054_v54 = vpop.permute.xlu1 %1162  ;;  %v1197_v26 = vsel %vm1192_vm7, %v8954_v30, %v1161_v52  ;;  %v6932_v28 = vpack.c.bf16 %v292_v16, %v147_v20  ;;  %v1054_v30 = vsel %vm1047_vm6, %v7508_v17, %v7509_v55  ;;  %v581_v37 = vsel %vm572_vm3, %v7518_v33, %v7519_v31  ;;  %v642_v33 = vld [vmem:[#allocation4 + $0x50] sm:$0xff] }
  0xd9   :  { %v1198_v24 = vsel %vm1192_vm7, %v1161_v52, %v9054_v54  ;;  %1437 = vperm.xlu0 %7710, %v1434_v50   ;;  %v6930_v39 = vpack.c.bf16 %v1054_v30, %v909_v27  ;;  %v6938_v47 = vpack.c.bf16 %v581_v37, %v436_v5  ;;  %v644_v5 = vld [vmem:[#allocation4 + $0x60] sm:$0xff] }
  0xda   :  { %1602 = vmatprep.subr.mxu0 %v1198_v24  ;;  %6927 = vmatpush1.bf16.msra.mxu1 %v6926_v13  ;;  %v6950_v13 = vpack.c.bf16 %v293_v45, %v148_v36 }
  0xdb   :  { %1603 = vmatpush1.msra.mxu0 %v1197_v26  ;;  %v9061_v14 = vpop.permute.xlu0 %7536  ;;  %3035 = vrot.lane.b32.xlu1 %v11702_v15, %s8470_s28 }
  0xdc   :  { %v7538_v6 = vunpack.i.l.bf16 %v9061_v14  ;;  %v9073_v4 = vpop.permute.xlu1 %7541  ;;  %6840 = vmatmul.mubr.msk.f32.vlgmr.msra.gmra.mrb[2].mxu0 %vm1440_vm8, %v8862_v12  ;;  %6933 = vmatprep.subr.bf16.mxu0 %v6932_v28  ;;  %v7539_v3 = vunpack.i.h.bf16 %v9061_v14 }
  0xdd   :  { %v7543_v18 = vunpack.i.l.bf16 %v9073_v4  ;;  %6935 = vmatpush1.bf16.msra.mxu0 %v6934_v11  ;;  %1792 = vmatprep.mubr.f32.mxu0 %v11702_v15  ;;  %v7544_v40 = vunpack.i.h.bf16 %v9073_v4 }
  0xde   :  { %v910_v7 = vsel %vm902_vm5, %v7504_v49, %v7538_v6  ;;  %v911_v49 = vsel %vm902_vm5, %v7538_v6, %v7539_v3 }
  0xdf   :  { %v9085_v1 = vpop.permute.xlu0 %7546  ;;  %v1055_v9 = vsel %vm1047_vm6, %v7509_v55, %v7543_v18  ;;  %v1056_v55 = vsel %vm1047_vm6, %v7543_v18, %v7544_v40 }
  0xe0   :  { %v7548_v17 = vunpack.i.l.bf16 %v9085_v1  ;;  %v9095_v35 = vpop.permute.xlu1 %7551  ;;  %v6928_v19 = vpack.c.bf16 %v1055_v9, %v910_v7  ;;  %v6946_v6 = vpack.c.bf16 %v1056_v55, %v911_v49 }
  0xe1   :  { %v7553_v22 = vunpack.i.l.bf16 %v9095_v35  ;;  %v7554_v26 = vunpack.i.h.bf16 %v9095_v35 }
  0xe2   :  { %6929 = vmatprep.subr.bf16.mxu1 %v6928_v19  ;;  %v437_v42 = vsel %vm427_vm2, %v7514_v23, %v7548_v17 }
  0xe3   :  { %v9101_v43 = vpop.permute.xlu0 %7556  ;;  %6931 = vmatpush1.bf16.msra.mxu1 %v6930_v39  ;;  %v582_v46 = vsel %vm572_vm3, %v7519_v31, %v7553_v22  ;;  %v583_v18 = vsel %vm572_vm3, %v7553_v22, %v7554_v26 }
  0xe4   :  { %v7558_v32 = vunpack.i.l.bf16 %v9101_v43  ;;  %v9110_v51 = vpop.permute.xlu1 %7561  ;;  %v6936_v56 = vpack.c.bf16 %v582_v46, %v437_v42  ;;  %v7559_v14 = vunpack.i.h.bf16 %v9101_v43 }
  0xe5   :  { %v7563_v2 = vunpack.i.l.bf16 %v9110_v51  ;;  %v7564_v9 = vunpack.i.h.bf16 %v9110_v51 }
  0xe6   :  { %6937 = vmatprep.subr.bf16.mxu0 %v6936_v56  ;;  %v767_v34 = vsel %vm757_vm4, %v7524_v38, %v7558_v32  ;;  %v768_v19 = vsel %vm757_vm4, %v7558_v32, %v7559_v14 }
  0xe7   :  { %v9117_v63 = vpop.permute.xlu0 %7566  ;;  %6939 = vmatpush1.bf16.msra.mxu0 %v6938_v47  ;;  %v6940_v59 = vpack.c.bf16 %v767_v34, %v642_v33  ;;  %v149_v52 = vsel %vm137_vm0, %v7529_v61, %v7563_v2  ;;  %v150_v56 = vsel %vm137_vm0, %v7563_v2, %v7564_v9  ;;  %v6958_v60 = vpack.c.bf16 %v768_v19, %v643_v0 }
  0xe8   :  { %v7568_v8 = vunpack.i.l.bf16 %v9117_v63  ;;  %v1165_v10 = vpop.permute.xlu1 %1164  ;;  %v7569_v39 = vunpack.i.h.bf16 %v9117_v63 }
  0xe9   :  { %6941 = vmatprep.subr.bf16.mxu0 %v6940_v59  ;;  %v1199_v44 = vsel %vm1192_vm7, %v9054_v54, %v1165_v10  ;;  %v7549_v54 = vunpack.i.h.bf16 %v9085_v1 }
  0xea   :  { %v294_v29 = vsel %vm282_vm1, %v7534_v57, %v7568_v8  ;;  %v295_v33 = vsel %vm282_vm1, %v7568_v8, %v7569_v39 }
  0xeb   :  { %v9128_v48 = vpop.permute.xlu0 %1166  ;;  %6943 = vmatpush1.bf16.msra.mxu0 %v6942_v62  ;;  %v6948_v41 = vpack.c.bf16 %v294_v29, %v149_v52  ;;  %v438_v4 = vsel %vm427_vm2, %v7548_v17, %v7549_v54  ;;  %v6966_v8 = vpack.c.bf16 %v295_v33, %v150_v56 }
  0xec   :  { %v9132_v50 = vpop.permute.xlu1 %7571  ;;  %v1200_v53 = vsel %vm1192_vm7, %v1165_v10, %v9128_v48  ;;  %v6954_v46 = vpack.c.bf16 %v583_v18, %v438_v4  ;;  %v645_v4 = vld [vmem:[#allocation4 + $0x68] sm:$0xff] }
  0xed   :  { %1673 = vmatprep.subr.mxu1 %v1200_v53  ;;  %v7573_v58 = vunpack.i.l.bf16 %v9132_v50  ;;  %v7574_v61 = vunpack.i.h.bf16 %v9132_v50 }
  0xee   :  { %1674 = vmatpush1.msra.mxu1 %v1199_v44 }
  0xef   :  { %v9140_v20 = vpop.permute.xlu0 %7576  ;;  %6841 = vmatmul.mubr.msk.f32.vlgmr.msra.gmra.mrb[2].mxu1 %vm1440_vm8, %v8862_v12  ;;  %6949 = vmatprep.subr.bf16.mxu1 %v6948_v41  ;;  %v912_v28 = vsel %vm902_vm5, %v7539_v3, %v7573_v58  ;;  %v913_v36 = vsel %vm902_vm5, %v7573_v58, %v7574_v61 }
  0xf0   :  { %v7578_v16 = vunpack.i.l.bf16 %v9140_v20  ;;  %v9145_v21 = vpop.permute.xlu1 %7581  ;;  %6951 = vmatpush1.bf16.msra.mxu1 %v6950_v13  ;;  %1863 = vmatprep.mubr.f32.mxu1 %v11702_v15  ;;  %v7579_v57 = vunpack.i.h.bf16 %v9140_v20 }
  0xf1   :  { %v7583_v24 = vunpack.i.l.bf16 %v9145_v21  ;;  %v7584_v10 = vunpack.i.h.bf16 %v9145_v21 }
  0xf2   :  { %v1057_v23 = vsel %vm1047_vm6, %v7544_v40, %v7578_v16  ;;  %v1058_v45 = vsel %vm1047_vm6, %v7578_v16, %v7579_v57 }
  0xf3   :  { %v9162_v11 = vpop.permute.xlu0 %7586  ;;  %v6944_v27 = vpack.c.bf16 %v1057_v23, %v912_v28  ;;  %v439_v37 = vsel %vm427_vm2, %v7549_v54, %v7583_v24  ;;  %v440_v3 = vsel %vm427_vm2, %v7583_v24, %v7584_v10  ;;  %v6962_v58 = vpack.c.bf16 %v1058_v45, %v913_v36 }
  0xf4   :  { %v7588_v30 = vunpack.i.l.bf16 %v9162_v11  ;;  %v9165_v31 = vpop.permute.xlu1 %7591 }
  0xf5   :  { %v7593_v7 = vunpack.i.l.bf16 %v9165_v31  ;;  %6945 = vmatprep.subr.bf16.mxu0 %v6944_v27  ;;  %v7594_v20 = vunpack.i.h.bf16 %v9165_v31 }
  0xf6   :  { %6947 = vmatpush1.bf16.msra.mxu0 %v6946_v6  ;;  %v584_v38 = vsel %vm572_vm3, %v7554_v26, %v7588_v30  ;;  %v646_v6 = vld [vmem:[#allocation4 + $0x70] sm:$0xff] }
  0xf7   :  { %v9178_v1 = vpop.permute.xlu0 %7596  ;;  %v6952_v17 = vpack.c.bf16 %v584_v38, %v439_v37  ;;  %v769_v35 = vsel %vm757_vm4, %v7559_v14, %v7593_v7  ;;  %v770_v23 = vsel %vm757_vm4, %v7593_v7, %v7594_v20 }
  0xf8   :  { %v7598_v22 = vunpack.i.l.bf16 %v9178_v1  ;;  %v9187_v42 = vpop.permute.xlu1 %7601  ;;  %v6956_v47 = vpack.c.bf16 %v769_v35, %v644_v5  ;;  %v7599_v14 = vunpack.i.h.bf16 %v9178_v1 }
  0xf9   :  { %v7603_v51 = vunpack.i.l.bf16 %v9187_v42  ;;  %6953 = vmatprep.subr.bf16.mxu1 %v6952_v17  ;;  %v7604_v18 = vunpack.i.h.bf16 %v9187_v42 }
  0xfa   :  { %6955 = vmatpush1.bf16.msra.mxu1 %v6954_v46  ;;  %v151_v43 = vsel %vm137_vm0, %v7564_v9, %v7598_v22  ;;  %v152_v35 = vsel %vm137_vm0, %v7598_v22, %v7599_v14 }
  0xfb   :  { %v1169_v32 = vpop.permute.xlu0 %1168  ;;  %6957 = vmatprep.subr.bf16.mxu1 %v6956_v47  ;;  %v296_v34 = vsel %vm282_vm1, %v7569_v39, %v7603_v51  ;;  %v6974_v39 = vpack.c.bf16 %v770_v23, %v645_v4  ;;  %v297_v19 = vsel %vm282_vm1, %v7603_v51, %v7604_v18 }
  0xfc   :  { %v9200_v63 = vpop.permute.xlu1 %1170  ;;  %v1201_v59 = vsel %vm1192_vm7, %v9128_v48, %v1169_v32  ;;  %v6964_v62 = vpack.c.bf16 %v296_v34, %v151_v43  ;;  %v7589_v48 = vunpack.i.h.bf16 %v9162_v11  ;;  %v6982_v42 = vpack.c.bf16 %v297_v19, %v152_v35 }
  0xfd   :  { %v1202_v2 = vsel %vm1192_vm7, %v1169_v32, %v9200_v63 }
  0xfe   :  { %1744 = vmatprep.subr.mxu0 %v1202_v2  ;;  %6959 = vmatpush1.bf16.msra.mxu1 %v6958_v60  ;;  %v585_v13 = vsel %vm572_vm3, %v7588_v30, %v7589_v48 }
  0xff   :  { %1745 = vmatpush1.msra.mxu0 %v1201_v59  ;;  %v9207_v29 = vpop.permute.xlu0 %7606  ;;  %v6970_v28 = vpack.c.bf16 %v585_v13, %v440_v3 }
 0x100   :  { %v7608_v44 = vunpack.i.l.bf16 %v9207_v29  ;;  %v9215_v53 = vpop.permute.xlu1 %7611  ;;  %6842 = vmatmul.mubr.msk.f32.vlgmr.msra.gmra.mrb[4].mxu0 %vm1440_vm8, %v8862_v12  ;;  %6965 = vmatprep.subr.bf16.mxu0 %v6964_v62  ;;  %v7609_v47 = vunpack.i.h.bf16 %v9207_v29 }
 0x101   :  { %v7613_v52 = vunpack.i.l.bf16 %v9215_v53  ;;  %6967 = vmatpush1.bf16.msra.mxu0 %v6966_v8  ;;  %1934 = vmatprep.mubr.f32.mxu0 %v11702_v15  ;;  %v7614_v0 = vunpack.i.h.bf16 %v9215_v53 }
 0x102   :  { %v914_v50 = vsel %vm902_vm5, %v7574_v61, %v7608_v44  ;;  %v915_v32 = vsel %vm902_vm5, %v7608_v44, %v7609_v47 }
 0x103   :  { %v9223_v40 = vpop.permute.xlu0 %7616  ;;  %v1059_v41 = vsel %vm1047_vm6, %v7579_v57, %v7613_v52  ;;  %v1060_v60 = vsel %vm1047_vm6, %v7613_v52, %v7614_v0 }
 0x104   :  { %v7618_v16 = vunpack.i.l.bf16 %v9223_v40  ;;  %v9229_v21 = vpop.permute.xlu1 %7621  ;;  %v6960_v49 = vpack.c.bf16 %v1059_v41, %v914_v50  ;;  %v7619_v34 = vunpack.i.h.bf16 %v9223_v40  ;;  %v648_v40 = vld [vmem:[#allocation4 + $0x80] sm:$0xff] }
 0x105   :  { %v7623_v55 = vunpack.i.l.bf16 %v9229_v21  ;;  %v7624_v61 = vunpack.i.h.bf16 %v9229_v21 }
 0x106   :  { %6961 = vmatprep.subr.bf16.mxu1 %v6960_v49  ;;  %v441_v54 = vsel %vm427_vm2, %v7584_v10, %v7618_v16  ;;  %v6978_v10 = vpack.c.bf16 %v1060_v60, %v915_v32  ;;  %v442_v29 = vsel %vm427_vm2, %v7618_v16, %v7619_v34 }
 0x107   :  { %v9233_v26 = vpop.permute.xlu0 %7626  ;;  %6963 = vmatpush1.bf16.msra.mxu1 %v6962_v58  ;;  %v586_v24 = vsel %vm572_vm3, %v7589_v48, %v7623_v55  ;;  %v587_v36 = vsel %vm572_vm3, %v7623_v55, %v7624_v61 }
 0x108   :  { %v7628_v11 = vunpack.i.l.bf16 %v9233_v26  ;;  %v9241_v27 = vpop.permute.xlu1 %7631  ;;  %v6968_v30 = vpack.c.bf16 %v586_v24, %v441_v54  ;;  %v7629_v45 = vunpack.i.h.bf16 %v9233_v26  ;;  %v647_v54 = vld [vmem:[#allocation4 + $0x78] sm:$0xff] }
 0x109   :  { %v7633_v5 = vunpack.i.l.bf16 %v9241_v27  ;;  %v7634_v41 = vunpack.i.h.bf16 %v9241_v27 }
 0x10a   :  { %6969 = vmatprep.subr.bf16.mxu0 %v6968_v30  ;;  %v771_v31 = vsel %vm757_vm4, %v7594_v20, %v7628_v11  ;;  %v6986_v20 = vpack.c.bf16 %v587_v36, %v442_v29  ;;  %v772_v16 = vsel %vm757_vm4, %v7628_v11, %v7629_v45 }
 0x10b   :  { %v9248_v9 = vpop.permute.xlu0 %7636  ;;  %6971 = vmatpush1.bf16.msra.mxu0 %v6970_v28  ;;  %v6972_v7 = vpack.c.bf16 %v771_v31, %v646_v6  ;;  %v153_v17 = vsel %vm137_vm0, %v7599_v14, %v7633_v5  ;;  %v154_v26 = vsel %vm137_vm0, %v7633_v5, %v7634_v41  ;;  %v6990_v30 = vpack.c.bf16 %v772_v16, %v647_v54 }
 0x10c   :  { %v7638_v37 = vunpack.i.l.bf16 %v9248_v9  ;;  %v1173_v38 = vpop.permute.xlu1 %1172  ;;  %v7639_v58 = vunpack.i.h.bf16 %v9248_v9 }
 0x10d   :  { %6973 = vmatprep.subr.bf16.mxu0 %v6972_v7  ;;  %v1203_v33 = vsel %vm1192_vm7, %v9200_v63, %v1173_v38 }
 0x10e   :  { %v298_v46 = vsel %vm282_vm1, %v7604_v18, %v7638_v37  ;;  %v299_v11 = vsel %vm282_vm1, %v7638_v37, %v7639_v58 }
 0x10f   :  { %v9263_v56 = vpop.permute.xlu0 %1174  ;;  %v6980_v43 = vpack.c.bf16 %v298_v46, %v153_v17  ;;  %6975 = vmatpush1.bf16.msra.mxu0 %v6974_v39  ;;  %v6998_v37 = vpack.c.bf16 %v299_v11, %v154_v26 }
 0x110   :  { %v9267_v1 = vpop.permute.xlu1 %7641  ;;  %v1204_v22 = vsel %vm1192_vm7, %v1173_v38, %v9263_v56 }
 0x111   :  { %v7643_v51 = vunpack.i.l.bf16 %v9267_v1  ;;  %1815 = vmatprep.subr.mxu1 %v1204_v22  ;;  %v7644_v4 = vunpack.i.h.bf16 %v9267_v1 }
 0x112   :  { %1816 = vmatpush1.msra.mxu1 %v1203_v33 }
 0x113   :  { %v9276_v57 = vpop.permute.xlu0 %7646  ;;  %6843 = vmatmul.mubr.msk.f32.vlgmr.msra.gmra.mrb[4].mxu1 %vm1440_vm8, %v8862_v12  ;;  %6981 = vmatprep.subr.bf16.mxu1 %v6980_v43  ;;  %v916_v62 = vsel %vm902_vm5, %v7609_v47, %v7643_v51  ;;  %v917_v38 = vsel %vm902_vm5, %v7643_v51, %v7644_v4 }
 0x114   :  { %v7648_v63 = vunpack.i.l.bf16 %v9276_v57  ;;  %v9281_v59 = vpop.permute.xlu1 %7651  ;;  %6983 = vmatpush1.bf16.msra.mxu1 %v6982_v42  ;;  %2005 = vmatprep.mubr.f32.mxu1 %v11702_v15  ;;  %v7649_v27 = vunpack.i.h.bf16 %v9276_v57 }
 0x115   :  { %v7653_v2 = vunpack.i.l.bf16 %v9281_v59  ;;  %v7654_v19 = vunpack.i.h.bf16 %v9281_v59 }
 0x116   :  { %v1061_v8 = vsel %vm1047_vm6, %v7614_v0, %v7648_v63  ;;  %v1062_v35 = vsel %vm1047_vm6, %v7648_v63, %v7649_v27 }
 0x117   :  { %v9290_v48 = vpop.permute.xlu0 %7656  ;;  %v6976_v44 = vpack.c.bf16 %v1061_v8, %v916_v62  ;;  %v443_v50 = vsel %vm427_vm2, %v7619_v34, %v7653_v2  ;;  %v6994_v42 = vpack.c.bf16 %v1062_v35, %v917_v38  ;;  %v444_v51 = vsel %vm427_vm2, %v7653_v2, %v7654_v19 }
 0x118   :  { %v7658_v53 = vunpack.i.l.bf16 %v9290_v48  ;;  %v9293_v52 = vpop.permute.xlu1 %7661  ;;  %v7659_v46 = vunpack.i.h.bf16 %v9290_v48 }
 0x119   :  { %v7663_v3 = vunpack.i.l.bf16 %v9293_v52  ;;  %6977 = vmatprep.subr.bf16.mxu0 %v6976_v44  ;;  %v7664_v43 = vunpack.i.h.bf16 %v9293_v52  ;;  %v650_v44 = vld [vmem:[#allocation4 + $0x90] sm:$0xff] }
 0x11a   :  { %6979 = vmatpush1.bf16.msra.mxu0 %v6978_v10  ;;  %v588_v13 = vsel %vm572_vm3, %v7624_v61, %v7658_v53  ;;  %v589_v32 = vsel %vm572_vm3, %v7658_v53, %v7659_v46  ;;  %v649_v53 = vld [vmem:[#allocation4 + $0x88] sm:$0xff] }
 0x11b   :  { %v9305_v21 = vpop.permute.xlu0 %7666  ;;  %v6984_v49 = vpack.c.bf16 %v588_v13, %v443_v50  ;;  %v773_v55 = vsel %vm757_vm4, %v7629_v45, %v7663_v3  ;;  %v774_v62 = vsel %vm757_vm4, %v7663_v3, %v7664_v43  ;;  %v7002_v10 = vpack.c.bf16 %v589_v32, %v444_v51 }
 0x11c   :  { %v7668_v24 = vunpack.i.l.bf16 %v9305_v21  ;;  %v9309_v28 = vpop.permute.xlu1 %7671  ;;  %v6988_v23 = vpack.c.bf16 %v773_v55, %v648_v40  ;;  %v7669_v2 = vunpack.i.h.bf16 %v9305_v21  ;;  %v7006_v40 = vpack.c.bf16 %v774_v62, %v649_v53 }
 0x11d   :  { %v7673_v14 = vunpack.i.l.bf16 %v9309_v28  ;;  %6985 = vmatprep.subr.bf16.mxu1 %v6984_v49  ;;  %v7674_v29 = vunpack.i.h.bf16 %v9309_v28 }
 0x11e   :  { %6987 = vmatpush1.bf16.msra.mxu1 %v6986_v20  ;;  %v155_v6 = vsel %vm137_vm0, %v7634_v41, %v7668_v24  ;;  %v156_v20 = vsel %vm137_vm0, %v7668_v24, %v7669_v2 }
 0x11f   :  { %v1177_v18 = vpop.permute.xlu0 %1176  ;;  %6989 = vmatprep.subr.bf16.mxu1 %v6988_v23  ;;  %v300_v31 = vsel %vm282_vm1, %v7639_v58, %v7673_v14  ;;  %v301_v16 = vsel %vm282_vm1, %v7673_v14, %v7674_v29 }
 0x120   :  { %v1179_v9 = vpop.permute.xlu1 %1178  ;;  %v1205_v5 = vsel %vm1192_vm7, %v9263_v56, %v1177_v18  ;;  %v6996_v7 = vpack.c.bf16 %v300_v31, %v155_v6  ;;  %v7014_v21 = vpack.c.bf16 %v301_v16, %v156_v20 }
 0x121   :  { %v1206_v39 = vsel %vm1192_vm7, %v1177_v18, %v1179_v9 }
 0x122   :  { %1886 = vmatprep.subr.mxu0 %v1206_v39  ;;  %6991 = vmatpush1.bf16.msra.mxu1 %v6990_v30 }
 0x123   :  { %1887 = vmatpush1.msra.mxu0 %v1205_v5  ;;  %v9328_v17 = vpop.permute.xlu0 %7676 }
 0x124   :  { %v7678_v47 = vunpack.i.l.bf16 %v9328_v17  ;;  %v9334_v0 = vpop.permute.xlu1 %7681  ;;  %6844 = vmatmul.mubr.msk.f32.vlgmr.msra.gmra.mrb[6].mxu0 %vm1440_vm8, %v8862_v12  ;;  %6997 = vmatprep.subr.bf16.mxu0 %v6996_v7  ;;  %v7679_v49 = vunpack.i.h.bf16 %v9328_v17 }
 0x125   :  { %v7683_v56 = vunpack.i.l.bf16 %v9334_v0  ;;  %6999 = vmatpush1.bf16.msra.mxu0 %v6998_v37  ;;  %2076 = vmatprep.mubr.f32.mxu0 %v11702_v15  ;;  %v7684_v55 = vunpack.i.h.bf16 %v9334_v0 }
 0x126   :  { %v918_v33 = vsel %vm902_vm5, %v7644_v4, %v7678_v47  ;;  %v919_v14 = vsel %vm902_vm5, %v7678_v47, %v7679_v49 }
 0x127   :  { %v9342_v1 = vpop.permute.xlu0 %7686  ;;  %v1063_v22 = vsel %vm1047_vm6, %v7649_v27, %v7683_v56  ;;  %v1064_v4 = vsel %vm1047_vm6, %v7683_v56, %v7684_v55 }
 0x128   :  { %v7688_v60 = vunpack.i.l.bf16 %v9342_v1  ;;  %v9350_v34 = vpop.permute.xlu1 %7691  ;;  %v6992_v61 = vpack.c.bf16 %v1063_v22, %v918_v33  ;;  %v7689_v24 = vunpack.i.h.bf16 %v9342_v1  ;;  %v7010_v17 = vpack.c.bf16 %v1064_v4, %v919_v14  ;;  %v651_v1 = vld [vmem:[#allocation4 + $0x98] sm:$0xff] }
 0x129   :  { %v7693_v57 = vunpack.i.l.bf16 %v9350_v34  ;;  %v7694_v28 = vunpack.i.h.bf16 %v9350_v34 }
 0x12a   :  { %6993 = vmatprep.subr.bf16.mxu1 %v6992_v61  ;;  %v445_v63 = vsel %vm427_vm2, %v7654_v19, %v7688_v60  ;;  %v446_v5 = vsel %vm427_vm2, %v7688_v60, %v7689_v24 }
 0x12b   :  { %v7697_v8 = vpop.permute.xlu0 %7696  ;;  %6995 = vmatpush1.bf16.msra.mxu1 %v6994_v42  ;;  %v590_v59 = vsel %vm572_vm3, %v7659_v46, %v7693_v57  ;;  %v591_v7 = vsel %vm572_vm3, %v7693_v57, %v7694_v28 }
 0x12c   :  { %v7698_v36 = vunpack.i.l.bf16 %v7697_v8  ;;  %v136_v45 = vpop.permute.xlu1 %135  ;;  %v7000_v48 = vpack.c.bf16 %v590_v59, %v445_v63  ;;  %v7699_v39 = vunpack.i.h.bf16 %v7697_v8  ;;  %v7018_v0 = vpack.c.bf16 %v591_v7, %v446_v5 }
 0x12d   :  { %v157_v41 = vsel %vm137_vm0, %v7669_v2, %v136_v45 }
 0x12e   :  { %7001 = vmatprep.subr.bf16.mxu0 %v7000_v48  ;;  %v775_v52 = vsel %vm757_vm4, %v7664_v43, %v7698_v36  ;;  %v776_v56 = vsel %vm757_vm4, %v7698_v36, %v7699_v39 }
 0x12f   :  { %v281_v50 = vpop.permute.xlu0 %280  ;;  %7003 = vmatpush1.bf16.msra.mxu0 %v7002_v10  ;;  %v7004_v3 = vpack.c.bf16 %v775_v52, %v650_v44  ;;  %v7022_v61 = vpack.c.bf16 %v776_v56, %v651_v1 }
 0x130   :  { %v302_v58 = vsel %vm282_vm1, %v7674_v29, %v281_v50  ;;  %v1181_v13 = vpop.permute.xlu1 %1180  ;;  %v2197_v50 = vlaneseq }
 0x131   :  { %7005 = vmatprep.subr.bf16.mxu0 %v7004_v3  ;;  %v7012_v54 = vpack.c.bf16 %v302_v58, %v157_v41  ;;  %v1207_v26 = vsel %vm1192_vm7, %v1179_v9, %v1181_v13  ;;  %v9413_v58 = vld [vmem:[%s11692_s1] sm:$0xff] }
 0x132   :  { %v9403_v3 = vshrl.u32 %v2197_v50, 7 }
 0x133   :  { %v1183_v23 = vpop.permute.xlu0 %1182  ;;  %7007 = vmatpush1.bf16.msra.mxu0 %v7006_v40 }
 0x134   :  { %v7702_v11 = vpop.permute.xlu1 %7701  ;;  %v1208_v30 = vsel %vm1192_vm7, %v1181_v13, %v1183_v23  ;;  %v9406_v40 = vsub.s32 2, %v9403_v3 }
 0x135   :  { %v7703_v6 = vunpack.i.l.bf16 %v7702_v11  ;;  %1957 = vmatprep.subr.mxu1 %v1208_v30  ;;  %v7704_v22 = vunpack.i.h.bf16 %v7702_v11  ;;  %v9433_v11 = vsub.s32 1, %v9403_v3 }
 0x136   :  { %1958 = vmatpush1.msra.mxu1 %v1207_v26  ;;  %v9420_v16 = vrot.slane %v9413_v58, %v9406_v40 }
 0x137   :  { %v7707_v18 = vpop.permute.xlu0 %7706  ;;  %6845 = vmatmul.mubr.msk.f32.vlgmr.msra.gmra.mrb[6].mxu1 %vm1440_vm8, %v8862_v12  ;;  %7013 = vmatprep.subr.bf16.mxu1 %v7012_v54  ;;  %v920_v9 = vsel %vm902_vm5, %v7679_v49, %v7703_v6  ;;  %v921_v63 = vsel %vm902_vm5, %v7703_v6, %v7704_v22  ;;  %v9449_v6 = vrot.slane %v9413_v58, %v9433_v11 }
 0x138   :  { %v7708_v31 = vunpack.i.l.bf16 %v7707_v18  ;;  %v426_v27 = vpop.permute.xlu1 %425  ;;  %7015 = vmatpush1.bf16.msra.mxu1 %v7014_v21  ;;  %2147 = vmatprep.mubr.f32.mxu1 %v11702_v15  ;;  %v7709_v42 = vunpack.i.h.bf16 %v7707_v18 }
 0x139   :  { %v447_v37 = vsel %vm427_vm2, %v7689_v24, %v426_v27  ;;  %v9465_v27 = vsub.s32 3, %v9403_v3 }
 0x13a   :  { %v1065_v38 = vsel %vm1047_vm6, %v7684_v55, %v7708_v31  ;;  %v1066_v62 = vsel %vm1047_vm6, %v7708_v31, %v7709_v42 }
 0x13b   :  { %v571_v35 = vpop.permute.xlu0 %570  ;;  %v7008_v19 = vpack.c.bf16 %v1065_v38, %v920_v9  ;;  %v7026_v2 = vpack.c.bf16 %v1066_v62, %v921_v63 }
 0x13c   :  { %v592_v46 = vsel %vm572_vm3, %v7694_v28, %v571_v35  ;;  %v756_v47 = vpop.permute.xlu1 %755 }
 0x13d   :  { %v7016_v33 = vpack.c.bf16 %v592_v46, %v447_v37  ;;  %v777_v43 = vsel %vm757_vm4, %v7699_v39, %v756_v47  ;;  %7009 = vmatprep.subr.bf16.mxu0 %v7008_v19  ;;  %v9476_v39 = vrot.slane %v9413_v58, %v9465_v27 }
 0x13e   :  { %v7020_v51 = vpack.c.bf16 %v777_v43, %v8844_v25  ;;  %7011 = vmatpush1.bf16.msra.mxu0 %v7010_v17  ;;  %v2215_v17 = vsub.s32 4, %v9403_v3  ;;  %v2219_v43 = vsub.s32 5, %v9403_v3 }
 0x13f   :  { %v1185_v32 = vpop.permute.xlu0 %1184  ;;  %7017 = vmatprep.subr.bf16.mxu1 %v7016_v33 }
 0x140   :  { %v1187_v60 = vpop.permute.xlu1 %1186  ;;  %7019 = vmatpush1.bf16.msra.mxu1 %v7018_v0  ;;  %v1209_v34 = vsel %vm1192_vm7, %v1183_v23, %v1185_v32  ;;  %v9427_v23 = vsub.s32 0, %v9403_v3  ;;  %v9494_v47 = vrot.slane %v9413_v58, %v2215_v17 }
 0x141   :  { %v1210_v57 = vsel %vm1192_vm7, %v1185_v32, %v1187_v60  ;;  %7021 = vmatprep.subr.bf16.mxu1 %v7020_v51  ;;  %v9517_v32 = vrot.slane %v9413_v58, %v2219_v43 }
 0x142   :  { %2028 = vmatprep.subr.mxu0 %v1210_v57  ;;  %v9445_v28 = vrot.slane %v9413_v58, %v9427_v23 }
 0x143   :  { %2029 = vmatpush1.msra.mxu0 %v1209_v34  ;;  %v901_v8 = vpop.permute.xlu0 %900  ;;  %11781 = vst [vmem:[#allocation16_spill] sm:$0xff] %v9517_v32  ;;  %v2223_v34 = vsub.s32 6, %v9403_v3 }
 0x144   :  { %v922_v25 = vsel %vm902_vm5, %v7704_v22, %v901_v8  ;;  %v1046_v59 = vpop.permute.xlu1 %1045  ;;  %6846 = vmatmul.mubr.msk.f32.vlgmr.msra.gmra.mrb[8].mxu0 %vm1440_vm8, %v8862_v12  ;;  %7023 = vmatpush1.bf16.msra.mxu1 %v7022_v61  ;;  %v8414_v12 = vld [vmem:[%s11693_s2] sm:$0xff] }
 0x145   :  { %v1067_v10 = vsel %vm1047_vm6, %v7709_v42, %v1046_v59  ;;  %3783 = vmatprep.mubr.f32.mxu0 %v11702_v15  ;;  %v9532_v63 = vrot.slane %v9413_v58, %v2223_v34  ;;  %v2227_v59 = vsub.s32 7, %v9403_v3 }
 0x146   :  { %v7024_v29 = vpack.c.bf16 %v1067_v10, %v922_v25 }
 0x147   :  { %v1189_v36 = vpop.permute.xlu0 %1188  ;;  %11783 = vst [vmem:[#allocation18_spill] sm:$0xff] %v9532_v63 }
 0x148   :  { %7025 = vmatprep.subr.bf16.mxu1 %v7024_v29  ;;  %v1191_v45 = vpop.permute.xlu1 %1190  ;;  %v1211_v44 = vsel %vm1192_vm7, %v1187_v60, %v1189_v36 }
 0x149   :  { %7027 = vmatpush1.bf16.msra.mxu1 %v7026_v2  ;;  %v1212_v48 = vsel %vm1192_vm7, %v1189_v36, %v1191_v45  ;;  %v9558_v45 = vrot.slane %v9413_v58, %v2227_v59 }
 0x14a   :  { %2099 = vmatprep.subr.mxu1 %v1212_v48 }
 0x14b   :  { %11785 = vst [vmem:[#allocation20_spill] sm:$0xff] %v9558_v45 }
 0x14d   :  { %2100 = vmatpush1.msra.mxu1 %v1211_v44 }
 0x14e   :  { %6847 = vmatmul.mubr.msk.f32.vlgmr.msra.gmra.mrb[8].mxu1 %vm1440_vm8, %v8414_v12 }
 0x14f   :  { %3854 = vmatprep.mubr.f32.mxu1 %v11702_v15 }
 0x158   :  { %v9408_v41 = vpop.permute.xlu0 %1437 }
 0x18a   :  { %v1510_v53 = vpop.f32.mrb[0].mxu0 }
 0x18b   :  { %v1512_v52 = vpop.f32.mrb[1].mxu0  ;;  %v9438_v21 = vadd.f32 %v1510_v53, %v9408_v41  ;;  %v9576_v53 = vld [vmem:[%s11692_s1 + $0x8] sm:$0xff] }
 0x18c   :  { %v9430_v26 = vadd.f32 %v1512_v52, %v9408_v41  ;;  %v9583_v50 = vrot.slane %v9576_v53, %v9427_v23 }
 0x18d   :  { %11777 = vst [vmem:[#allocation12_spill] sm:$0xff] %v9438_v21  ;;  %v2174_v14 = vmax.f32 %v9438_v21, 0.0 }
 0x18e   :  { %11776 = vst [vmem:[#allocation11_spill] sm:$0xff] %v9430_v26  ;;  %v2175_v24 = vmax.f32 %v9430_v26, 0.0  ;;  %11787 = vst [vmem:[#allocation22_spill] sm:$0xff] %v9583_v50 }
 0x18f   :  { %v9458_v18 = vmul.f32 %v9445_v28, %v2174_v14 }
 0x190   :  { %v9455_v4 = vmul.f32 %v9449_v6, %v2175_v24 }
 0x192   :  { %v7741_v7 = vpack.i.bf16 %v9455_v4, %v9458_v18 }
 0x19e   :  { %v1581_v13 = vpop.f32.mrb[0].mxu1 }
 0x19f   :  { %v9416_v20 = vadd.f32 %v1581_v13, %v9408_v41  ;;  %v1583_v49 = vpop.f32.mrb[1].mxu1 }
 0x1a0   :  { %v9468_v5 = vadd.f32 %v1583_v49, %v9408_v41 }
 0x1a1   :  { %11775 = vst [vmem:[#allocation10_spill] sm:$0xff] %v9416_v20  ;;  %v2176_v55 = vmax.f32 %v9416_v20, 0.0 }
 0x1a2   :  { %11778 = vst [vmem:[#allocation13_spill] sm:$0xff] %v9468_v5  ;;  %v2177_v37 = vmax.f32 %v9468_v5, 0.0 }
 0x1a3   :  { %v9424_v54 = vmul.f32 %v9420_v16, %v2176_v55 }
 0x1a4   :  { %v9488_v19 = vmul.f32 %v9476_v39, %v2177_v37 }
 0x1a5   :  { %v7716_v30 = vpack.i.bf16 %v9424_v54, %v11702_v15  ;;  %v7751_v35 = vpack.i.bf16 %v9424_v54, %v9455_v4  ;;  %v9721_v15 = vrot.slane %v9576_v53, %v2227_v59 }
 0x1a6   :  { %v7771_v56 = vpack.i.bf16 %v9488_v19, %v9458_v18 }
 0x1a7   :  { %7717 = vrot.lane.b32.xlu1 %v7716_v30, %s8467_s0  ;;  %7712 = vrot.lane.b32.xlu0 %v7716_v30, %s8466_s25  ;;  %11801 = vst [vmem:[#allocation36_spill] sm:$0xff] %v9721_v15 }
 0x1ab   :  { %7727 = vrot.lane.b32.xlu1 %v7716_v30, %s8469_s27  ;;  %7722 = vrot.lane.b32.xlu0 %v7716_v30, %s8468_s26 }
 0x1af   :  { %v1652_v31 = vpop.f32.mrb[2].mxu0  ;;  %3431 = vrot.lane.b32.xlu0 %v9424_v54, %s8474_s11  ;;  %3427 = vrot.lane.b32.xlu1 %v9458_v18, %s8474_s11 }
 0x1b0   :  { %v1654_v9 = vpop.f32.mrb[3].mxu0  ;;  %v9480_v38 = vadd.f32 %v1652_v31, %v9408_v41  ;;  %v9606_v31 = vrot.slane %v9576_v53, %v9406_v40 }
 0x1b1   :  { %v9506_v33 = vadd.f32 %v1654_v9, %v9408_v41 }
 0x1b2   :  { %11779 = vst [vmem:[#allocation14_spill] sm:$0xff] %v9480_v38  ;;  %v2178_v46 = vmax.f32 %v9480_v38, 0.0  ;;  %11790 = vst [vmem:[#allocation25_spill] sm:$0xff] %v9606_v31 }
 0x1b3   :  { %7742 = vrot.lane.b32.xlu0 %v7741_v7, %s8468_s26  ;;  %7732 = vrot.lane.b32.xlu1 %v7741_v7, %s8466_s25  ;;  %11780 = vst [vmem:[#allocation15_spill] sm:$0xff] %v9506_v33  ;;  %v2179_v51 = vmax.f32 %v9506_v33, 0.0 }
 0x1b4   :  { %v9499_v0 = vmul.f32 %v9494_v47, %v2178_v46 }
 0x1b5   :  { %v9526_v61 = vmul.f32 %v9517_v32, %v2179_v51  ;;  %v9635_v51 = vrot.slane %v9576_v53, %v9465_v27 }
 0x1b6   :  { %v7786_v1 = vpack.i.bf16 %v9499_v0, %v9488_v19 }
 0x1b7   :  { %7752 = vrot.lane.b32.xlu0 %v7751_v35, %s8470_s28  ;;  %7737 = vrot.lane.b32.xlu1 %v7741_v7, %s8467_s0  ;;  %v7801_v8 = vpack.i.bf16 %v9526_v61, %v9499_v0  ;;  %11793 = vst [vmem:[#allocation28_spill] sm:$0xff] %v9635_v51 }
 0x1bb   :  { %7762 = vrot.lane.b32.xlu0 %v7751_v35, %s8471_s29  ;;  %7747 = vrot.lane.b32.xlu1 %v7741_v7, %s8469_s27  ;;  %v9611_v7 = vrot.slane %v9576_v53, %v9433_v11 }
 0x1bd   :  { %11791 = vst [vmem:[#allocation26_spill] sm:$0xff] %v9611_v7 }
 0x1bf   :  { %7772 = vrot.lane.b32.xlu0 %v7771_v56, %s8471_s29  ;;  %7757 = vrot.lane.b32.xlu1 %v7771_v56, %s8470_s28 }
 0x1c2   :  { %v1723_v22 = vpop.f32.mrb[2].mxu1 }
 0x1c3   :  { %v1725_v42 = vpop.f32.mrb[3].mxu1  ;;  %7787 = vrot.lane.b32.xlu0 %v7786_v1, %s8467_s0  ;;  %7767 = vrot.lane.b32.xlu1 %v7751_v35, %s8472_s30  ;;  %v9520_v60 = vadd.f32 %v1723_v22, %v9408_v41 }
 0x1c4   :  { %v9547_v25 = vadd.f32 %v1725_v42, %v9408_v41 }
 0x1c5   :  { %11782 = vst [vmem:[#allocation17_spill] sm:$0xff] %v9520_v60  ;;  %v2180_v57 = vmax.f32 %v9520_v60, 0.0 }
 0x1c6   :  { %11784 = vst [vmem:[#allocation19_spill] sm:$0xff] %v9547_v25  ;;  %v2181_v36 = vmax.f32 %v9547_v25, 0.0 }
 0x1c7   :  { %7792 = vrot.lane.b32.xlu0 %v7786_v1, %s8468_s26  ;;  %7777 = vrot.lane.b32.xlu1 %v7771_v56, %s8472_s30  ;;  %v9539_v62 = vmul.f32 %v9532_v63, %v2180_v57 }
 0x1c8   :  { %v9563_v48 = vmul.f32 %v9558_v45, %v2181_v36  ;;  %v9658_v36 = vrot.slane %v9576_v53, %v2215_v17 }
 0x1c9   :  { %v7811_v10 = vpack.i.bf16 %v9539_v62, %v9526_v61 }
 0x1ca   :  { %v7836_v12 = vpack.i.bf16 %v9563_v48, %v9539_v62  ;;  %11795 = vst [vmem:[#allocation30_spill] sm:$0xff] %v9658_v36 }
 0x1cb   :  { %3435 = vrot.lane.b32.xlu0 %v9499_v0, %s8474_s11  ;;  %3429 = vrot.lane.b32.xlu1 %v9455_v4, %s8474_s11 }
 0x1cf   :  { %7802 = vrot.lane.b32.xlu0 %v7801_v8, %s8470_s28  ;;  %3433 = vrot.lane.b32.xlu1 %v9488_v19, %s8474_s11 }
 0x1d3   :  { %v1794_v2 = vpop.f32.mrb[4].mxu0  ;;  %7812 = vrot.lane.b32.xlu0 %v7811_v10, %s8467_s0  ;;  %7782 = vrot.lane.b32.xlu1 %v7786_v1, %s8466_s25 }
 0x1d4   :  { %v1796_v29 = vpop.f32.mrb[5].mxu0  ;;  %v9569_v44 = vadd.f32 %v1794_v2, %v9408_v41 }
 0x1d5   :  { %v9599_v24 = vadd.f32 %v1796_v29, %v9408_v41 }
 0x1d6   :  { %11786 = vst [vmem:[#allocation21_spill] sm:$0xff] %v9569_v44  ;;  %v2182_v52 = vmax.f32 %v9569_v44, 0.0 }
 0x1d7   :  { %7817 = vrot.lane.b32.xlu0 %v7801_v8, %s8471_s29  ;;  %7797 = vrot.lane.b32.xlu1 %v7786_v1, %s8469_s27  ;;  %11789 = vst [vmem:[#allocation24_spill] sm:$0xff] %v9599_v24  ;;  %v2183_v9 = vmax.f32 %v9599_v24, 0.0 }
 0x1d8   :  { %v9588_v58 = vmul.f32 %v9583_v50, %v2182_v52 }
 0x1d9   :  { %v9620_v35 = vmul.f32 %v9611_v7, %v2183_v9  ;;  %v9682_v9 = vrot.slane %v9576_v53, %v2223_v34 }
 0x1da   :  { %v7856_v30 = vpack.i.bf16 %v9588_v58, %v9563_v48 }
 0x1db   :  { %7827 = vrot.lane.b32.xlu0 %v7811_v10, %s8468_s26  ;;  %3439 = vrot.lane.b32.xlu1 %v9539_v62, %s8474_s11  ;;  %v7886_v57 = vpack.i.bf16 %v9620_v35, %v9588_v58  ;;  %11798 = vst [vmem:[#allocation33_spill] sm:$0xff] %v9682_v9 }
 0x1df   :  { %7837 = vrot.lane.b32.xlu0 %v7836_v12, %s8470_s28  ;;  %7807 = vrot.lane.b32.xlu1 %v7811_v10, %s8466_s25 }
 0x1e3   :  { %7847 = vrot.lane.b32.xlu0 %v7836_v12, %s8472_s30  ;;  %7822 = vrot.lane.b32.xlu1 %v7801_v8, %s8472_s30 }
 0x1e6   :  { %v1865_v13 = vpop.f32.mrb[4].mxu1 }
 0x1e7   :  { %v1867_v49 = vpop.f32.mrb[5].mxu1  ;;  %3437 = vrot.lane.b32.xlu0 %v9526_v61, %s8474_s11  ;;  %7832 = vrot.lane.b32.xlu1 %v7811_v10, %s8469_s27  ;;  %v9594_v55 = vadd.f32 %v1865_v13, %v9408_v41 }
 0x1e8   :  { %v9626_v46 = vadd.f32 %v1867_v49, %v9408_v41 }
 0x1e9   :  { %11788 = vst [vmem:[#allocation23_spill] sm:$0xff] %v9594_v55  ;;  %v2184_v14 = vmax.f32 %v9594_v55, 0.0 }
 0x1ea   :  { %11792 = vst [vmem:[#allocation27_spill] sm:$0xff] %v9626_v46  ;;  %v2185_v42 = vmax.f32 %v9626_v46, 0.0  ;;  %v9749_v46 = vld [vmem:[%s11692_s1 + $0x10] sm:$0xf] }
 0x1eb   :  { %7857 = vrot.lane.b32.xlu0 %v7856_v30, %s8467_s0  ;;  %7842 = vrot.lane.b32.xlu1 %v7836_v12, %s8471_s29  ;;  %v9617_v37 = vmul.f32 %v9606_v31, %v2184_v14 }
 0x1ec   :  { %v9643_v8 = vmul.f32 %v9635_v51, %v2185_v42 }
 0x1ed   :  { %v7876_v56 = vpack.i.bf16 %v9617_v37, %v9620_v35 }
 0x1ee   :  { %v7906_v2 = vpack.i.bf16 %v9643_v8, %v9617_v37 }
 0x1ef   :  { %7867 = vrot.lane.b32.xlu0 %v7856_v30, %s8469_s27  ;;  %3441 = vrot.lane.b32.xlu1 %v9563_v48, %s8474_s11 }
 0x1f3   :  { %3443 = vrot.lane.b32.xlu0 %v9588_v58, %s8474_s11  ;;  %7852 = vrot.lane.b32.xlu1 %v7856_v30, %s8466_s25 }
 0x1f7   :  { %v1936_v1 = vpop.f32.mrb[6].mxu0  ;;  %7877 = vrot.lane.b32.xlu0 %v7876_v56, %s8466_s25  ;;  %7862 = vrot.lane.b32.xlu1 %v7856_v30, %s8468_s26 }
 0x1f8   :  { %v1938_v22 = vpop.f32.mrb[7].mxu0  ;;  %v9648_v10 = vadd.f32 %v1936_v1, %v9408_v41  ;;  %v9688_v1 = vrot.slane %v9576_v53, %v2219_v43 }
 0x1f9   :  { %v9674_v30 = vadd.f32 %v1938_v22, %v9408_v41  ;;  %v9693_v22 = vpop.permute.xlu1 %3035 }
 0x1fa   :  { %11794 = vst [vmem:[#allocation29_spill] sm:$0xff] %v9648_v10  ;;  %v2186_v29 = vmax.f32 %v9648_v10, 0.0  ;;  %11799 = vst [vmem:[#allocation34_spill] sm:$0xff] %v9688_v1 }
 0x1fb   :  { %7887 = vrot.lane.b32.xlu0 %v7886_v57, %s8471_s29  ;;  %3447 = vrot.lane.b32.xlu1 %v9617_v37, %s8474_s11  ;;  %11797 = vst [vmem:[#allocation32_spill] sm:$0xff] %v9674_v30 }
 0x1fc   :  { %v9663_v12 = vmul.f32 %v9658_v36, %v2186_v29 }
 0x1fe   :  { %v7926_v17 = vpack.i.bf16 %v9663_v12, %v9643_v8 }
 0x1ff   :  { %7897 = vrot.lane.b32.xlu0 %v7876_v56, %s8468_s26  ;;  %7872 = vrot.lane.b32.xlu1 %v7886_v57, %s8470_s28 }
 0x203   :  { %7907 = vrot.lane.b32.xlu0 %v7906_v2, %s8470_s28  ;;  %7882 = vrot.lane.b32.xlu1 %v7876_v56, %s8467_s0 }
 0x207   :  { %7917 = vrot.lane.b32.xlu0 %v7906_v2, %s8472_s30  ;;  %7892 = vrot.lane.b32.xlu1 %v7886_v57, %s8472_s30 }
 0x20a   :  { %v2007_v52 = vpop.f32.mrb[6].mxu1 }
 0x20b   :  { %v2009_v13 = vpop.f32.mrb[7].mxu1  ;;  %3445 = vrot.lane.b32.xlu0 %v9620_v35, %s8474_s11  ;;  %7902 = vrot.lane.b32.xlu1 %v7876_v56, %s8469_s27  ;;  %v9669_v49 = vadd.f32 %v2007_v52, %v9408_v41  ;;  %v2187_v56 = vmax.f32 %v9674_v30, 0.0 }
 0x20d   :  { %11796 = vst [vmem:[#allocation31_spill] sm:$0xff] %v9669_v49  ;;  %v2188_v14 = vmax.f32 %v9669_v49, 0.0  ;;  %v9699_v34 = vmul.f32 %v9688_v1, %v2187_v56 }
 0x20f   :  { %7927 = vrot.lane.b32.xlu0 %v7926_v17, %s8467_s0  ;;  %7912 = vrot.lane.b32.xlu1 %v7906_v2, %s8471_s29  ;;  %v9696_v42 = vmul.f32 %v9682_v9, %v2188_v14  ;;  %v9707_v2 = vadd.f32 %v2009_v13, %v9408_v41  ;;  %v7956_v30 = vpack.i.bf16 %v9699_v34, %v9663_v12 }
 0x211   :  { %11800 = vst [vmem:[#allocation35_spill] sm:$0xff] %v9707_v2  ;;  %v7946_v14 = vpack.i.bf16 %v9696_v42, %v9699_v34  ;;  %v2189_v56 = vmax.f32 %v9707_v2, 0.0 }
 0x213   :  { %7937 = vrot.lane.b32.xlu0 %v7926_v17, %s8469_s27  ;;  %3449 = vrot.lane.b32.xlu1 %v9643_v8, %s8474_s11 }
 0x217   :  { %v2078_v57 = vpop.f32.mrb[8].mxu0  ;;  %3451 = vrot.lane.b32.xlu0 %v9663_v12, %s8474_s11  ;;  %7922 = vrot.lane.b32.xlu1 %v7926_v17, %s8466_s25 }
 0x218   :  { %v9704_v43 = vpop.f32.mrb[9].mxu0  ;;  %v9742_v10 = vadd.f32 %v2078_v57, %v9408_v41  ;;  %v9760_v57 = vrot.slane %v9749_v46, %v9427_v23 }
 0x219   :  { %v9709_v29 = vpop.permute.xlu1 %7717  ;;  %v9711_v52 = vpop.permute.xlu0 %7712 }
 0x21a   :  { %11802 = vst [vmem:[#allocation37_spill] sm:$0xff] %v9742_v10  ;;  %v2190_v44 = vmax.f32 %v9742_v10, 0.0  ;;  %11803 = vst [vmem:[#allocation38_spill] sm:$0xff] %v9760_v57  ;;  %v7714_v38 = vunpack.i.l.bf16 %v9711_v52  ;;  %v7719_v23 = vunpack.i.l.bf16 %v9709_v29 }
 0x21b   :  { %7947 = vrot.lane.b32.xlu0 %v7946_v14, %s8466_s25  ;;  %7932 = vrot.lane.b32.xlu1 %v7926_v17, %s8468_s26  ;;  %v9733_v17 = vmul.f32 %v9721_v15, %v2189_v56 }
 0x21c   :  { %v9772_v10 = vmul.f32 %v9760_v57, %v2190_v44 }
 0x21d   :  { %v9723_v13 = vpop.permute.xlu1 %7727  ;;  %v9725_v49 = vpop.permute.xlu0 %7722  ;;  %v7976_v55 = vpack.i.bf16 %v9733_v17, %v9696_v42 }
 0x21e   :  { %v7724_v51 = vunpack.i.l.bf16 %v9725_v49 }
 0x21f   :  { %7957 = vrot.lane.b32.xlu0 %v7956_v30, %s8471_s29  ;;  %3455 = vrot.lane.b32.xlu1 %v9696_v42, %s8474_s11 }
 0x221   :  { %v2149_v2 = vpop.f32.mrb[8].mxu1  ;;  %v9735_v3 = vpop.permute.xlu0 %3431 }
 0x222   :  { %v9737_v59 = vpop.f32.mrb[9].mxu1  ;;  %v9739_v53 = vpop.permute.xlu1 %3427 }
 0x223   :  { %7967 = vrot.lane.b32.xlu0 %v7946_v14, %s8468_s26  ;;  %7942 = vrot.lane.b32.xlu1 %v7956_v30, %s8470_s28 }
 0x225   :  { %v9751_v56 = vpop.permute.xlu0 %7742 }
 0x226   :  { %v9755_v24 = vpop.permute.xlu1 %7732  ;;  %v7744_v21 = vunpack.i.l.bf16 %v9751_v56 }
 0x227   :  { %7977 = vrot.lane.b32.xlu0 %v7976_v55, %s8470_s28  ;;  %7952 = vrot.lane.b32.xlu1 %v7946_v14, %s8467_s0  ;;  %v7734_v60 = vunpack.i.l.bf16 %v9755_v24  ;;  %v11804_v9 = vunpack.i.h.bf16 %v9755_v24 }
 0x229   :  { %v9766_v33 = vpop.permute.xlu0 %7752  ;;  %v2421_v15 = vsel %vm137_vm0, %v7714_v38, %v7734_v60  ;;  %v2422_v44 = vsel %vm137_vm0, %v7734_v60, %v11804_v9  ;;  %v7729_v60 = vunpack.i.l.bf16 %v9723_v13 }
 0x22a   :  { %v9769_v5 = vpop.permute.xlu1 %7737  ;;  %v7754_v20 = vunpack.i.l.bf16 %v9766_v33 }
 0x22b   :  { %v7739_v26 = vunpack.i.l.bf16 %v9769_v5  ;;  %7987 = vrot.lane.b32.xlu0 %v7976_v55, %s8472_s30  ;;  %7962 = vrot.lane.b32.xlu1 %v7956_v30, %s8472_s30  ;;  %v11805_v30 = vunpack.i.h.bf16 %v9769_v5 }
 0x22d   :  { %v2565_v1 = vsel %vm282_vm1, %v7719_v23, %v7739_v26  ;;  %v9788_v36 = vpop.permute.xlu0 %7762  ;;  %v2566_v25 = vsel %vm282_vm1, %v7739_v26, %v11805_v30  ;;  %v9803_v23 = vadd.f32 %v2149_v2, %v9408_v41  ;;  %v2709_v26 = vsel %vm427_vm2, %v7724_v51, %v7744_v21 }
 0x22e   :  { %v9794_v31 = vpop.permute.xlu1 %7747  ;;  %v7028_v38 = vpack.c.bf16 %v2566_v25, %v2422_v44  ;;  %v7030_v7 = vpack.c.bf16 %v2565_v1, %v2421_v15  ;;  %v7996_v15 = vpack.i.bf16 %v9772_v10, %v9733_v17  ;;  %v11807_v44 = vunpack.i.h.bf16 %v9751_v56 }
 0x22f   :  { %v11743_v9 = vunpack.i.h.bf16 %v9794_v31  ;;  %v7749_v57 = vunpack.i.l.bf16 %v9794_v31  ;;  %3453 = vrot.lane.b32.xlu0 %v9699_v34, %s8474_s11  ;;  %7972 = vrot.lane.b32.xlu1 %v7946_v14, %s8469_s27  ;;  %11806 = vst [vmem:[#allocation39_spill] sm:$0xff] %v9803_v23  ;;  %v11808_v14 = vunpack.i.h.bf16 %v9766_v33 }
 0x230   :  { %7029 = vmatprep.subr.bf16.mxu0 %v7028_v38  ;;  %v2710_v30 = vsel %vm427_vm2, %v7744_v21, %v11807_v44  ;;  %v9831_v21 = vrot.slane %v9749_v46, %v9406_v40  ;;  %v2192_v44 = vmax.f32 %v9803_v23, 0.0 }
 0x231   :  { %v2853_v25 = vsel %vm572_vm3, %v7729_v60, %v7749_v57  ;;  %7031 = vmatpush1.bf16.msra.mxu0 %v7030_v7  ;;  %v9809_v1 = vpop.permute.xlu0 %7772  ;;  %v2854_v2 = vsel %vm572_vm3, %v7749_v57, %v11743_v9  ;;  %v3038_v51 = vsel %vm757_vm4, %v7754_v20, %v11808_v14  ;;  %v9824_v7 = vadd.f32 %v9704_v43, %v9408_v41 }
 0x232   :  { %v9820_v38 = vpop.permute.xlu1 %7757  ;;  %v7032_v50 = vpack.c.bf16 %v2854_v2, %v2710_v30  ;;  %v7034_v45 = vpack.c.bf16 %v2853_v25, %v2709_v26  ;;  %11810 = vst [vmem:[#allocation41_spill] sm:$0xff] %v9831_v21  ;;  %v7036_v57 = vpack.c.bf16 %v3038_v51, %v9455_v4  ;;  %v11741_v26 = vunpack.i.h.bf16 %v9788_v36 }
 0x233   :  { %11809 = vst [vmem:[#allocation40_spill] sm:$0xff] %v9824_v7  ;;  %v7759_v60 = vunpack.i.l.bf16 %v9820_v38  ;;  %7997 = vrot.lane.b32.xlu0 %v7996_v15, %s8467_s0  ;;  %7982 = vrot.lane.b32.xlu1 %v7976_v55, %s8471_s29  ;;  %v7764_v43 = vunpack.i.l.bf16 %v9788_v36  ;;  %v9846_v4 = vrot.slane %v9749_v46, %v9433_v11 }
 0x234   :  { %7033 = vmatprep.subr.bf16.mxu0 %v7032_v50  ;;  %v2191_v50 = vmax.f32 %v9824_v7, 0.0 }
 0x235   :  { %v3037_v25 = vsel %vm757_vm4, %v7759_v60, %v7754_v20  ;;  %7035 = vmatpush1.bf16.msra.mxu0 %v7034_v45  ;;  %v9838_v30 = vpop.permute.xlu0 %7787  ;;  %11811 = vst [vmem:[#allocation42_spill] sm:$0xff] %v9846_v4  ;;  %v9854_v20 = vmul.f32 %v9831_v21, %v2192_v44  ;;  %v3182_v11 = vsel %vm902_vm5, %v7764_v43, %v11741_v26  ;;  %v7730_v21 = vunpack.i.h.bf16 %v9723_v13 }
 0x236   :  { %v9840_v2 = vpop.permute.xlu1 %7767  ;;  %7037 = vmatprep.subr.bf16.mxu0 %v7036_v57  ;;  %v7038_v40 = vpack.c.bf16 %v3037_v25, %v9458_v18  ;;  %v7774_v18 = vunpack.i.l.bf16 %v9809_v1  ;;  %v9868_v25 = vmul.f32 %v9846_v4, %v2191_v50  ;;  %v11816_v7 = vunpack.i.l.bf16 %v9838_v30 }
 0x237   :  { %v11742_v55 = vunpack.i.h.bf16 %v9840_v2  ;;  %v7769_v14 = vunpack.i.l.bf16 %v9840_v2  ;;  %8007 = vrot.lane.b32.xlu0 %v7996_v15, %s8469_s27  ;;  %3457 = vrot.lane.b32.xlu1 %v9733_v17, %s8474_s11  ;;  %v11818_v13 = vunpack.i.h.bf16 %v9794_v31  ;;  %v11821_v31 = vunpack.i.h.bf16 %v9751_v56 }
 0x238   :  { %v3181_v26 = vsel %vm902_vm5, %v7774_v18, %v7764_v43  ;;  %v8016_v50 = vpack.i.bf16 %v9854_v20, %v9868_v25  ;;  %v9891_v43 = vrot.slane %v9749_v46, %v9465_v27 }
 0x239   :  { %7039 = vmatpush1.bf16.msra.mxu0 %v7038_v40  ;;  %v9857_v45 = vpop.permute.xlu0 %7792  ;;  %v3326_v51 = vsel %vm1047_vm6, %v7769_v14, %v11742_v55  ;;  %v9876_v40 = vadd.f32 %v9737_v59, %v9408_v41 }
 0x23a   :  { %v9865_v60 = vpop.permute.xlu1 %7777  ;;  %v7040_v57 = vpack.c.bf16 %v3326_v51, %v3182_v11  ;;  %11813 = vst [vmem:[#allocation44_spill] sm:$0xff] %v9891_v43 }
 0x23b   :  { %v7779_v44 = vunpack.i.l.bf16 %v9865_v60  ;;  %3459 = vrot.lane.b32.xlu0 %v9772_v10, %s8474_s11  ;;  %7992 = vrot.lane.b32.xlu1 %v7996_v15, %s8466_s25  ;;  %11812 = vst [vmem:[#allocation43_spill] sm:$0xff] %v9876_v40  ;;  %v2193_v59 = vmax.f32 %v9876_v40, 0.0  ;;  %v7715_v40 = vunpack.i.h.bf16 %v9711_v52 }
 0x23c   :  { %7041 = vmatprep.subr.bf16.mxu0 %v7040_v57  ;;  %v7720_v57 = vunpack.i.h.bf16 %v9709_v29  ;;  %v7760_v29 = vunpack.i.h.bf16 %v9820_v38 }
 0x23d   :  { %v3325_v55 = vsel %vm1047_vm6, %v7779_v44, %v7769_v14  ;;  %v9880_v11 = vpop.permute.xlu0 %3435  ;;  %v9909_v46 = vmul.f32 %v9891_v43, %v2193_v59 }
 0x23e   :  { %v3430_v51 = vpop.permute.xlu1 %3429  ;;  %v7042_v9 = vpack.c.bf16 %v3325_v55, %v3181_v26  ;;  %v8026_v26 = vpack.i.bf16 %v9868_v25, %v9772_v10  ;;  %v2568_v43 = vsel %vm282_vm1, %v7720_v57, %v11816_v7 }
 0x23f   :  { %8017 = vrot.lane.b32.xlu0 %v8016_v50, %s8466_s25  ;;  %8002 = vrot.lane.b32.xlu1 %v7996_v15, %s8468_s26  ;;  %v3470_v41 = vsel %vm1192_vm7, %v3430_v51, %v9735_v3  ;;  %v9902_v15 = vld [vmem:[%s11695_s4] sm:$0xff]  ;;  %v3469_v27 = vsel %vm1192_vm7, %v9739_v53, %v3430_v51  ;;  %v11815_v53 = vunpack.i.h.bf16 %v9769_v5  ;;  %v8046_v59 = vpack.i.bf16 %v9909_v46, %v9854_v20 }
 0x240   :  { %7043 = vmatpush1.bf16.msra.mxu0 %v7042_v9  ;;  %v11817_v5 = vunpack.i.h.bf16 %v9755_v24  ;;  %v2855_v24 = vsel %vm572_vm3, %v11818_v13, %v7730_v21 }
 0x241   :  { %3735 = vmatprep.subr.mxu0 %v3470_v41  ;;  %v9893_v14 = vpop.permute.xlu0 %7802  ;;  %v11814_v41 = vmov 0.0   ;;  %v2567_v51 = vsel %vm282_vm1, %v11815_v53, %v7720_v57 }
 0x242   :  { %v9897_v55 = vpop.permute.xlu1 %3433  ;;  %v2423_v53 = vsel %vm137_vm0, %v11817_v5, %v7715_v40  ;;  %v11820_v57 = vunpack.i.l.bf16 %v9893_v14 }
 0x243   :  { %8027 = vrot.lane.b32.xlu0 %v8026_v26, %s8471_s29  ;;  %8012 = vrot.lane.b32.xlu1 %v8026_v26, %s8470_s28  ;;  %v7046_v7 = vpack.c.bf16 %v2567_v51, %v2423_v53  ;;  %v11822_v53 = vunpack.i.h.bf16 %v9766_v33 }
 0x244   :  { %3736 = vmatpush1.msra.mxu0 %v3469_v27  ;;  %v7725_v27 = vunpack.i.h.bf16 %v9725_v49 }
 0x245   :  { %6848 = vmatmul.mubr.msk.f32.vlgmr.msra.gmra.mrb[10].mxu0 %vm1440_vm8, %v9902_v15  ;;  %v9914_v18 = vpop.permute.xlu0 %7812 }
 0x246   :  { %v7783_v44 = vpop.permute.xlu1 %7782  ;;  %3925 = vmatprep.mubr.f32.mxu0 %v11814_v41  ;;  %v2711_v51 = vsel %vm427_vm2, %v11821_v31, %v7725_v27  ;;  %v7814_v56 = vunpack.i.l.bf16 %v9914_v18 }
 0x247   :  { %v7784_v23 = vunpack.i.l.bf16 %v7783_v44  ;;  %8037 = vrot.lane.b32.xlu0 %v8016_v50, %s8468_s26  ;;  %8022 = vrot.lane.b32.xlu1 %v8016_v50, %s8467_s0  ;;  %v7050_v5 = vpack.c.bf16 %v2855_v24, %v2711_v51 }
 0x249   :  { %v9928_v9 = vpop.permute.xlu0 %7817  ;;  %v2424_v52 = vsel %vm137_vm0, %v7715_v40, %v7784_v23 }
 0x24a   :  { %v9938_v4 = vpop.permute.xlu1 %7797  ;;  %v7044_v63 = vpack.c.bf16 %v2568_v43, %v2424_v52  ;;  %v11819_v43 = vunpack.i.l.bf16 %v9857_v45 }
 0x24b   :  { %v7799_v32 = vunpack.i.l.bf16 %v9938_v4  ;;  %8047 = vrot.lane.b32.xlu0 %v8046_v59, %s8470_s28  ;;  %8032 = vrot.lane.b32.xlu1 %v8026_v26, %s8472_s30  ;;  %v3040_v26 = vsel %vm757_vm4, %v7760_v29, %v11820_v57 }
 0x24c   :  { %7045 = vmatprep.subr.bf16.mxu1 %v7044_v63  ;;  %v2712_v49 = vsel %vm427_vm2, %v7725_v27, %v11819_v43  ;;  %v7052_v13 = vpack.c.bf16 %v3040_v26, %v9488_v19  ;;  %v7790_v43 = vunpack.i.h.bf16 %v9838_v30  ;;  %v7780_v19 = vunpack.i.h.bf16 %v9865_v60 }
 0x24d   :  { %7047 = vmatpush1.bf16.msra.mxu1 %v7046_v7  ;;  %v9948_v40 = vpop.permute.xlu0 %7827  ;;  %v2856_v38 = vsel %vm572_vm3, %v7730_v21, %v7799_v32  ;;  %v3039_v21 = vsel %vm757_vm4, %v11822_v53, %v7760_v29  ;;  %v7785_v7 = vunpack.i.h.bf16 %v7783_v44  ;;  %v7819_v29 = vunpack.i.l.bf16 %v9928_v9 }
 0x24e   :  { %v9962_v63 = vpop.permute.xlu1 %3439  ;;  %v7048_v52 = vpack.c.bf16 %v2856_v38, %v2712_v49  ;;  %v7054_v33 = vpack.c.bf16 %v3039_v21, %v9424_v54  ;;  %v2570_v57 = vsel %vm282_vm1, %v7790_v43, %v7814_v56  ;;  %v7775_v26 = vunpack.i.h.bf16 %v9809_v1 }
 0x24f   :  { %2563 = vrot.lane.b32.xlu0 %v9909_v46, %s8467_s0  ;;  %8042 = vrot.lane.b32.xlu1 %v8016_v50, %s8469_s27  ;;  %v2425_v44 = vsel %vm137_vm0, %v7784_v23, %v7785_v7  ;;  %v11823_v54 = vunpack.i.l.bf16 %v9838_v30  ;;  %v7800_v21 = vunpack.i.h.bf16 %v9938_v4  ;;  %v7829_v1 = vunpack.i.l.bf16 %v9948_v40 }
 0x250   :  { %7049 = vmatprep.subr.bf16.mxu1 %v7048_v52  ;;  %v11826_v4 = vunpack.i.l.bf16 %v9857_v45 }
 0x251   :  { %7051 = vmatpush1.bf16.msra.mxu1 %v7050_v5  ;;  %v9972_v27 = vpop.permute.xlu0 %7837  ;;  %v2569_v60 = vsel %vm282_vm1, %v11823_v54, %v7790_v43  ;;  %v11824_v5 = vunpack.i.h.bf16 %v9840_v2  ;;  %v11825_v2 = vunpack.i.h.bf16 %v9788_v36  ;;  %v2857_v36 = vsel %vm572_vm3, %v7799_v32, %v7800_v21 }
 0x252   :  { %v9975_v49 = vpop.permute.xlu1 %7807  ;;  %7053 = vmatprep.subr.bf16.mxu1 %v7052_v13  ;;  %v7062_v52 = vpack.c.bf16 %v2569_v60, %v2425_v44  ;;  %v7839_v30 = vunpack.i.l.bf16 %v9972_v27  ;;  %v3184_v13 = vsel %vm902_vm5, %v7775_v26, %v7819_v29  ;;  %v3472_v60 = vsel %vm1192_vm7, %v9897_v55, %v9880_v11 }
 0x253   :  { %v7809_v50 = vunpack.i.l.bf16 %v9975_v49  ;;  %8057 = vrot.lane.b32.xlu0 %v8046_v59, %s8472_s30  ;;  %2419 = vrot.lane.b32.xlu1 %v9909_v46, %s8466_s25  ;;  %v3327_v53 = vsel %vm1047_vm6, %v11824_v5, %v7780_v19  ;;  %v3183_v43 = vsel %vm902_vm5, %v11825_v2, %v7775_v26 }
 0x255   :  { %7055 = vmatpush1.bf16.msra.mxu1 %v7054_v33  ;;  %v9985_v24 = vpop.permute.xlu0 %7847  ;;  %v2426_v38 = vsel %vm137_vm0, %v7785_v7, %v7809_v50  ;;  %v7795_v33 = vunpack.i.h.bf16 %v9857_v45 }
 0x256   :  { %v7823_v23 = vpop.permute.xlu1 %7822  ;;  %v7060_v31 = vpack.c.bf16 %v2570_v57, %v2426_v38  ;;  %v7805_v57 = vunpack.i.h.bf16 %v9893_v14  ;;  %v7849_v2 = vunpack.i.l.bf16 %v9985_v24 }
 0x257   :  { %v7824_v51 = vunpack.i.l.bf16 %v7823_v23  ;;  %2851 = vrot.lane.b32.xlu0 %v9909_v46, %s8469_s27  ;;  %8052 = vrot.lane.b32.xlu1 %v8046_v59, %s8471_s29  ;;  %v2713_v5 = vsel %vm427_vm2, %v11826_v4, %v7795_v33 }
 0x258   :  { %7061 = vmatprep.subr.bf16.mxu0 %v7060_v31  ;;  %v2714_v31 = vsel %vm427_vm2, %v7795_v33, %v7829_v1  ;;  %v3042_v32 = vsel %vm757_vm4, %v7805_v57, %v7839_v30  ;;  %v7066_v45 = vpack.c.bf16 %v2857_v36, %v2713_v5 }
 0x259   :  { %7063 = vmatpush1.bf16.msra.mxu0 %v7062_v52  ;;  %v10006_v7 = vpop.permute.xlu0 %3437  ;;  %v3328_v59 = vsel %vm1047_vm6, %v7780_v19, %v7824_v51  ;;  %v7058_v19 = vpack.c.bf16 %v3327_v53, %v3183_v43  ;;  %v7820_v53 = vunpack.i.h.bf16 %v9928_v9  ;;  %v7825_v43 = vunpack.i.h.bf16 %v7823_v23 }
 0x25a   :  { %v10016_v44 = vpop.permute.xlu1 %7832  ;;  %v7056_v38 = vpack.c.bf16 %v3328_v59, %v3184_v13  ;;  %v7068_v23 = vpack.c.bf16 %v3042_v32, %v9526_v61 }
 0x25b   :  { %v7834_v54 = vunpack.i.l.bf16 %v10016_v44  ;;  %3461 = vrot.lane.b32.xlu0 %v9868_v25, %s8474_s11  ;;  %2707 = vrot.lane.b32.xlu1 %v9909_v46, %s8468_s26  ;;  %v3185_v5 = vsel %vm902_vm5, %v7819_v29, %v7820_v53  ;;  %v3474_v29 = vsel %vm1192_vm7, %v10006_v7, %v9962_v63 }
 0x25c   :  { %7057 = vmatprep.subr.bf16.mxu1 %v7056_v38 }
 0x25d   :  { %7059 = vmatpush1.bf16.msra.mxu1 %v7058_v19  ;;  %v10027_v26 = vpop.permute.xlu0 %7857  ;;  %v2858_v52 = vsel %vm572_vm3, %v7800_v21, %v7834_v54  ;;  %v11827_v21 = vunpack.i.l.bf16 %v9893_v14  ;;  %v3471_v19 = vsel %vm1192_vm7, %v9735_v3, %v9897_v55  ;;  %v3330_v3 = vsel %vm1047_vm6, %v7825_v43, %v7849_v2 }
 0x25e   :  { %v10045_v13 = vpop.permute.xlu1 %7842  ;;  %3806 = vmatprep.subr.mxu1 %v3472_v60  ;;  %v7064_v59 = vpack.c.bf16 %v2858_v52, %v2714_v31  ;;  %v7810_v14 = vunpack.i.h.bf16 %v9975_v49  ;;  %v3329_v55 = vsel %vm1047_vm6, %v7824_v51, %v7825_v43  ;;  %v3710_v52 = vld [vmem:[%s11696_s5] sm:$0xff]  ;;  %v7859_v32 = vunpack.i.l.bf16 %v10027_v26 }
 0x25f   :  { %v7844_v38 = vunpack.i.l.bf16 %v10045_v13  ;;  %3179 = vrot.lane.b32.xlu0 %v11814_v41, %s8471_s29  ;;  %3463 = vrot.lane.b32.xlu1 %v9854_v20, %s8474_s11  ;;  %v3041_v33 = vsel %vm757_vm4, %v11827_v21, %v7805_v57  ;;  %v7074_v43 = vpack.c.bf16 %v3329_v55, %v3185_v5  ;;  %v7835_v21 = vunpack.i.h.bf16 %v10016_v44 }
 0x260   :  { %7065 = vmatprep.subr.bf16.mxu0 %v7064_v59  ;;  %v7070_v61 = vpack.c.bf16 %v3041_v33, %v9499_v0  ;;  %v7815_v0 = vunpack.i.h.bf16 %v9914_v18  ;;  %v3473_v18 = vsel %vm1192_vm7, %v9880_v11, %v10006_v7 }
 0x261   :  { %3807 = vmatpush1.msra.mxu1 %v3471_v19  ;;  %7067 = vmatpush1.bf16.msra.mxu0 %v7066_v45  ;;  %v10060_v60 = vpop.permute.xlu0 %7867  ;;  %v3186_v31 = vsel %vm902_vm5, %v7820_v53, %v7844_v38  ;;  %v2427_v45 = vsel %vm137_vm0, %v7809_v50, %v7810_v14  ;;  %v7830_v50 = vunpack.i.h.bf16 %v9948_v40 }
 0x262   :  { %v10065_v36 = vpop.permute.xlu1 %3441  ;;  %6849 = vmatmul.mubr.msk.f32.vlgmr.msra.gmra.mrb[10].mxu1 %vm1440_vm8, %v9902_v15  ;;  %7069 = vmatprep.subr.bf16.mxu0 %v7068_v23  ;;  %v7072_v57 = vpack.c.bf16 %v3330_v3, %v3186_v31  ;;  %v7869_v33 = vunpack.i.l.bf16 %v10060_v60  ;;  %v2572_v19 = vsel %vm282_vm1, %v7815_v0, %v7859_v32  ;;  %v2571_v49 = vsel %vm282_vm1, %v7814_v56, %v7815_v0 }
 0x263   :  { %3465 = vrot.lane.b32.xlu0 %v9909_v46, %s8474_s11  ;;  %3323 = vrot.lane.b32.xlu1 %v11814_v41, %s8472_s30  ;;  %v7078_v3 = vpack.c.bf16 %v2571_v49, %v2427_v45  ;;  %v2715_v44 = vsel %vm427_vm2, %v7829_v1, %v7830_v50 }
 0x264   :  { %3996 = vmatprep.mubr.f32.mxu1 %v11814_v41 }
 0x265   :  { %7071 = vmatpush1.bf16.msra.mxu0 %v7070_v61  ;;  %v10084_v4 = vpop.permute.xlu0 %3443 }
 0x266   :  { %v7853_v59 = vpop.permute.xlu1 %7852  ;;  %7073 = vmatprep.subr.bf16.mxu0 %v7072_v57  ;;  %v2860_v57 = vsel %vm572_vm3, %v7835_v21, %v7869_v33 }
 0x267   :  { %v7854_v51 = vunpack.i.l.bf16 %v7853_v59  ;;  %3713 = vperm.xlu0 %7710, %v3710_v52   ;;  %3467 = vrot.lane.b32.xlu1 %v11814_v41, %s8474_s11  ;;  %v7840_v52 = vunpack.i.h.bf16 %v9972_v27  ;;  %v7855_v1 = vunpack.i.h.bf16 %v7853_v59  ;;  %v7845_v27 = vunpack.i.h.bf16 %v10045_v13 }
 0x269   :  { %7075 = vmatpush1.bf16.msra.mxu0 %v7074_v43  ;;  %v10097_v9 = vpop.permute.xlu0 %7877  ;;  %v2428_v53 = vsel %vm137_vm0, %v7810_v14, %v7854_v51  ;;  %v2859_v14 = vsel %vm572_vm3, %v7834_v54, %v7835_v21  ;;  %v3043_v40 = vsel %vm757_vm4, %v7839_v30, %v7840_v52  ;;  %v2429_v30 = vsel %vm137_vm0, %v7854_v51, %v7855_v1 }
 0x26a   :  { %v10110_v23 = vpop.permute.xlu1 %7862  ;;  %3877 = vmatprep.subr.mxu0 %v3474_v29  ;;  %v7076_v31 = vpack.c.bf16 %v2572_v19, %v2428_v53  ;;  %v7082_v7 = vpack.c.bf16 %v2859_v14, %v2715_v44  ;;  %v7879_v45 = vunpack.i.l.bf16 %v10097_v9  ;;  %v7860_v53 = vunpack.i.h.bf16 %v10027_v26 }
 0x26b   :  { %v7864_v61 = vunpack.i.l.bf16 %v10110_v23  ;;  %5187 = vrot.lane.b32.xlu0 %v11814_v41, %s8470_s28 }
 0x26c   :  { %7077 = vmatprep.subr.bf16.mxu1 %v7076_v31  ;;  %v7086_v31 = vpack.c.bf16 %v3043_v40, %v9539_v62  ;;  %v2430_v14 = vsel %vm137_vm0, %v7855_v1, %v7879_v45  ;;  %v7850_v62 = vunpack.i.h.bf16 %v9985_v24  ;;  %v2573_v51 = vsel %vm282_vm1, %v7859_v32, %v7860_v53 }
 0x26d   :  { %3878 = vmatpush1.msra.mxu0 %v3473_v18  ;;  %7079 = vmatpush1.bf16.msra.mxu1 %v7078_v3  ;;  %v10121_v56 = vpop.permute.xlu0 %7887  ;;  %v2716_v55 = vsel %vm427_vm2, %v7830_v50, %v7864_v61  ;;  %v7094_v44 = vpack.c.bf16 %v2573_v51, %v2429_v30  ;;  %v3476_v24 = vsel %vm1192_vm7, %v10065_v36, %v10084_v4 }
 0x26e   :  { %v10132_v54 = vpop.permute.xlu1 %3447  ;;  %6850 = vmatmul.mubr.msk.f32.vlgmr.msra.gmra.mrb[12].mxu0 %vm1440_vm8, %v9902_v15  ;;  %v7080_v11 = vpack.c.bf16 %v2860_v57, %v2716_v55  ;;  %v7889_v59 = vunpack.i.l.bf16 %v10121_v56  ;;  %v3331_v13 = vsel %vm1047_vm6, %v7849_v2, %v7850_v62 }
 0x26f   :  { %4067 = vmatprep.mubr.f32.mxu0 %v11814_v41 }
 0x270   :  { %7081 = vmatprep.subr.bf16.mxu1 %v7080_v11  ;;  %v3187_v11 = vsel %vm902_vm5, %v7844_v38, %v7845_v27  ;;  %v3188_v26 = vsel %vm902_vm5, %v7845_v27, %v7889_v59  ;;  %v7870_v38 = vunpack.i.h.bf16 %v10060_v60  ;;  %v3475_v60 = vsel %vm1192_vm7, %v9962_v63, %v10065_v36 }
 0x271   :  { %7083 = vmatpush1.bf16.msra.mxu1 %v7082_v7  ;;  %v10138_v0 = vpop.permute.xlu0 %7897  ;;  %v7865_v7 = vunpack.i.h.bf16 %v10110_v23  ;;  %v7090_v30 = vpack.c.bf16 %v3331_v13, %v3187_v11 }
 0x272   :  { %v7873_v5 = vpop.permute.xlu1 %7872 }
 0x273   :  { %v7874_v43 = vunpack.i.l.bf16 %v7873_v5 }
 0x275   :  { %v10144_v21 = vpop.permute.xlu0 %7907  ;;  %v3044_v29 = vsel %vm757_vm4, %v7840_v52, %v7874_v43  ;;  %v7899_v52 = vunpack.i.l.bf16 %v10138_v0 }
 0x276   :  { %v10148_v19 = vpop.permute.xlu1 %7882  ;;  %v7084_v49 = vpack.c.bf16 %v3044_v29, %v9563_v48  ;;  %v7909_v40 = vunpack.i.l.bf16 %v10144_v21 }
 0x277   :  { %v7884_v50 = vunpack.i.l.bf16 %v10148_v19  ;;  %v2718_v2 = vsel %vm427_vm2, %v7865_v7, %v7899_v52  ;;  %v7885_v63 = vunpack.i.h.bf16 %v10148_v19 }
 0x278   :  { %7085 = vmatprep.subr.bf16.mxu1 %v7084_v49  ;;  %v7875_v49 = vunpack.i.h.bf16 %v7873_v5 }
 0x279   :  { %7087 = vmatpush1.bf16.msra.mxu1 %v7086_v31  ;;  %v10156_v3 = vpop.permute.xlu0 %7917  ;;  %v2574_v48 = vsel %vm282_vm1, %v7860_v53, %v7884_v50 }
 0x27a   :  { %v7893_v18 = vpop.permute.xlu1 %7892  ;;  %v7092_v55 = vpack.c.bf16 %v2574_v48, %v2430_v14  ;;  %v2717_v14 = vsel %vm427_vm2, %v7864_v61, %v7865_v7  ;;  %v3046_v23 = vsel %vm757_vm4, %v7875_v49, %v7909_v40  ;;  %v2861_v61 = vsel %vm572_vm3, %v7869_v33, %v7870_v38 }
 0x27b   :  { %v7894_v57 = vunpack.i.l.bf16 %v7893_v18  ;;  %v7890_v48 = vunpack.i.h.bf16 %v10121_v56  ;;  %v7098_v7 = vpack.c.bf16 %v2861_v61, %v2717_v14  ;;  %v7100_v33 = vpack.c.bf16 %v3046_v23, %v9620_v35 }
 0x27c   :  { %7093 = vmatprep.subr.bf16.mxu0 %v7092_v55  ;;  %v7919_v55 = vunpack.i.l.bf16 %v10156_v3 }
 0x27d   :  { %7095 = vmatpush1.bf16.msra.mxu0 %v7094_v44  ;;  %v10174_v1 = vpop.permute.xlu0 %3445  ;;  %v3332_v32 = vsel %vm1047_vm6, %v7850_v62, %v7894_v57  ;;  %v7895_v44 = vunpack.i.h.bf16 %v7893_v18 }
 0x27e   :  { %v10184_v29 = vpop.permute.xlu1 %7902  ;;  %v7088_v53 = vpack.c.bf16 %v3332_v32, %v3188_v26  ;;  %v3045_v26 = vsel %vm757_vm4, %v7874_v43, %v7875_v49  ;;  %v3478_v56 = vsel %vm1192_vm7, %v10174_v1, %v10132_v54 }
 0x27f   :  { %v7904_v31 = vunpack.i.l.bf16 %v10184_v29  ;;  %v7102_v43 = vpack.c.bf16 %v3045_v26, %v9588_v58  ;;  %v3334_v35 = vsel %vm1047_vm6, %v7895_v44, %v7919_v55  ;;  %v3333_v36 = vsel %vm1047_vm6, %v7894_v57, %v7895_v44 }
 0x280   :  { %7089 = vmatprep.subr.bf16.mxu1 %v7088_v53  ;;  %v3189_v58 = vsel %vm902_vm5, %v7889_v59, %v7890_v48  ;;  %v2575_v57 = vsel %vm282_vm1, %v7884_v50, %v7885_v63  ;;  %v7900_v50 = vunpack.i.h.bf16 %v10138_v0 }
 0x281   :  { %7091 = vmatpush1.bf16.msra.mxu1 %v7090_v30  ;;  %v10190_v27 = vpop.permute.xlu0 %7927  ;;  %v2862_v5 = vsel %vm572_vm3, %v7870_v38, %v7904_v31  ;;  %v7880_v30 = vunpack.i.h.bf16 %v10097_v9 }
 0x282   :  { %v10206_v62 = vpop.permute.xlu1 %7912  ;;  %3948 = vmatprep.subr.mxu1 %v3476_v24  ;;  %v7096_v51 = vpack.c.bf16 %v2862_v5, %v2718_v2  ;;  %v7929_v53 = vunpack.i.l.bf16 %v10190_v27  ;;  %v7106_v2 = vpack.c.bf16 %v3333_v36, %v3189_v58  ;;  %v7905_v5 = vunpack.i.h.bf16 %v10184_v29 }
 0x283   :  { %v7914_v11 = vunpack.i.l.bf16 %v10206_v62  ;;  %v2431_v19 = vsel %vm137_vm0, %v7879_v45, %v7880_v30 }
 0x284   :  { %7097 = vmatprep.subr.bf16.mxu0 %v7096_v51  ;;  %v2863_v26 = vsel %vm572_vm3, %v7904_v31, %v7905_v5  ;;  %v2719_v31 = vsel %vm427_vm2, %v7899_v52, %v7900_v50 }
 0x285   :  { %3949 = vmatpush1.msra.mxu1 %v3475_v60  ;;  %7099 = vmatpush1.bf16.msra.mxu0 %v7098_v7  ;;  %v10215_v32 = vpop.permute.xlu0 %7937  ;;  %v3190_v18 = vsel %vm902_vm5, %v7890_v48, %v7914_v11  ;;  %v2576_v48 = vsel %vm282_vm1, %v7885_v63, %v7929_v53  ;;  %v7110_v7 = vpack.c.bf16 %v2575_v57, %v2431_v19 }
 0x286   :  { %v10220_v13 = vpop.permute.xlu1 %3449  ;;  %6851 = vmatmul.mubr.msk.f32.vlgmr.msra.gmra.mrb[12].mxu1 %vm1440_vm8, %v9902_v15  ;;  %7101 = vmatprep.subr.bf16.mxu0 %v7100_v33  ;;  %v7104_v38 = vpack.c.bf16 %v3334_v35, %v3190_v18  ;;  %v7939_v23 = vunpack.i.l.bf16 %v10215_v32  ;;  %v3477_v60 = vsel %vm1192_vm7, %v10084_v4, %v10174_v1  ;;  %v7114_v1 = vpack.c.bf16 %v2863_v26, %v2719_v31 }
 0x287   :  { %4138 = vmatprep.mubr.f32.mxu1 %v11814_v41 }
 0x288   :  { %v2864_v33 = vsel %vm572_vm3, %v7905_v5, %v7939_v23 }
 0x289   :  { %7103 = vmatpush1.bf16.msra.mxu0 %v7102_v43  ;;  %v10232_v49 = vpop.permute.xlu0 %3451  ;;  %v7910_v43 = vunpack.i.h.bf16 %v10144_v21  ;;  %v7915_v21 = vunpack.i.h.bf16 %v10206_v62 }
 0x28a   :  { %v7923_v14 = vpop.permute.xlu1 %7922  ;;  %7105 = vmatprep.subr.bf16.mxu0 %v7104_v38 }
 0x28b   :  { %v7924_v24 = vunpack.i.l.bf16 %v7923_v14  ;;  %v3047_v0 = vsel %vm757_vm4, %v7909_v40, %v7910_v43  ;;  %v7925_v52 = vunpack.i.h.bf16 %v7923_v14 }
 0x28d   :  { %7107 = vmatpush1.bf16.msra.mxu0 %v7106_v2  ;;  %v10243_v61 = vpop.permute.xlu0 %7947  ;;  %v2432_v59 = vsel %vm137_vm0, %v7880_v30, %v7924_v24  ;;  %v7930_v2 = vunpack.i.h.bf16 %v10190_v27  ;;  %v2433_v40 = vsel %vm137_vm0, %v7924_v24, %v7925_v52 }
 0x28e   :  { %v10256_v29 = vpop.permute.xlu1 %7932  ;;  %4019 = vmatprep.subr.mxu0 %v3478_v56  ;;  %v7108_v51 = vpack.c.bf16 %v2576_v48, %v2432_v59  ;;  %v7949_v38 = vunpack.i.l.bf16 %v10243_v61  ;;  %v7118_v59 = vpack.c.bf16 %v3047_v0, %v9617_v37  ;;  %v7920_v37 = vunpack.i.h.bf16 %v10156_v3 }
 0x28f   :  { %v7934_v44 = vunpack.i.l.bf16 %v10256_v29  ;;  %v2577_v24 = vsel %vm282_vm1, %v7929_v53, %v7930_v2  ;;  %v3480_v3 = vsel %vm1192_vm7, %v10220_v13, %v10232_v49 }
 0x290   :  { %7109 = vmatprep.subr.bf16.mxu1 %v7108_v51  ;;  %v2434_v19 = vsel %vm137_vm0, %v7925_v52, %v7949_v38  ;;  %v7126_v26 = vpack.c.bf16 %v2577_v24, %v2433_v40  ;;  %v3335_v62 = vsel %vm1047_vm6, %v7919_v55, %v7920_v37 }
 0x291   :  { %4020 = vmatpush1.msra.mxu0 %v3477_v60  ;;  %7111 = vmatpush1.bf16.msra.mxu1 %v7110_v7  ;;  %v10263_v9 = vpop.permute.xlu0 %7957  ;;  %v2720_v45 = vsel %vm427_vm2, %v7900_v50, %v7934_v44  ;;  %v3191_v60 = vsel %vm902_vm5, %v7914_v11, %v7915_v21  ;;  %v7940_v11 = vunpack.i.h.bf16 %v10215_v32  ;;  %v3479_v32 = vsel %vm1192_vm7, %v10132_v54, %v10220_v13 }
 0x292   :  { %v10274_v18 = vpop.permute.xlu1 %3455  ;;  %6852 = vmatmul.mubr.msk.f32.vlgmr.msra.gmra.mrb[14].mxu0 %vm1440_vm8, %v9902_v15  ;;  %v7112_v4 = vpack.c.bf16 %v2864_v33, %v2720_v45  ;;  %v7959_v14 = vunpack.i.l.bf16 %v10263_v9  ;;  %v7935_v45 = vunpack.i.h.bf16 %v10256_v29 }
 0x293   :  { %4209 = vmatprep.mubr.f32.mxu0 %v11814_v41 }
 0x294   :  { %7113 = vmatprep.subr.bf16.mxu1 %v7112_v4  ;;  %v3192_v27 = vsel %vm902_vm5, %v7915_v21, %v7959_v14 }
 0x295   :  { %7115 = vmatpush1.bf16.msra.mxu1 %v7114_v1  ;;  %v10280_v35 = vpop.permute.xlu0 %7967 }
 0x296   :  { %v7943_v63 = vpop.permute.xlu1 %7942  ;;  %v7969_v33 = vunpack.i.l.bf16 %v10280_v35 }
 0x297   :  { %v7944_v36 = vunpack.i.l.bf16 %v7943_v63  ;;  %v7945_v0 = vunpack.i.h.bf16 %v7943_v63 }
 0x298   :  { %v2722_v55 = vsel %vm427_vm2, %v7935_v45, %v7969_v33 }
 0x299   :  { %v10286_v30 = vpop.permute.xlu0 %7977  ;;  %v3048_v58 = vsel %vm757_vm4, %v7910_v43, %v7944_v36 }
 0x29a   :  { %v10290_v57 = vpop.permute.xlu1 %7952  ;;  %v7116_v5 = vpack.c.bf16 %v3048_v58, %v9643_v8  ;;  %v7979_v31 = vunpack.i.l.bf16 %v10286_v30  ;;  %v7122_v58 = vpack.c.bf16 %v3335_v62, %v3191_v60  ;;  %v7950_v62 = vunpack.i.h.bf16 %v10243_v61 }
 0x29b   :  { %v7954_v56 = vunpack.i.l.bf16 %v10290_v57  ;;  %v7955_v54 = vunpack.i.h.bf16 %v10290_v57 }
 0x29c   :  { %7117 = vmatprep.subr.bf16.mxu1 %v7116_v5  ;;  %v3050_v29 = vsel %vm757_vm4, %v7945_v0, %v7979_v31  ;;  %v2435_v57 = vsel %vm137_vm0, %v7949_v38, %v7950_v62 }
 0x29d   :  { %7119 = vmatpush1.bf16.msra.mxu1 %v7118_v59  ;;  %v10298_v48 = vpop.permute.xlu0 %7987  ;;  %v2578_v8 = vsel %vm282_vm1, %v7930_v2, %v7954_v56  ;;  %v2721_v2 = vsel %vm427_vm2, %v7934_v44, %v7935_v45  ;;  %v2865_v44 = vsel %vm572_vm3, %v7939_v23, %v7940_v11  ;;  %v7960_v59 = vunpack.i.h.bf16 %v10263_v9 }
 0x29e   :  { %v7963_v50 = vpop.permute.xlu1 %7962  ;;  %v7124_v51 = vpack.c.bf16 %v2578_v8, %v2434_v19  ;;  %v7989_v19 = vunpack.i.l.bf16 %v10298_v48  ;;  %v7130_v24 = vpack.c.bf16 %v2865_v44, %v2721_v2  ;;  %v7132_v23 = vpack.c.bf16 %v3050_v29, %v9699_v34 }
 0x29f   :  { %v7964_v7 = vunpack.i.l.bf16 %v7963_v50  ;;  %v7965_v8 = vunpack.i.h.bf16 %v7963_v50 }
 0x2a0   :  { %7125 = vmatprep.subr.bf16.mxu0 %v7124_v51  ;;  %v3049_v51 = vsel %vm757_vm4, %v7944_v36, %v7945_v0 }
 0x2a1   :  { %7127 = vmatpush1.bf16.msra.mxu0 %v7126_v26  ;;  %v10316_v4 = vpop.permute.xlu0 %3453  ;;  %v3336_v53 = vsel %vm1047_vm6, %v7920_v37, %v7964_v7  ;;  %v7134_v36 = vpack.c.bf16 %v3049_v51, %v9663_v12  ;;  %v3338_v34 = vsel %vm1047_vm6, %v7965_v8, %v7989_v19  ;;  %v3337_v13 = vsel %vm1047_vm6, %v7964_v7, %v7965_v8 }
 0x2a2   :  { %v10326_v1 = vpop.permute.xlu1 %7972  ;;  %v7120_v43 = vpack.c.bf16 %v3336_v53, %v3192_v27  ;;  %v3193_v12 = vsel %vm902_vm5, %v7959_v14, %v7960_v59  ;;  %v2579_v7 = vsel %vm282_vm1, %v7954_v56, %v7955_v54  ;;  %v3482_v9 = vsel %vm1192_vm7, %v10316_v4, %v10274_v18 }
 0x2a3   :  { %v7974_v52 = vunpack.i.l.bf16 %v10326_v1  ;;  %v7138_v0 = vpack.c.bf16 %v3337_v13, %v3193_v12  ;;  %v7970_v56 = vunpack.i.h.bf16 %v10280_v35  ;;  %v7142_v44 = vpack.c.bf16 %v2579_v7, %v2435_v57 }
 0x2a4   :  { %7121 = vmatprep.subr.bf16.mxu1 %v7120_v43  ;;  %v3481_v61 = vsel %vm1192_vm7, %v10232_v49, %v10316_v4 }
 0x2a5   :  { %7123 = vmatpush1.bf16.msra.mxu1 %v7122_v58  ;;  %v10332_v5 = vpop.permute.xlu0 %7997  ;;  %v2866_v63 = vsel %vm572_vm3, %v7940_v11, %v7974_v52  ;;  %v7975_v58 = vunpack.i.h.bf16 %v10326_v1  ;;  %v2723_v51 = vsel %vm427_vm2, %v7969_v33, %v7970_v56 }
 0x2a6   :  { %v10348_v21 = vpop.permute.xlu1 %7982  ;;  %4090 = vmatprep.subr.mxu1 %v3480_v3  ;;  %v7128_v40 = vpack.c.bf16 %v2866_v63, %v2722_v55  ;;  %v7999_v27 = vunpack.i.l.bf16 %v10332_v5 }
 0x2a7   :  { %v7984_v37 = vunpack.i.l.bf16 %v10348_v21 }
 0x2a8   :  { %7129 = vmatprep.subr.bf16.mxu0 %v7128_v40  ;;  %v2580_v55 = vsel %vm282_vm1, %v7955_v54, %v7999_v27  ;;  %v2867_v40 = vsel %vm572_vm3, %v7974_v52, %v7975_v58 }
 0x2a9   :  { %4091 = vmatpush1.msra.mxu1 %v3479_v32  ;;  %7131 = vmatpush1.bf16.msra.mxu0 %v7130_v24  ;;  %v10357_v26 = vpop.permute.xlu0 %8007  ;;  %v3194_v50 = vsel %vm902_vm5, %v7960_v59, %v7984_v37  ;;  %v7980_v59 = vunpack.i.h.bf16 %v10286_v30  ;;  %v7146_v32 = vpack.c.bf16 %v2867_v40, %v2723_v51 }
 0x2aa   :  { %v10362_v60 = vpop.permute.xlu1 %3457  ;;  %6853 = vmatmul.mubr.msk.f32.vlgmr.msra.gmra.mrb[14].mxu1 %vm1440_vm8, %v9902_v15  ;;  %7133 = vmatprep.subr.bf16.mxu0 %v7132_v23  ;;  %v7136_v45 = vpack.c.bf16 %v3338_v34, %v3194_v50  ;;  %v8009_v2 = vunpack.i.l.bf16 %v10357_v26  ;;  %v8000_v34 = vunpack.i.h.bf16 %v10332_v5 }
 0x2ab   :  { %4280 = vmatprep.mubr.f32.mxu1 %v11814_v41  ;;  %v3051_v23 = vsel %vm757_vm4, %v7979_v31, %v7980_v59  ;;  %v7985_v31 = vunpack.i.h.bf16 %v10348_v21 }
 0x2ac   :  { %v2868_v24 = vsel %vm572_vm3, %v7975_v58, %v8009_v2  ;;  %v7150_v30 = vpack.c.bf16 %v3051_v23, %v9696_v42  ;;  %v2581_v42 = vsel %vm282_vm1, %v7999_v27, %v8000_v34 }
 0x2ad   :  { %7135 = vmatpush1.bf16.msra.mxu0 %v7134_v36  ;;  %v10374_v53 = vpop.permute.xlu0 %3459 }
 0x2ae   :  { %v7993_v11 = vpop.permute.xlu1 %7992  ;;  %7137 = vmatprep.subr.bf16.mxu0 %v7136_v45 }
 0x2af   :  { %v7994_v43 = vunpack.i.l.bf16 %v7993_v11  ;;  %v7995_v50 = vunpack.i.h.bf16 %v7993_v11 }
 0x2b1   :  { %7139 = vmatpush1.bf16.msra.mxu0 %v7138_v0  ;;  %v10385_v3 = vpop.permute.xlu0 %8017  ;;  %v2436_v14 = vsel %vm137_vm0, %v7950_v62, %v7994_v43  ;;  %v2437_v62 = vsel %vm137_vm0, %v7994_v43, %v7995_v50 }
 0x2b2   :  { %v10396_v1 = vpop.permute.xlu1 %8002  ;;  %4161 = vmatprep.subr.mxu0 %v3482_v9  ;;  %v7140_v63 = vpack.c.bf16 %v2580_v55, %v2436_v14  ;;  %v8019_v35 = vunpack.i.l.bf16 %v10385_v3  ;;  %v7158_v9 = vpack.c.bf16 %v2581_v42, %v2437_v62  ;;  %v3195_v14 = vsel %vm902_vm5, %v7984_v37, %v7985_v31 }
 0x2b3   :  { %v8004_v29 = vunpack.i.l.bf16 %v10396_v1  ;;  %v8005_v55 = vunpack.i.h.bf16 %v10396_v1  ;;  %v8010_v37 = vunpack.i.h.bf16 %v10357_v26 }
 0x2b4   :  { %7141 = vmatprep.subr.bf16.mxu1 %v7140_v63  ;;  %v2438_v5 = vsel %vm137_vm0, %v7995_v50, %v8019_v35 }
 0x2b5   :  { %4162 = vmatpush1.msra.mxu0 %v3481_v61  ;;  %7143 = vmatpush1.bf16.msra.mxu1 %v7142_v44  ;;  %v10404_v38 = vpop.permute.xlu0 %8027  ;;  %v2724_v8 = vsel %vm427_vm2, %v7970_v56, %v8004_v29  ;;  %v2725_v51 = vsel %vm427_vm2, %v8004_v29, %v8005_v55  ;;  %v2869_v50 = vsel %vm572_vm3, %v8009_v2, %v8010_v37 }
 0x2b6   :  { %v10413_v52 = vpop.permute.xlu1 %8012  ;;  %6854 = vmatmul.mubr.msk.f32.vlgmr.msra.gmra.mrb[16].mxu0 %vm1440_vm8, %v9902_v15  ;;  %v7144_v49 = vpack.c.bf16 %v2868_v24, %v2724_v8  ;;  %v8029_v12 = vunpack.i.l.bf16 %v10404_v38  ;;  %v7162_v62 = vpack.c.bf16 %v2869_v50, %v2725_v51 }
 0x2b7   :  { %v8014_v4 = vunpack.i.l.bf16 %v10413_v52  ;;  %4351 = vmatprep.mubr.f32.mxu0 %v11814_v41  ;;  %v8015_v40 = vunpack.i.h.bf16 %v10413_v52 }
 0x2b8   :  { %7145 = vmatprep.subr.bf16.mxu1 %v7144_v49  ;;  %v3196_v27 = vsel %vm902_vm5, %v7985_v31, %v8029_v12  ;;  %v3484_v49 = vsel %vm1192_vm7, %v10362_v60, %v10374_v53 }
 0x2b9   :  { %7147 = vmatpush1.bf16.msra.mxu1 %v7146_v32  ;;  %v10423_v33 = vpop.permute.xlu0 %8037  ;;  %v3052_v36 = vsel %vm757_vm4, %v7980_v59, %v8014_v4  ;;  %v3053_v26 = vsel %vm757_vm4, %v8014_v4, %v8015_v40 }
 0x2ba   :  { %v8023_v54 = vpop.permute.xlu1 %8022  ;;  %v7148_v13 = vpack.c.bf16 %v3052_v36, %v9733_v17  ;;  %v7990_v17 = vunpack.i.h.bf16 %v10298_v48  ;;  %v8039_v57 = vunpack.i.l.bf16 %v10423_v33  ;;  %v8020_v48 = vunpack.i.h.bf16 %v10385_v3 }
 0x2bb   :  { %v8024_v45 = vunpack.i.l.bf16 %v8023_v54  ;;  %v8025_v61 = vunpack.i.h.bf16 %v8023_v54  ;;  %v3483_v54 = vsel %vm1192_vm7, %v10274_v18, %v10362_v60  ;;  %v7166_v3 = vpack.c.bf16 %v3053_v26, %v9772_v10 }
 0x2bc   :  { %7149 = vmatprep.subr.bf16.mxu1 %v7148_v13  ;;  %v3339_v21 = vsel %vm1047_vm6, %v7989_v19, %v7990_v17  ;;  %v2726_v32 = vsel %vm427_vm2, %v8005_v55, %v8039_v57  ;;  %v2439_v18 = vsel %vm137_vm0, %v8019_v35, %v8020_v48  ;;  %v8040_v35 = vunpack.i.h.bf16 %v10423_v33 }
 0x2bd   :  { %7151 = vmatpush1.bf16.msra.mxu1 %v7150_v30  ;;  %v10434_v11 = vpop.permute.xlu0 %8047  ;;  %v2582_v0 = vsel %vm282_vm1, %v8000_v34, %v8024_v45  ;;  %v7154_v24 = vpack.c.bf16 %v3339_v21, %v3195_v14  ;;  %v2583_v13 = vsel %vm282_vm1, %v8024_v45, %v8025_v61 }
 0x2be   :  { %v10442_v7 = vpop.permute.xlu1 %8032  ;;  %v7156_v58 = vpack.c.bf16 %v2582_v0, %v2438_v5  ;;  %v8049_v56 = vunpack.i.l.bf16 %v10434_v11  ;;  %v7174_v4 = vpack.c.bf16 %v2583_v13, %v2439_v18 }
 0x2bf   :  { %v8034_v43 = vunpack.i.l.bf16 %v10442_v7  ;;  %v8035_v2 = vunpack.i.h.bf16 %v10442_v7 }
 0x2c0   :  { %7157 = vmatprep.subr.bf16.mxu0 %v7156_v58  ;;  %v3054_v29 = vsel %vm757_vm4, %v8015_v40, %v8049_v56 }
 0x2c1   :  { %7159 = vmatpush1.bf16.msra.mxu0 %v7158_v9  ;;  %v2564_v63 = vpop.permute.xlu0 %2563  ;;  %v3340_v44 = vsel %vm1047_vm6, %v7990_v17, %v8034_v43  ;;  %v7164_v0 = vpack.c.bf16 %v3054_v29, %v9868_v25  ;;  %v8030_v17 = vunpack.i.h.bf16 %v10404_v38  ;;  %v8050_v25 = vunpack.i.h.bf16 %v10434_v11 }
 0x2c2   :  { %v8043_v1 = vpop.permute.xlu1 %8042  ;;  %v7152_v59 = vpack.c.bf16 %v3340_v44, %v3196_v27  ;;  %v2584_v30 = vsel %vm282_vm1, %v8025_v61, %v2564_v63  ;;  %v3341_v58 = vsel %vm1047_vm6, %v8034_v43, %v8035_v2 }
 0x2c3   :  { %v8044_v8 = vunpack.i.l.bf16 %v8043_v1  ;;  %v8045_v52 = vunpack.i.h.bf16 %v8043_v1  ;;  %v3197_v14 = vsel %vm902_vm5, %v8029_v12, %v8030_v17  ;;  %v2727_v1 = vsel %vm427_vm2, %v8039_v57, %v8040_v35 }
 0x2c4   :  { %7153 = vmatprep.subr.bf16.mxu1 %v7152_v59  ;;  %v7170_v43 = vpack.c.bf16 %v3341_v58, %v3197_v14  ;;  %v3055_v59 = vsel %vm757_vm4, %v8049_v56, %v8050_v25 }
 0x2c5   :  { %7155 = vmatpush1.bf16.msra.mxu1 %v7154_v24  ;;  %v10465_v19 = vpop.permute.xlu0 %8057  ;;  %v2870_v23 = vsel %vm572_vm3, %v8010_v37, %v8044_v8  ;;  %v2871_v55 = vsel %vm572_vm3, %v8044_v8, %v8045_v52  ;;  %v3056_v37 = vsel %vm757_vm4, %v8050_v25, %v9693_v22  ;;  %v7182_v11 = vpack.c.bf16 %v3055_v59, %v9854_v20 }
 0x2c6   :  { %v2420_v36 = vpop.permute.xlu1 %2419  ;;  %4232 = vmatprep.subr.mxu1 %v3484_v49  ;;  %v7160_v34 = vpack.c.bf16 %v2870_v23, %v2726_v32  ;;  %v8059_v60 = vunpack.i.l.bf16 %v10465_v19  ;;  %v7178_v12 = vpack.c.bf16 %v2871_v55, %v2727_v1  ;;  %v7180_v8 = vpack.c.bf16 %v3056_v37, %v9909_v46  ;;  %v8415_v46 = vld [vmem:[%s11695_s4] sm:$0xff] }
 0x2c7   :  { %v2440_v31 = vsel %vm137_vm0, %v8020_v48, %v2420_v36  ;;  %v8060_v33 = vunpack.i.h.bf16 %v10465_v19 }
 0x2c8   :  { %v7172_v5 = vpack.c.bf16 %v2584_v30, %v2440_v31  ;;  %7161 = vmatprep.subr.bf16.mxu0 %v7160_v34 }
 0x2c9   :  { %4233 = vmatpush1.msra.mxu1 %v3483_v54  ;;  %7163 = vmatpush1.bf16.msra.mxu0 %v7162_v62  ;;  %v2852_v45 = vpop.permute.xlu0 %2851 }
 0x2ca   :  { %v8053_v42 = vpop.permute.xlu1 %8052  ;;  %6855 = vmatmul.mubr.msk.f32.vlgmr.msra.gmra.mrb[16].mxu1 %vm1440_vm8, %v9902_v15  ;;  %7165 = vmatprep.subr.bf16.mxu0 %v7164_v0  ;;  %v3342_v15 = vsel %vm1047_vm6, %v8035_v2, %v8059_v60  ;;  %v2872_v44 = vsel %vm572_vm3, %v8045_v52, %v2852_v45 }
 0x2cb   :  { %v8054_v7 = vunpack.i.l.bf16 %v8053_v42  ;;  %7173 = vmatprep.subr.bf16.mxu1 %v7172_v5  ;;  %4422 = vmatprep.mubr.f32.mxu1 %v11814_v41  ;;  %v8055_v40 = vunpack.i.h.bf16 %v8053_v42 }
 0x2cc   :  { %7175 = vmatpush1.bf16.msra.mxu1 %v7174_v4 }
 0x2cd   :  { %7167 = vmatpush1.bf16.msra.mxu0 %v7166_v3  ;;  %v3198_v9 = vsel %vm902_vm5, %v8030_v17, %v8054_v7  ;;  %v3462_v63 = vpop.permute.xlu0 %3461  ;;  %v3199_v56 = vsel %vm902_vm5, %v8054_v7, %v8055_v40 }
 0x2ce   :  { %v2708_v10 = vpop.permute.xlu1 %2707  ;;  %v7168_v27 = vpack.c.bf16 %v3342_v15, %v3198_v9  ;;  %v3485_v57 = vsel %vm1192_vm7, %v10374_v53, %v3462_v63  ;;  %v3343_v53 = vsel %vm1047_vm6, %v8059_v60, %v8060_v33 }
 0x2cf   :  { %v2728_v21 = vsel %vm427_vm2, %v8040_v35, %v2708_v10  ;;  %v7186_v20 = vpack.c.bf16 %v3343_v53, %v3199_v56 }
 0x2d0   :  { %v7176_v38 = vpack.c.bf16 %v2872_v44, %v2728_v21  ;;  %7169 = vmatprep.subr.bf16.mxu0 %v7168_v27  ;;  %v11828_v27 = vld [vmem:[#allocation16_spill] sm:$0xff] }
 0x2d1   :  { %7171 = vmatpush1.bf16.msra.mxu0 %v7170_v43  ;;  %v3180_v24 = vpop.permute.xlu0 %3179 }
 0x2d2   :  { %v3464_v61 = vpop.permute.xlu1 %3463  ;;  %7177 = vmatprep.subr.bf16.mxu1 %v7176_v38  ;;  %v3200_v49 = vsel %vm902_vm5, %v8055_v40, %v3180_v24 }
 0x2d3   :  { %7179 = vmatpush1.bf16.msra.mxu1 %v7178_v12  ;;  %v3486_v22 = vsel %vm1192_vm7, %v3462_v63, %v3464_v61  ;;  %v11829_v12 = vld [vmem:[#allocation18_spill] sm:$0xff] }
 0x2d4   :  { %4303 = vmatprep.subr.mxu0 %v3486_v22  ;;  %7181 = vmatprep.subr.bf16.mxu1 %v7180_v8 }
 0x2d5   :  { %4304 = vmatpush1.msra.mxu0 %v3485_v57  ;;  %v3466_v32 = vpop.permute.xlu0 %3465  ;;  %v11830_v57 = vld [vmem:[#allocation20_spill] sm:$0xff] }
 0x2d6   :  { %v3324_v51 = vpop.permute.xlu1 %3323  ;;  %6856 = vmatmul.mubr.msk.f32.vlgmr.msra.gmra.mrb[18].mxu0 %vm1440_vm8, %v8415_v46  ;;  %v3487_v50 = vsel %vm1192_vm7, %v3464_v61, %v3466_v32 }
 0x2d7   :  { %v3344_v48 = vsel %vm1047_vm6, %v8060_v33, %v3324_v51  ;;  %7183 = vmatpush1.bf16.msra.mxu1 %v7182_v11  ;;  %5935 = vmatprep.mubr.f32.mxu0 %v11814_v41  ;;  %v11831_v51 = vld [vmem:[#allocation22_spill] sm:$0xff] }
 0x2d8   :  { %v7184_v19 = vpack.c.bf16 %v3344_v48, %v3200_v49 }
 0x2da   :  { %v3468_v23 = vpop.permute.xlu1 %3467  ;;  %7185 = vmatprep.subr.bf16.mxu1 %v7184_v19 }
 0x2db   :  { %7187 = vmatpush1.bf16.msra.mxu1 %v7186_v20  ;;  %v3488_v29 = vsel %vm1192_vm7, %v3466_v32, %v3468_v23  ;;  %v11832_v20 = vld [vmem:[#allocation26_spill] sm:$0xff] }
 0x2dc   :  { %4374 = vmatprep.subr.mxu1 %v3488_v29 }
 0x2df   :  { %4375 = vmatpush1.msra.mxu1 %v3487_v50 }
 0x2e0   :  { %6857 = vmatmul.mubr.msk.f32.vlgmr.msra.gmra.mrb[18].mxu1 %vm1440_vm8, %v8415_v46 }
 0x2e1   :  { %6006 = vmatprep.mubr.f32.mxu1 %v11814_v41 }
 0x2e6   :  { %v10535_v36 = vpop.permute.xlu0 %3713 }
 0x318   :  { %v3785_v34 = vpop.f32.mrb[10].mxu0 }
 0x319   :  { %v3786_v54 = vadd.f32 %v3785_v34, %v10535_v36  ;;  %v3787_v13 = vpop.f32.mrb[11].mxu0 }
 0x31a   :  { %v3788_v30 = vadd.f32 %v3787_v13, %v10535_v36  ;;  %v11833_v13 = vld [vmem:[#allocation25_spill] sm:$0xff] }
 0x31b   :  { %v4429_v31 = vmax.f32 %v3786_v54, 0.0 }
 0x31c   :  { %v4430_v62 = vmax.f32 %v3788_v30, 0.0 }
 0x31d   :  { %v10540_v26 = vmul.f32 %v4429_v31, %v9445_v28 }
 0x31e   :  { %v10543_v2 = vmul.f32 %v4430_v62, %v9449_v6 }
 0x31f   :  { %5579 = vrot.lane.b32.xlu0 %v10540_v26, %s8474_s11 }
 0x320   :  { %v8061_v5 = vpack.i.bf16 %v10543_v2, %v10540_v26 }
 0x322   :  { %8062 = vrot.lane.b32.xlu1 %v8061_v5, %s8466_s25 }
 0x323   :  { %8067 = vrot.lane.b32.xlu0 %v8061_v5, %s8467_s0 }
 0x326   :  { %8072 = vrot.lane.b32.xlu1 %v8061_v5, %s8468_s26 }
 0x327   :  { %8077 = vrot.lane.b32.xlu0 %v8061_v5, %s8469_s27 }
 0x32b   :  { %5581 = vrot.lane.b32.xlu0 %v10543_v2, %s8474_s11 }
 0x335   :  { %v3856_v0 = vpop.f32.mrb[10].mxu1 }
 0x336   :  { %v3857_v18 = vadd.f32 %v3856_v0, %v10535_v36  ;;  %v3858_v60 = vpop.f32.mrb[11].mxu1 }
 0x337   :  { %v3859_v52 = vadd.f32 %v3858_v60, %v10535_v36 }
 0x338   :  { %v4431_v45 = vmax.f32 %v3857_v18, 0.0 }
 0x339   :  { %v4432_v4 = vmax.f32 %v3859_v52, 0.0  ;;  %v11834_v52 = vld [vmem:[#allocation28_spill] sm:$0xff] }
 0x33a   :  { %v10557_v17 = vmul.f32 %v4431_v45, %v9420_v16  ;;  %v10660_v45 = vpop.permute.xlu0 %5187 }
 0x33b   :  { %v10567_v3 = vmul.f32 %v4432_v4, %v9476_v39 }
 0x33c   :  { %v8081_v42 = vpack.i.bf16 %v10557_v17, %v11814_v41  ;;  %v8101_v58 = vpack.i.bf16 %v10557_v17, %v10543_v2 }
 0x33d   :  { %v8116_v15 = vpack.i.bf16 %v10567_v3, %v10540_v26 }
 0x33e   :  { %8082 = vrot.lane.b32.xlu1 %v8081_v42, %s8466_s25  ;;  %8087 = vrot.lane.b32.xlu0 %v8081_v42, %s8467_s0 }
 0x341   :  { %v3927_v25 = vpop.f32.mrb[12].mxu0 }
 0x342   :  { %v3929_v7 = vpop.f32.mrb[13].mxu0  ;;  %8092 = vrot.lane.b32.xlu1 %v8081_v42, %s8468_s26  ;;  %8097 = vrot.lane.b32.xlu0 %v8081_v42, %s8469_s27  ;;  %v3928_v35 = vadd.f32 %v3927_v25, %v10535_v36  ;;  %v11835_v25 = vld [vmem:[#allocation30_spill] sm:$0xff] }
 0x343   :  { %v3930_v55 = vadd.f32 %v3929_v7, %v10535_v36 }
 0x344   :  { %v4433_v9 = vmax.f32 %v3928_v35, 0.0 }
 0x345   :  { %v4434_v10 = vmax.f32 %v3930_v55, 0.0 }
 0x346   :  { %8102 = vrot.lane.b32.xlu1 %v8101_v58, %s8470_s28  ;;  %8107 = vrot.lane.b32.xlu0 %v8101_v58, %s8471_s29  ;;  %v10579_v14 = vmul.f32 %v4433_v9, %v9494_v47 }
 0x347   :  { %v10593_v44 = vmul.f32 %v4434_v10, %v11828_v27 }
 0x348   :  { %v8136_v63 = vpack.i.bf16 %v10579_v14, %v10567_v3 }
 0x349   :  { %v8156_v38 = vpack.i.bf16 %v10593_v44, %v10579_v14 }
 0x34a   :  { %8112 = vrot.lane.b32.xlu1 %v8101_v58, %s8472_s30  ;;  %8117 = vrot.lane.b32.xlu0 %v8116_v15, %s8470_s28 }
 0x34e   :  { %5583 = vrot.lane.b32.xlu1 %v10557_v17, %s8474_s11  ;;  %8122 = vrot.lane.b32.xlu0 %v8116_v15, %s8471_s29 }
 0x352   :  { %8127 = vrot.lane.b32.xlu1 %v8116_v15, %s8472_s30  ;;  %8137 = vrot.lane.b32.xlu0 %v8136_v63, %s8467_s0 }
 0x356   :  { %5585 = vrot.lane.b32.xlu1 %v10567_v3, %s8474_s11  ;;  %8147 = vrot.lane.b32.xlu0 %v8136_v63, %s8469_s27 }
 0x359   :  { %v3998_v21 = vpop.f32.mrb[12].mxu1 }
 0x35a   :  { %v3999_v43 = vadd.f32 %v3998_v21, %v10535_v36  ;;  %v4000_v37 = vpop.f32.mrb[13].mxu1  ;;  %8132 = vrot.lane.b32.xlu1 %v8136_v63, %s8466_s25  ;;  %5587 = vrot.lane.b32.xlu0 %v10579_v14, %s8474_s11 }
 0x35b   :  { %v4001_v40 = vadd.f32 %v4000_v37, %v10535_v36 }
 0x35c   :  { %v4435_v1 = vmax.f32 %v3999_v43, 0.0 }
 0x35d   :  { %v4436_v8 = vmax.f32 %v4001_v40, 0.0 }
 0x35e   :  { %v10602_v59 = vmul.f32 %v4435_v1, %v11829_v12  ;;  %8142 = vrot.lane.b32.xlu1 %v8136_v63, %s8468_s26  ;;  %8157 = vrot.lane.b32.xlu0 %v8156_v38, %s8471_s29 }
 0x35f   :  { %v10615_v11 = vmul.f32 %v4436_v8, %v11830_v57  ;;  %v11836_v8 = vld [vmem:[#allocation34_spill] sm:$0xff] }
 0x360   :  { %v8166_v61 = vpack.i.bf16 %v10602_v59, %v10593_v44 }
 0x361   :  { %v8196_v49 = vpack.i.bf16 %v10615_v11, %v10602_v59 }
 0x362   :  { %8152 = vrot.lane.b32.xlu1 %v8156_v38, %s8470_s28  ;;  %8167 = vrot.lane.b32.xlu0 %v8166_v61, %s8466_s25 }
 0x365   :  { %v4069_v22 = vpop.f32.mrb[14].mxu0 }
 0x366   :  { %v4070_v33 = vadd.f32 %v4069_v22, %v10535_v36  ;;  %v4071_v24 = vpop.f32.mrb[15].mxu0  ;;  %8162 = vrot.lane.b32.xlu1 %v8156_v38, %s8472_s30  ;;  %8182 = vrot.lane.b32.xlu0 %v8166_v61, %s8469_s27 }
 0x367   :  { %v4072_v48 = vadd.f32 %v4071_v24, %v10535_v36 }
 0x368   :  { %v4437_v56 = vmax.f32 %v4070_v33, 0.0 }
 0x369   :  { %v4438_v19 = vmax.f32 %v4072_v48, 0.0 }
 0x36a   :  { %5589 = vrot.lane.b32.xlu1 %v10593_v44, %s8474_s11  ;;  %5591 = vrot.lane.b32.xlu0 %v10602_v59, %s8474_s11  ;;  %v10622_v46 = vmul.f32 %v4437_v56, %v11831_v51 }
 0x36b   :  { %v10636_v32 = vmul.f32 %v4438_v19, %v11832_v20 }
 0x36c   :  { %v8206_v53 = vpack.i.bf16 %v10622_v46, %v10615_v11 }
 0x36d   :  { %v8221_v23 = vpack.i.bf16 %v10636_v32, %v10622_v46 }
 0x36e   :  { %8172 = vrot.lane.b32.xlu1 %v8166_v61, %s8467_s0  ;;  %8197 = vrot.lane.b32.xlu0 %v8196_v49, %s8472_s30 }
 0x372   :  { %8177 = vrot.lane.b32.xlu1 %v8166_v61, %s8468_s26  ;;  %8207 = vrot.lane.b32.xlu0 %v8206_v53, %s8467_s0 }
 0x376   :  { %8187 = vrot.lane.b32.xlu1 %v8196_v49, %s8470_s28  ;;  %8217 = vrot.lane.b32.xlu0 %v8206_v53, %s8469_s27 }
 0x37a   :  { %8192 = vrot.lane.b32.xlu1 %v8196_v49, %s8471_s29  ;;  %5595 = vrot.lane.b32.xlu0 %v10622_v46, %s8474_s11 }
 0x37d   :  { %v4140_v29 = vpop.f32.mrb[14].mxu1 }
 0x37e   :  { %v4141_v50 = vadd.f32 %v4140_v29, %v10535_v36  ;;  %v4142_v34 = vpop.f32.mrb[15].mxu1  ;;  %5593 = vrot.lane.b32.xlu1 %v10615_v11, %s8474_s11  ;;  %8222 = vrot.lane.b32.xlu0 %v8221_v23, %s8470_s28 }
 0x37f   :  { %v4143_v31 = vadd.f32 %v4142_v34, %v10535_v36 }
 0x380   :  { %v4439_v54 = vmax.f32 %v4141_v50, 0.0 }
 0x381   :  { %v4440_v5 = vmax.f32 %v4143_v31, 0.0 }
 0x382   :  { %v10648_v30 = vmul.f32 %v4439_v54, %v11833_v13  ;;  %8202 = vrot.lane.b32.xlu1 %v8206_v53, %s8466_s25  ;;  %8232 = vrot.lane.b32.xlu0 %v8221_v23, %s8472_s30 }
 0x383   :  { %v10663_v42 = vmul.f32 %v4440_v5, %v11834_v52 }
 0x384   :  { %v8241_v62 = vpack.i.bf16 %v10648_v30, %v10636_v32 }
 0x385   :  { %v8266_v35 = vpack.i.bf16 %v10663_v42, %v10648_v30 }
 0x386   :  { %8212 = vrot.lane.b32.xlu1 %v8206_v53, %s8468_s26  ;;  %8242 = vrot.lane.b32.xlu0 %v8241_v62, %s8467_s0  ;;  %v11837_v53 = vld [vmem:[#allocation33_spill] sm:$0xff] }
 0x389   :  { %v4211_v0 = vpop.f32.mrb[16].mxu0 }
 0x38a   :  { %v4212_v18 = vadd.f32 %v4211_v0, %v10535_v36  ;;  %v4213_v60 = vpop.f32.mrb[17].mxu0  ;;  %8227 = vrot.lane.b32.xlu1 %v8221_v23, %s8471_s29  ;;  %8252 = vrot.lane.b32.xlu0 %v8241_v62, %s8469_s27 }
 0x38b   :  { %v4214_v9 = vadd.f32 %v4213_v60, %v10535_v36 }
 0x38c   :  { %v4441_v4 = vmax.f32 %v4212_v18, 0.0 }
 0x38d   :  { %v4442_v38 = vmax.f32 %v4214_v9, 0.0  ;;  %v11838_v9 = vld [vmem:[#allocation36_spill] sm:$0xff] }
 0x38e   :  { %5597 = vrot.lane.b32.xlu1 %v10636_v32, %s8474_s11  ;;  %5599 = vrot.lane.b32.xlu0 %v10648_v30, %s8474_s11  ;;  %v10670_v7 = vmul.f32 %v4441_v4, %v11835_v25 }
 0x38f   :  { %v10700_v22 = vmul.f32 %v4442_v38, %v11836_v8 }
 0x390   :  { %v8276_v55 = vpack.i.bf16 %v10670_v7, %v10663_v42 }
 0x391   :  { %v10674_v58 = vpop.permute.xlu0 %5579  ;;  %v8291_v48 = vpack.i.bf16 %v10700_v22, %v10670_v7 }
 0x392   :  { %8237 = vrot.lane.b32.xlu1 %v8241_v62, %s8466_s25  ;;  %8267 = vrot.lane.b32.xlu0 %v8266_v35, %s8472_s30 }
 0x394   :  { %v10679_v15 = vpop.permute.xlu1 %8062 }
 0x395   :  { %v11758_v63 = vunpack.i.h.bf16 %v10679_v15  ;;  %v8064_v10 = vunpack.i.l.bf16 %v10679_v15  ;;  %v10685_v21 = vpop.permute.xlu0 %8067 }
 0x396   :  { %v11757_v43 = vunpack.i.h.bf16 %v10685_v21  ;;  %v8069_v37 = vunpack.i.l.bf16 %v10685_v21  ;;  %8247 = vrot.lane.b32.xlu1 %v8241_v62, %s8468_s26  ;;  %8277 = vrot.lane.b32.xlu0 %v8276_v55, %s8467_s0 }
 0x397   :  { %v4574_v1 = vsel %vm137_vm0, %v8064_v10, %v11758_v63 }
 0x398   :  { %v4718_v40 = vsel %vm282_vm1, %v8069_v37, %v11757_v43  ;;  %v10723_v31 = vpop.permute.xlu1 %8072 }
 0x399   :  { %v7188_v61 = vpack.c.bf16 %v4718_v40, %v4574_v1  ;;  %v10714_v23 = vpop.permute.xlu0 %8077  ;;  %v11760_v18 = vunpack.i.h.bf16 %v10723_v31  ;;  %v8074_v60 = vunpack.i.l.bf16 %v10723_v31 }
 0x39a   :  { %8257 = vrot.lane.b32.xlu1 %v8266_v35, %s8470_s28  ;;  %8287 = vrot.lane.b32.xlu0 %v8276_v55, %s8469_s27  ;;  %v11759_v4 = vunpack.i.h.bf16 %v10714_v23 }
 0x39b   :  { %7189 = vmatprep.subr.bf16.mxu0 %v7188_v61 }
 0x39d   :  { %v4282_v33 = vpop.f32.mrb[16].mxu1  ;;  %v10725_v62 = vpop.permute.xlu0 %5581 }
 0x39e   :  { %v4283_v24 = vadd.f32 %v4282_v33, %v10535_v36  ;;  %v4284_v56 = vpop.f32.mrb[17].mxu1  ;;  %8262 = vrot.lane.b32.xlu1 %v8266_v35, %s8471_s29  ;;  %5603 = vrot.lane.b32.xlu0 %v10670_v7, %s8474_s11  ;;  %v8079_v35 = vunpack.i.l.bf16 %v10714_v23 }
 0x39f   :  { %v4285_v29 = vadd.f32 %v4284_v56, %v10535_v36 }
 0x3a0   :  { %v4443_v49 = vmax.f32 %v4283_v24, 0.0 }
 0x3a1   :  { %v4444_v5 = vmax.f32 %v4285_v29, 0.0  ;;  %v5006_v29 = vsel %vm572_vm3, %v8079_v35, %v11759_v4 }
 0x3a2   :  { %5601 = vrot.lane.b32.xlu1 %v10663_v42, %s8474_s11  ;;  %8292 = vrot.lane.b32.xlu0 %v8291_v48, %s8470_s28  ;;  %v10712_v19 = vmul.f32 %v4443_v49, %v11837_v53 }
 0x3a4   :  { %v8311_v50 = vpack.i.bf16 %v10712_v19, %v10700_v22 }
 0x3a6   :  { %8272 = vrot.lane.b32.xlu1 %v8276_v55, %s8466_s25  ;;  %8302 = vrot.lane.b32.xlu0 %v8291_v48, %s8472_s30 }
 0x3a9   :  { %v4353_v34 = vpop.f32.mrb[18].mxu0 }
 0x3aa   :  { %v4355_v54 = vpop.f32.mrb[19].mxu0  ;;  %8282 = vrot.lane.b32.xlu1 %v8276_v55, %s8468_s26  ;;  %8312 = vrot.lane.b32.xlu0 %v8311_v50, %s8467_s0  ;;  %v4354_v0 = vadd.f32 %v4353_v34, %v10535_v36  ;;  %v10735_v55 = vmul.f32 %v4444_v5, %v11838_v9  ;;  %v11839_v34 = vld [vmem:[#allocation38_spill] sm:$0xff] }
 0x3ac   :  { %v4445_v1 = vmax.f32 %v4354_v0, 0.0 }
 0x3ae   :  { %8297 = vrot.lane.b32.xlu1 %v8291_v48, %s8471_s29  ;;  %8322 = vrot.lane.b32.xlu0 %v8311_v50, %s8469_s27  ;;  %v4862_v48 = vsel %vm427_vm2, %v8074_v60, %v11760_v18  ;;  %v10756_v5 = vmul.f32 %v4445_v1, %v11839_v34 }
 0x3af   :  { %v7192_v1 = vpack.c.bf16 %v5006_v29, %v4862_v48  ;;  %v4356_v48 = vadd.f32 %v4355_v54, %v10535_v36 }
 0x3b0   :  { %v10737_v38 = vpop.permute.xlu1 %8082  ;;  %v10739_v40 = vpop.permute.xlu0 %8087  ;;  %v10776_v18 = vpack.i.bf16 %v10756_v5, %v10735_v55 }
 0x3b1   :  { %v8084_v61 = vunpack.i.l.bf16 %v10737_v38  ;;  %v8089_v33 = vunpack.i.l.bf16 %v10739_v40 }
 0x3b2   :  { %5605 = vrot.lane.b32.xlu1 %v10700_v22, %s8474_s11  ;;  %5607 = vrot.lane.b32.xlu0 %v10712_v19, %s8474_s11 }
 0x3b3   :  { %v4573_v24 = vsel %vm137_vm0, %v8084_v61, %v8064_v10  ;;  %v4717_v56 = vsel %vm282_vm1, %v8089_v33, %v8069_v37  ;;  %v4424_v49 = vpop.f32.mrb[18].mxu1  ;;  %v8336_v10 = vpack.i.bf16 %v10735_v55, %v10712_v19 }
 0x3b4   :  { %v7190_v0 = vpack.c.bf16 %v4717_v56, %v4573_v24  ;;  %v10758_v43 = vpop.f32.mrb[19].mxu1  ;;  %v10760_v63 = vpop.permute.xlu1 %8092 }
 0x3b5   :  { %v8094_v37 = vunpack.i.l.bf16 %v10760_v63  ;;  %v10765_v61 = vpop.permute.xlu0 %8097 }
 0x3b6   :  { %v8099_v33 = vunpack.i.l.bf16 %v10765_v61  ;;  %8307 = vrot.lane.b32.xlu1 %v8311_v50, %s8466_s25  ;;  %8337 = vrot.lane.b32.xlu0 %v8336_v10, %s8472_s30 }
 0x3b7   :  { %v4861_v24 = vsel %vm427_vm2, %v8094_v37, %v8074_v60  ;;  %7191 = vmatpush1.bf16.msra.mxu0 %v7190_v0 }
 0x3b8   :  { %v5005_v56 = vsel %vm572_vm3, %v8099_v33, %v8079_v35  ;;  %7193 = vmatprep.subr.bf16.mxu0 %v7192_v1  ;;  %v10772_v4 = vpop.permute.xlu1 %8102 }
 0x3b9   :  { %v7194_v34 = vpack.c.bf16 %v5005_v56, %v4861_v24  ;;  %v11761_v9 = vunpack.i.h.bf16 %v10772_v4  ;;  %v10779_v53 = vpop.permute.xlu0 %8107  ;;  %v8104_v8 = vunpack.i.l.bf16 %v10772_v4  ;;  %v4446_v56 = vmax.f32 %v4356_v48, 0.0  ;;  %v11840_v48 = vld [vmem:[#allocation42_spill] sm:$0xff] }
 0x3ba   :  { %8317 = vrot.lane.b32.xlu1 %v8311_v50, %s8468_s26  ;;  %8347 = vrot.lane.b32.xlu0 %v10776_v18, %s8467_s0  ;;  %v11762_v60 = vunpack.i.h.bf16 %v10779_v53  ;;  %v8109_v35 = vunpack.i.l.bf16 %v10779_v53 }
 0x3bb   :  { %7195 = vmatpush1.bf16.msra.mxu0 %v7194_v34  ;;  %v5190_v0 = vsel %vm757_vm4, %v8104_v8, %v11761_v9  ;;  %v4425_v9 = vadd.f32 %v4424_v49, %v10535_v36 }
 0x3bc   :  { %v10788_v29 = vpop.permute.xlu1 %8112  ;;  %v7196_v1 = vpack.c.bf16 %v5190_v0, %v10543_v2  ;;  %v5334_v54 = vsel %vm902_vm5, %v8109_v35, %v11762_v60  ;;  %v10820_v60 = vmul.f32 %v4446_v56, %v11840_v48  ;;  %v8090_v48 = vunpack.i.h.bf16 %v10739_v40 }
 0x3bd   :  { %v11763_v37 = vunpack.i.h.bf16 %v10788_v29  ;;  %v8114_v50 = vunpack.i.l.bf16 %v10788_v29  ;;  %v10795_v33 = vpop.permute.xlu0 %8117  ;;  %v4447_v49 = vmax.f32 %v4425_v9, 0.0 }
 0x3be   :  { %v8119_v24 = vunpack.i.l.bf16 %v10795_v33  ;;  %8327 = vrot.lane.b32.xlu1 %v8336_v10, %s8470_s28  ;;  %8357 = vrot.lane.b32.xlu0 %v10776_v18, %s8469_s27  ;;  %v8361_v56 = vpack.i.bf16 %v10820_v60, %v10756_v5 }
 0x3bf   :  { %7197 = vmatprep.subr.bf16.mxu0 %v7196_v1  ;;  %v5478_v34 = vsel %vm1047_vm6, %v8114_v50, %v11763_v37  ;;  %v8085_v37 = vunpack.i.h.bf16 %v10737_v38 }
 0x3c0   :  { %v5189_v2 = vsel %vm757_vm4, %v8119_v24, %v8104_v8  ;;  %v10810_v0 = vpop.permute.xlu1 %5583  ;;  %v7200_v25 = vpack.c.bf16 %v5478_v34, %v5334_v54  ;;  %v11841_v54 = vld [vmem:[#allocation41_spill] sm:$0xff] }
 0x3c1   :  { %v7198_v52 = vpack.c.bf16 %v5189_v2, %v10540_v26  ;;  %v10813_v13 = vpop.permute.xlu0 %8122  ;;  %v10834_v34 = vmul.f32 %v4447_v49, %v11841_v54 }
 0x3c2   :  { %8332 = vrot.lane.b32.xlu1 %v8336_v10, %s8471_s29  ;;  %5467 = vrot.lane.b32.xlu0 %v10756_v5, %s8472_s30  ;;  %v8124_v1 = vunpack.i.l.bf16 %v10813_v13 }
 0x3c3   :  { %7199 = vmatpush1.bf16.msra.mxu0 %v7198_v52  ;;  %v10857_v38 = vpack.i.bf16 %v10834_v34, %v10820_v60 }
 0x3c4   :  { %7201 = vmatprep.subr.bf16.mxu0 %v7200_v25  ;;  %v10822_v8 = vpop.permute.xlu1 %8127  ;;  %v5333_v10 = vsel %vm902_vm5, %v8124_v1, %v8109_v35  ;;  %v4427_v1 = vadd.f32 %v10758_v43, %v10535_v36  ;;  %v5621_v36 = vsel %vm1192_vm7, %v10674_v58, %v10725_v62  ;;  %v11842_v43 = vunpack.i.h.bf16 %v10679_v15 }
 0x3c5   :  { %v8129_v24 = vunpack.i.l.bf16 %v10822_v8  ;;  %v10825_v26 = vpop.permute.xlu0 %8137  ;;  %v8100_v35 = vunpack.i.h.bf16 %v10765_v61 }
 0x3c6   :  { %5609 = vrot.lane.b32.xlu1 %v10735_v55, %s8474_s11  ;;  %5611 = vrot.lane.b32.xlu0 %v10756_v5, %s8474_s11 }
 0x3c7   :  { %v5477_v52 = vsel %vm1047_vm6, %v8129_v24, %v8114_v50  ;;  %v5622_v50 = vsel %vm1192_vm7, %v10725_v62, %v10810_v0 }
 0x3c8   :  { %v7202_v25 = vpack.c.bf16 %v5477_v52, %v5333_v10  ;;  %v10836_v9 = vpop.permute.xlu1 %5585  ;;  %v10865_v10 = vld [vmem:[%s11697_s6] sm:$0xff]  ;;  %v4575_v52 = vsel %vm137_vm0, %v11842_v43, %v8085_v37 }
 0x3c9   :  { %v10840_v2 = vpop.permute.xlu0 %8147 }
 0x3ca   :  { %8342 = vrot.lane.b32.xlu1 %v10776_v18, %s8466_s25  ;;  %8362 = vrot.lane.b32.xlu0 %v8361_v56, %s8470_s28  ;;  %v11768_v58 = vunpack.i.l.bf16 %v10840_v2 }
 0x3cb   :  { %7203 = vmatpush1.bf16.msra.mxu0 %v7202_v25  ;;  %v11843_v25 = vunpack.i.h.bf16 %v10685_v21  ;;  %v11844_v21 = vunpack.i.l.bf16 %v10825_v26 }
 0x3cc   :  { %5887 = vmatprep.subr.mxu0 %v5622_v50  ;;  %v10853_v49 = vpop.permute.xlu1 %8132  ;;  %v8095_v50 = vunpack.i.h.bf16 %v10760_v63  ;;  %v4448_v63 = vmax.f32 %v4427_v1, 0.0 }
 0x3cd   :  { %v11764_v40 = vunpack.i.l.bf16 %v10853_v49  ;;  %v10860_v24 = vpop.permute.xlu0 %5587  ;;  %v4719_v56 = vsel %vm282_vm1, %v11843_v25, %v8090_v48  ;;  %v4720_v62 = vsel %vm282_vm1, %v8090_v48, %v11844_v21  ;;  %v11846_v48 = vunpack.i.h.bf16 %v10714_v23 }
 0x3ce   :  { %8352 = vrot.lane.b32.xlu1 %v10776_v18, %s8468_s26  ;;  %8372 = vrot.lane.b32.xlu0 %v10857_v38, %s8467_s0 }
 0x3cf   :  { %5888 = vmatpush1.msra.mxu0 %v5621_v36  ;;  %v4576_v15 = vsel %vm137_vm0, %v8085_v37, %v11764_v40  ;;  %v7206_v36 = vpack.c.bf16 %v4719_v56, %v4575_v52  ;;  %v11845_v37 = vunpack.i.h.bf16 %v10723_v31  ;;  %v5007_v1 = vsel %vm572_vm3, %v11846_v48, %v8100_v35  ;;  %v11847_v56 = vld [vmem:[#allocation44_spill] sm:$0xff] }
 0x3d0   :  { %v10889_v43 = vpop.permute.xlu1 %8142  ;;  %v7204_v18 = vpack.c.bf16 %v4720_v62, %v4576_v15  ;;  %6858 = vmatmul.mubr.msk.f32.vlgmr.msra.gmra.mrb[20].mxu0 %vm1440_vm8, %v10865_v10  ;;  %v8120_v15 = vunpack.i.h.bf16 %v10795_v33  ;;  %v5008_v31 = vsel %vm572_vm3, %v8100_v35, %v11768_v58  ;;  %v10915_v21 = vmul.f32 %v4448_v63, %v11847_v56 }
 0x3d1   :  { %v8144_v61 = vunpack.i.l.bf16 %v10889_v43  ;;  %v10894_v25 = vpop.permute.xlu0 %8157  ;;  %6077 = vmatprep.mubr.f32.mxu0 %v11814_v41  ;;  %v4863_v40 = vsel %vm427_vm2, %v11845_v37, %v8095_v50  ;;  %v11848_v35 = vunpack.i.h.bf16 %v10772_v4  ;;  %v8130_v63 = vunpack.i.h.bf16 %v10822_v8 }
 0x3d2   :  { %5323 = vrot.lane.b32.xlu1 %v10756_v5, %s8471_s29  ;;  %8382 = vrot.lane.b32.xlu0 %v10857_v38, %s8469_s27  ;;  %v7210_v33 = vpack.c.bf16 %v5007_v1, %v4863_v40 }
 0x3d3   :  { %7205 = vmatprep.subr.bf16.mxu1 %v7204_v18  ;;  %v4864_v52 = vsel %vm427_vm2, %v8095_v50, %v8144_v61  ;;  %v5191_v50 = vsel %vm757_vm4, %v11848_v35, %v8120_v15  ;;  %v11765_v18 = vunpack.i.l.bf16 %v10894_v25  ;;  %v11850_v35 = vunpack.i.h.bf16 %v10779_v53 }
 0x3d4   :  { %7207 = vmatpush1.bf16.msra.mxu1 %v7206_v36  ;;  %v10917_v62 = vpop.permute.xlu1 %8152  ;;  %v7208_v23 = vpack.c.bf16 %v5008_v31, %v4864_v52  ;;  %v8125_v52 = vunpack.i.h.bf16 %v10813_v13  ;;  %v7214_v8 = vpack.c.bf16 %v5191_v50, %v10557_v17  ;;  %v5624_v53 = vsel %vm1192_vm7, %v10836_v9, %v10860_v24 }
 0x3d5   :  { %v11767_v37 = vunpack.i.l.bf16 %v10917_v62  ;;  %v10920_v48 = vpop.permute.xlu0 %8167 }
 0x3d6   :  { %8367 = vrot.lane.b32.xlu1 %v10857_v38, %s8466_s25  ;;  %4715 = vrot.lane.b32.xlu0 %v10915_v21, %s8467_s0  ;;  %v5335_v50 = vsel %vm902_vm5, %v11850_v35, %v8125_v52 }
 0x3d7   :  { %7209 = vmatprep.subr.bf16.mxu1 %v7208_v23  ;;  %v5192_v36 = vsel %vm757_vm4, %v8120_v15, %v11767_v37  ;;  %v11849_v15 = vunpack.i.h.bf16 %v10788_v29  ;;  %v8150_v37 = vunpack.i.h.bf16 %v10840_v2 }
 0x3d8   :  { %7211 = vmatpush1.bf16.msra.mxu1 %v7210_v33  ;;  %v10934_v40 = vpop.permute.xlu1 %8162  ;;  %v7212_v1 = vpack.c.bf16 %v5192_v36, %v10567_v3  ;;  %v5336_v3 = vsel %vm902_vm5, %v8125_v52, %v11765_v18  ;;  %v8406_v52 = vpack.i.bf16 %v11814_v41, %v10915_v21  ;;  %v11852_v18 = vunpack.i.l.bf16 %v10825_v26 }
 0x3d9   :  { %v11766_v4 = vunpack.i.l.bf16 %v10934_v40  ;;  %v10939_v31 = vpop.permute.xlu0 %8182  ;;  %v5479_v23 = vsel %vm1047_vm6, %v11849_v15, %v8130_v63  ;;  %v8140_v15 = vunpack.i.h.bf16 %v10825_v26 }
 0x3da   :  { %8377 = vrot.lane.b32.xlu1 %v10857_v38, %s8468_s26  ;;  %5003 = vrot.lane.b32.xlu0 %v10915_v21, %s8469_s27  ;;  %v7218_v36 = vpack.c.bf16 %v5479_v23, %v5335_v50  ;;  %v8145_v50 = vunpack.i.h.bf16 %v10889_v43  ;;  %v11853_v43 = vunpack.i.l.bf16 %v10840_v2 }
 0x3db   :  { %7213 = vmatprep.subr.bf16.mxu1 %v7212_v1  ;;  %v5480_v13 = vsel %vm1047_vm6, %v8130_v63, %v11766_v4  ;;  %v8135_v1 = vunpack.i.h.bf16 %v10853_v49  ;;  %v8169_v63 = vunpack.i.l.bf16 %v10920_v48  ;;  %v4721_v4 = vsel %vm282_vm1, %v11852_v18, %v8140_v15 }
 0x3dc   :  { %7215 = vmatpush1.bf16.msra.mxu1 %v7214_v8  ;;  %v10955_v17 = vpop.permute.xlu1 %5589  ;;  %v7216_v33 = vpack.c.bf16 %v5480_v13, %v5336_v3  ;;  %v5623_v13 = vsel %vm1192_vm7, %v10810_v0, %v10836_v9  ;;  %v4865_v26 = vsel %vm427_vm2, %v8144_v61, %v8145_v50  ;;  %v8155_v18 = vunpack.i.h.bf16 %v10917_v62 }
 0x3dd   :  { %v10960_v29 = vpop.permute.xlu0 %5591  ;;  %v5009_v61 = vsel %vm572_vm3, %v11853_v43, %v8150_v37 }
 0x3de   :  { %4571 = vrot.lane.b32.xlu1 %v10915_v21, %s8466_s25  ;;  %8397 = vrot.lane.b32.xlu0 %v10857_v38, %s8472_s30 }
 0x3df   :  { %7217 = vmatprep.subr.bf16.mxu1 %v7216_v33  ;;  %v11851_v33 = vunpack.i.l.bf16 %v10853_v49  ;;  %v8386_v49 = vpack.i.bf16 %v10915_v21, %v10834_v34 }
 0x3e0   :  { %7219 = vmatpush1.bf16.msra.mxu1 %v7218_v36  ;;  %v10968_v8 = vpop.permute.xlu1 %8172  ;;  %v11769_v36 = vunpack.i.l.bf16 %v10939_v31 }
 0x3e1   :  { %v8174_v23 = vunpack.i.l.bf16 %v10968_v8  ;;  %v10977_v3 = vpop.permute.xlu0 %8197  ;;  %5958 = vmatprep.subr.mxu1 %v5624_v53  ;;  %v4577_v35 = vsel %vm137_vm0, %v11851_v33, %v8135_v1  ;;  %v4578_v53 = vsel %vm137_vm0, %v8135_v1, %v8169_v63 }
 0x3e2   :  { %4859 = vrot.lane.b32.xlu1 %v10915_v21, %s8468_s26  ;;  %8407 = vrot.lane.b32.xlu0 %v8406_v52, %s8472_s30 }
 0x3e3   :  { %v4722_v0 = vsel %vm282_vm1, %v8140_v15, %v8174_v23 }
 0x3e4   :  { %5959 = vmatpush1.msra.mxu1 %v5623_v13  ;;  %v10996_v9 = vpop.permute.xlu1 %8177  ;;  %v7220_v33 = vpack.c.bf16 %v4722_v0, %v4578_v53  ;;  %v7222_v13 = vpack.c.bf16 %v4721_v4, %v4577_v35  ;;  %v5010_v4 = vsel %vm572_vm3, %v8150_v37, %v11769_v36  ;;  %v8165_v36 = vunpack.i.h.bf16 %v10934_v40 }
 0x3e5   :  { %v8179_v58 = vunpack.i.l.bf16 %v10996_v9  ;;  %v11005_v1 = vpop.permute.xlu0 %8207  ;;  %6859 = vmatmul.mubr.msk.f32.vlgmr.msra.gmra.mrb[20].mxu1 %vm1440_vm8, %v10865_v10 }
 0x3e6   :  { %8387 = vrot.lane.b32.xlu1 %v8386_v49, %s8470_s28  ;;  %5615 = vrot.lane.b32.xlu0 %v10834_v34, %s8474_s11 }
 0x3e7   :  { %7221 = vmatprep.subr.bf16.mxu0 %v7220_v33  ;;  %v4866_v15 = vsel %vm427_vm2, %v8145_v50, %v8179_v58  ;;  %6148 = vmatprep.mubr.f32.mxu1 %v11814_v41  ;;  %v7226_v33 = vpack.c.bf16 %v5009_v61, %v4865_v26  ;;  %v11854_v50 = vunpack.i.l.bf16 %v10917_v62  ;;  %v8160_v62 = vunpack.i.h.bf16 %v10894_v25 }
 0x3e8   :  { %7223 = vmatpush1.bf16.msra.mxu0 %v7222_v13  ;;  %v11023_v35 = vpop.permute.xlu1 %8187  ;;  %v7224_v53 = vpack.c.bf16 %v5010_v4, %v4866_v15  ;;  %v11770_v15 = vunpack.i.l.bf16 %v10977_v3 }
 0x3e9   :  { %v11772_v0 = vunpack.i.l.bf16 %v11023_v35  ;;  %v11029_v49 = vpop.permute.xlu0 %8217  ;;  %v5193_v13 = vsel %vm757_vm4, %v11854_v50, %v8155_v18 }
 0x3ea   :  { %8392 = vrot.lane.b32.xlu1 %v10857_v38, %s8471_s29  ;;  %7225 = vmatprep.subr.bf16.mxu0 %v7224_v53  ;;  %v7230_v53 = vpack.c.bf16 %v5193_v13, %v10579_v14  ;;  %v11856_v14 = vunpack.i.l.bf16 %v10894_v25  ;;  %v5626_v25 = vsel %vm1192_vm7, %v10955_v17, %v10960_v29 }
 0x3eb   :  { %v5194_v2 = vsel %vm757_vm4, %v8155_v18, %v11772_v0  ;;  %5619 = vrot.lane.b32.xlu0 %v11814_v41, %s8474_s11  ;;  %v11855_v18 = vunpack.i.l.bf16 %v10934_v40 }
 0x3ec   :  { %7227 = vmatpush1.bf16.msra.mxu0 %v7226_v33  ;;  %v11043_v37 = vpop.permute.xlu1 %8192  ;;  %v7228_v38 = vpack.c.bf16 %v5194_v2, %v10593_v44  ;;  %v5482_v44 = vsel %vm1047_vm6, %v8165_v36, %v11770_v15  ;;  %v8175_v2 = vunpack.i.h.bf16 %v10968_v8 }
 0x3ed   :  { %v11771_v26 = vunpack.i.l.bf16 %v11043_v37  ;;  %v11048_v4 = vpop.permute.xlu0 %5595  ;;  %v5481_v43 = vsel %vm1047_vm6, %v11855_v18, %v8165_v36  ;;  %v8170_v36 = vunpack.i.h.bf16 %v10920_v48 }
 0x3ee   :  { %8402 = vrot.lane.b32.xlu1 %v8406_v52, %s8471_s29  ;;  %7229 = vmatprep.subr.bf16.mxu0 %v7228_v38  ;;  %v5337_v52 = vsel %vm902_vm5, %v11856_v14, %v8160_v62  ;;  %v8209_v38 = vunpack.i.l.bf16 %v11005_v1 }
 0x3ef   :  { %v5338_v61 = vsel %vm902_vm5, %v8160_v62, %v11771_v26  ;;  %v7234_v40 = vpack.c.bf16 %v5481_v43, %v5337_v52  ;;  %v5625_v43 = vsel %vm1192_vm7, %v10860_v24, %v10955_v17  ;;  %v4579_v24 = vsel %vm137_vm0, %v8169_v63, %v8170_v36 }
 0x3f0   :  { %7231 = vmatpush1.bf16.msra.mxu0 %v7230_v53  ;;  %v11061_v33 = vpop.permute.xlu1 %5593  ;;  %v7232_v50 = vpack.c.bf16 %v5482_v44, %v5338_v61  ;;  %v4723_v61 = vsel %vm282_vm1, %v8174_v23, %v8175_v2  ;;  %v8180_v44 = vunpack.i.h.bf16 %v10996_v9  ;;  %v8185_v17 = vunpack.i.h.bf16 %v10939_v31 }
 0x3f1   :  { %v11066_v13 = vpop.permute.xlu0 %8222  ;;  %v7238_v15 = vpack.c.bf16 %v4723_v61, %v4579_v24  ;;  %v8190_v26 = vunpack.i.h.bf16 %v11023_v35  ;;  %v11857_v61 = vunpack.i.l.bf16 %v10939_v31 }
 0x3f2   :  { %5613 = vrot.lane.b32.xlu1 %v10820_v60, %s8474_s11  ;;  %7233 = vmatprep.subr.bf16.mxu0 %v7232_v50  ;;  %v11773_v50 = vunpack.i.l.bf16 %v11029_v49  ;;  %v8224_v14 = vunpack.i.l.bf16 %v11066_v13  ;;  %v4867_v48 = vsel %vm427_vm2, %v8179_v58, %v8180_v44 }
 0x3f3   :  { %v5011_v9 = vsel %vm572_vm3, %v11857_v61, %v8185_v17 }
 0x3f4   :  { %7235 = vmatpush1.bf16.msra.mxu0 %v7234_v40  ;;  %v11073_v53 = vpop.permute.xlu1 %8202  ;;  %v4724_v40 = vsel %vm282_vm1, %v8175_v2, %v8209_v38 }
 0x3f5   :  { %v8204_v62 = vunpack.i.l.bf16 %v11073_v53  ;;  %v11079_v18 = vpop.permute.xlu0 %8232  ;;  %6029 = vmatprep.subr.mxu0 %v5626_v25  ;;  %v5862_v25 = vld [vmem:[%s11698_s7] sm:$0xff] }
 0x3f6   :  { %5617 = vrot.lane.b32.xlu1 %v10915_v21, %s8474_s11 }
 0x3f7   :  { %v4580_v52 = vsel %vm137_vm0, %v8170_v36, %v8204_v62  ;;  %v5012_v36 = vsel %vm572_vm3, %v8185_v17, %v11773_v50  ;;  %v11858_v50 = vunpack.i.l.bf16 %v11023_v35  ;;  %v8200_v17 = vunpack.i.h.bf16 %v10977_v3 }
 0x3f8   :  { %6030 = vmatpush1.msra.mxu0 %v5625_v43  ;;  %v11100_v8 = vpop.permute.xlu1 %8212  ;;  %v7236_v23 = vpack.c.bf16 %v4724_v40, %v4580_v52  ;;  %v5196_v43 = vsel %vm757_vm4, %v8190_v26, %v8224_v14  ;;  %v7242_v40 = vpack.c.bf16 %v5011_v9, %v4867_v48 }
 0x3f9   :  { %v8214_v0 = vunpack.i.l.bf16 %v11100_v8  ;;  %v11107_v2 = vpop.permute.xlu0 %8242  ;;  %6860 = vmatmul.mubr.msk.f32.vlgmr.msra.gmra.mrb[22].mxu0 %vm1440_vm8, %v10865_v10  ;;  %v7244_v31 = vpack.c.bf16 %v5196_v43, %v10615_v11  ;;  %v11859_v11 = vunpack.i.l.bf16 %v11043_v37 }
 0x3fa   :  { %7237 = vmatprep.subr.bf16.mxu1 %v7236_v23  ;;  %6219 = vmatprep.mubr.f32.mxu0 %v11814_v41  ;;  %v8244_v9 = vunpack.i.l.bf16 %v11107_v2 }
 0x3fb   :  { %7239 = vmatpush1.bf16.msra.mxu1 %v7238_v15  ;;  %v4868_v63 = vsel %vm427_vm2, %v8180_v44, %v8214_v0  ;;  %5865 = vperm.xlu1 %8411, %v5862_v25   ;;  %v8195_v15 = vunpack.i.h.bf16 %v11043_v37  ;;  %v11774_v44 = vunpack.i.l.bf16 %v11079_v18  ;;  %v5195_v25 = vsel %vm757_vm4, %v11858_v50, %v8190_v26 }
 0x3fc   :  { %v11125_v58 = vpop.permute.xlu1 %8227  ;;  %v7240_v52 = vpack.c.bf16 %v5012_v36, %v4868_v63  ;;  %v7246_v36 = vpack.c.bf16 %v5195_v25, %v10602_v59  ;;  %v8205_v50 = vunpack.i.h.bf16 %v11073_v53 }
 0x3fd   :  { %v8229_v24 = vunpack.i.l.bf16 %v11125_v58  ;;  %v11130_v23 = vpop.permute.xlu0 %8252  ;;  %v5484_v35 = vsel %vm1047_vm6, %v8200_v17, %v11774_v44  ;;  %v5339_v26 = vsel %vm902_vm5, %v11859_v11, %v8195_v15 }
 0x3fe   :  { %7241 = vmatprep.subr.bf16.mxu1 %v7240_v52  ;;  %v11860_v52 = vunpack.i.l.bf16 %v10977_v3  ;;  %v4581_v53 = vsel %vm137_vm0, %v8204_v62, %v8205_v50  ;;  %v5628_v3 = vsel %vm1192_vm7, %v11061_v33, %v11048_v4 }
 0x3ff   :  { %7243 = vmatpush1.bf16.msra.mxu1 %v7242_v40  ;;  %v5340_v48 = vsel %vm902_vm5, %v8195_v15, %v8229_v24  ;;  %v8210_v40 = vunpack.i.h.bf16 %v11005_v1  ;;  %v8215_v15 = vunpack.i.h.bf16 %v11100_v8  ;;  %v8220_v8 = vunpack.i.h.bf16 %v11029_v49 }
 0x400   :  { %v11140_v63 = vpop.permute.xlu1 %5597  ;;  %7245 = vmatprep.subr.bf16.mxu1 %v7244_v31  ;;  %v7248_v43 = vpack.c.bf16 %v5484_v35, %v5340_v48  ;;  %v5483_v59 = vsel %vm1047_vm6, %v11860_v52, %v8200_v17  ;;  %v8254_v48 = vunpack.i.l.bf16 %v11130_v23 }
 0x401   :  { %v11143_v61 = vpop.permute.xlu0 %5599  ;;  %v7250_v31 = vpack.c.bf16 %v5483_v59, %v5339_v26  ;;  %v4725_v62 = vsel %vm282_vm1, %v8209_v38, %v8210_v40  ;;  %v8225_v59 = vunpack.i.h.bf16 %v11066_v13  ;;  %v4869_v1 = vsel %vm427_vm2, %v8214_v0, %v8215_v15 }
 0x402   :  { %v7254_v26 = vpack.c.bf16 %v4725_v62, %v4581_v53 }
 0x403   :  { %7247 = vmatpush1.bf16.msra.mxu1 %v7246_v36  ;;  %v4726_v36 = vsel %vm282_vm1, %v8210_v40, %v8244_v9  ;;  %v5014_v40 = vsel %vm572_vm3, %v8220_v8, %v8254_v48 }
 0x404   :  { %v11157_v25 = vpop.permute.xlu1 %8237  ;;  %7249 = vmatprep.subr.bf16.mxu1 %v7248_v43 }
 0x405   :  { %v8239_v37 = vunpack.i.l.bf16 %v11157_v25  ;;  %v11160_v44 = vpop.permute.xlu0 %8267 }
 0x407   :  { %7251 = vmatpush1.bf16.msra.mxu1 %v7250_v31  ;;  %v4582_v17 = vsel %vm137_vm0, %v8205_v50, %v8239_v37  ;;  %v5627_v50 = vsel %vm1192_vm7, %v10960_v29, %v11061_v33  ;;  %v11861_v31 = vunpack.i.l.bf16 %v11029_v49  ;;  %v8230_v49 = vunpack.i.h.bf16 %v11125_v58 }
 0x408   :  { %v11178_v35 = vpop.permute.xlu1 %8247  ;;  %6100 = vmatprep.subr.mxu1 %v5628_v3  ;;  %v7252_v11 = vpack.c.bf16 %v4726_v36, %v4582_v17  ;;  %v8269_v36 = vunpack.i.l.bf16 %v11160_v44 }
 0x409   :  { %v8249_v43 = vunpack.i.l.bf16 %v11178_v35  ;;  %v11181_v52 = vpop.permute.xlu0 %8277  ;;  %v5013_v53 = vsel %vm572_vm3, %v11861_v31, %v8220_v8  ;;  %v8235_v8 = vunpack.i.h.bf16 %v11079_v18 }
 0x40a   :  { %7253 = vmatprep.subr.bf16.mxu0 %v7252_v11  ;;  %v7258_v0 = vpack.c.bf16 %v5013_v53, %v4869_v1  ;;  %v5341_v1 = vsel %vm902_vm5, %v8229_v24, %v8230_v49  ;;  %v8240_v24 = vunpack.i.h.bf16 %v11157_v25 }
 0x40b   :  { %6101 = vmatpush1.msra.mxu1 %v5627_v50  ;;  %7255 = vmatpush1.bf16.msra.mxu0 %v7254_v26  ;;  %v4870_v38 = vsel %vm427_vm2, %v8215_v15, %v8249_v43  ;;  %v5197_v15 = vsel %vm757_vm4, %v8224_v14, %v8225_v59 }
 0x40c   :  { %v11197_v29 = vpop.permute.xlu1 %8257  ;;  %v7256_v33 = vpack.c.bf16 %v5014_v40, %v4870_v38  ;;  %6861 = vmatmul.mubr.msk.f32.vlgmr.msra.gmra.mrb[22].mxu1 %vm1440_vm8, %v10865_v10  ;;  %v7262_v13 = vpack.c.bf16 %v5197_v15, %v10622_v46  ;;  %v11862_v46 = vunpack.i.l.bf16 %v11079_v18  ;;  %v8245_v18 = vunpack.i.h.bf16 %v11107_v2 }
 0x40d   :  { %v8259_v3 = vunpack.i.l.bf16 %v11197_v29  ;;  %v11202_v17 = vpop.permute.xlu0 %8287  ;;  %6290 = vmatprep.mubr.f32.mxu1 %v11814_v41 }
 0x40e   :  { %7257 = vmatprep.subr.bf16.mxu0 %v7256_v33  ;;  %v5485_v38 = vsel %vm1047_vm6, %v11862_v46, %v8235_v8  ;;  %v8279_v33 = vunpack.i.l.bf16 %v11181_v52 }
 0x40f   :  { %7259 = vmatpush1.bf16.msra.mxu0 %v7258_v0  ;;  %v5198_v62 = vsel %vm757_vm4, %v8225_v59, %v8259_v3  ;;  %v7266_v58 = vpack.c.bf16 %v5485_v38, %v5341_v1  ;;  %v5630_v0 = vsel %vm1192_vm7, %v11140_v63, %v11143_v61  ;;  %v8289_v1 = vunpack.i.l.bf16 %v11202_v17 }
 0x410   :  { %v11214_v11 = vpop.permute.xlu1 %8262  ;;  %v7260_v26 = vpack.c.bf16 %v5198_v62, %v10636_v32  ;;  %v5486_v32 = vsel %vm1047_vm6, %v8235_v8, %v8269_v36  ;;  %v5629_v8 = vsel %vm1192_vm7, %v11048_v4, %v11140_v63  ;;  %v4728_v46 = vsel %vm282_vm1, %v8245_v18, %v8279_v33 }
 0x411   :  { %v8264_v14 = vunpack.i.l.bf16 %v11214_v11  ;;  %v11219_v50 = vpop.permute.xlu0 %5603  ;;  %v4727_v4 = vsel %vm282_vm1, %v8244_v9, %v8245_v18  ;;  %v8255_v63 = vunpack.i.h.bf16 %v11130_v23 }
 0x412   :  { %7261 = vmatprep.subr.bf16.mxu0 %v7260_v26  ;;  %v4583_v26 = vsel %vm137_vm0, %v8239_v37, %v8240_v24 }
 0x413   :  { %7263 = vmatpush1.bf16.msra.mxu0 %v7262_v13  ;;  %v5342_v59 = vsel %vm902_vm5, %v8230_v49, %v8264_v14  ;;  %v8250_v13 = vunpack.i.h.bf16 %v11178_v35  ;;  %v7270_v38 = vpack.c.bf16 %v4727_v4, %v4583_v26 }
 0x414   :  { %v11233_v40 = vpop.permute.xlu1 %5601  ;;  %v7264_v31 = vpack.c.bf16 %v5486_v32, %v5342_v59 }
 0x415   :  { %v11235_v53 = vpop.permute.xlu0 %8292  ;;  %v4871_v2 = vsel %vm427_vm2, %v8249_v43, %v8250_v13 }
 0x416   :  { %7265 = vmatprep.subr.bf16.mxu0 %v7264_v31  ;;  %v8294_v59 = vunpack.i.l.bf16 %v11235_v53  ;;  %v8260_v31 = vunpack.i.h.bf16 %v11197_v29 }
 0x417   :  { %7267 = vmatpush1.bf16.msra.mxu0 %v7266_v58 }
 0x418   :  { %v11243_v15 = vpop.permute.xlu1 %8272  ;;  %6171 = vmatprep.subr.mxu0 %v5630_v0  ;;  %v5016_v0 = vsel %vm572_vm3, %v8255_v63, %v8289_v1  ;;  %v5200_v18 = vsel %vm757_vm4, %v8260_v31, %v8294_v59 }
 0x419   :  { %v8274_v49 = vunpack.i.l.bf16 %v11243_v15  ;;  %v11246_v62 = vpop.permute.xlu0 %8302  ;;  %v7276_v23 = vpack.c.bf16 %v5200_v18, %v10663_v42  ;;  %v8280_v18 = vunpack.i.h.bf16 %v11181_v52 }
 0x41b   :  { %6172 = vmatpush1.msra.mxu0 %v5629_v8  ;;  %v4584_v32 = vsel %vm137_vm0, %v8240_v24, %v8274_v49  ;;  %v5015_v8 = vsel %vm572_vm3, %v8254_v48, %v8255_v63  ;;  %v8270_v48 = vunpack.i.h.bf16 %v11160_v44  ;;  %v5632_v44 = vsel %vm1192_vm7, %v11233_v40, %v11219_v50 }
 0x41c   :  { %v11265_v25 = vpop.permute.xlu1 %8282  ;;  %v7268_v37 = vpack.c.bf16 %v4728_v46, %v4584_v32  ;;  %6862 = vmatmul.mubr.msk.f32.vlgmr.msra.gmra.mrb[24].mxu0 %vm1440_vm8, %v10865_v10  ;;  %v7274_v43 = vpack.c.bf16 %v5015_v8, %v4871_v2  ;;  %v8265_v32 = vunpack.i.h.bf16 %v11214_v11 }
 0x41d   :  { %v8284_v58 = vunpack.i.l.bf16 %v11265_v25  ;;  %v11271_v24 = vpop.permute.xlu0 %8312  ;;  %6361 = vmatprep.mubr.f32.mxu0 %v11814_v41 }
 0x41e   :  { %7269 = vmatprep.subr.bf16.mxu1 %v7268_v37  ;;  %v5199_v37 = vsel %vm757_vm4, %v8259_v3, %v8260_v31  ;;  %v5343_v42 = vsel %vm902_vm5, %v8264_v14, %v8265_v32  ;;  %v8275_v3 = vunpack.i.h.bf16 %v11243_v15  ;;  %v8285_v15 = vunpack.i.h.bf16 %v11265_v25 }
 0x41f   :  { %7271 = vmatpush1.bf16.msra.mxu1 %v7270_v38  ;;  %v4872_v9 = vsel %vm427_vm2, %v8250_v13, %v8284_v58  ;;  %v8304_v13 = vunpack.i.l.bf16 %v11246_v62  ;;  %v7278_v2 = vpack.c.bf16 %v5199_v37, %v10648_v30  ;;  %v5487_v30 = vsel %vm1047_vm6, %v8269_v36, %v8270_v48 }
 0x420   :  { %v11287_v26 = vpop.permute.xlu1 %8297  ;;  %v7272_v35 = vpack.c.bf16 %v5016_v0, %v4872_v9  ;;  %v8314_v0 = vunpack.i.l.bf16 %v11271_v24  ;;  %v4585_v14 = vsel %vm137_vm0, %v8274_v49, %v8275_v3  ;;  %v4729_v49 = vsel %vm282_vm1, %v8279_v33, %v8280_v18 }
 0x421   :  { %v8299_v46 = vunpack.i.l.bf16 %v11287_v26  ;;  %v11292_v4 = vpop.permute.xlu0 %8322  ;;  %v5488_v29 = vsel %vm1047_vm6, %v8270_v48, %v8304_v13  ;;  %v8290_v25 = vunpack.i.h.bf16 %v11202_v17  ;;  %v4873_v52 = vsel %vm427_vm2, %v8284_v58, %v8285_v15 }
 0x422   :  { %7273 = vmatprep.subr.bf16.mxu1 %v7272_v35  ;;  %v7282_v35 = vpack.c.bf16 %v5487_v30, %v5343_v42  ;;  %v4730_v37 = vsel %vm282_vm1, %v8280_v18, %v8314_v0  ;;  %v5631_v42 = vsel %vm1192_vm7, %v11143_v61, %v11233_v40  ;;  %v8300_v17 = vunpack.i.h.bf16 %v11287_v26 }
 0x423   :  { %7275 = vmatpush1.bf16.msra.mxu1 %v7274_v43  ;;  %v5344_v63 = vsel %vm902_vm5, %v8265_v32, %v8299_v46  ;;  %v8324_v32 = vunpack.i.l.bf16 %v11292_v4  ;;  %v5017_v30 = vsel %vm572_vm3, %v8289_v1, %v8290_v25 }
 0x424   :  { %v11302_v38 = vpop.permute.xlu1 %5605  ;;  %7277 = vmatprep.subr.bf16.mxu1 %v7276_v23  ;;  %v7280_v31 = vpack.c.bf16 %v5488_v29, %v5344_v63  ;;  %v7286_v63 = vpack.c.bf16 %v4729_v49, %v4585_v14  ;;  %v7290_v58 = vpack.c.bf16 %v5017_v30, %v4873_v52 }
 0x425   :  { %v11305_v9 = vpop.permute.xlu0 %5607 }
 0x427   :  { %7279 = vmatpush1.bf16.msra.mxu1 %v7278_v2 }
 0x428   :  { %v11319_v8 = vpop.permute.xlu1 %8307  ;;  %7281 = vmatprep.subr.bf16.mxu1 %v7280_v31  ;;  %v5018_v31 = vsel %vm572_vm3, %v8290_v25, %v8324_v32  ;;  %v5345_v25 = vsel %vm902_vm5, %v8299_v46, %v8300_v17 }
 0x429   :  { %v8309_v11 = vunpack.i.l.bf16 %v11319_v8  ;;  %v11322_v43 = vpop.permute.xlu0 %8337  ;;  %v8310_v46 = vunpack.i.h.bf16 %v11319_v8 }
 0x42a   :  { %v8339_v1 = vunpack.i.l.bf16 %v11322_v43 }
 0x42b   :  { %7283 = vmatpush1.bf16.msra.mxu1 %v7282_v35  ;;  %v4586_v36 = vsel %vm137_vm0, %v8275_v3, %v8309_v11  ;;  %v8295_v3 = vunpack.i.h.bf16 %v11235_v53 }
 0x42c   :  { %v11340_v23 = vpop.permute.xlu1 %8317  ;;  %6242 = vmatprep.subr.mxu1 %v5632_v44  ;;  %v7284_v48 = vpack.c.bf16 %v4730_v37, %v4586_v36  ;;  %v8305_v44 = vunpack.i.h.bf16 %v11246_v62  ;;  %v8315_v62 = vunpack.i.h.bf16 %v11271_v24 }
 0x42d   :  { %v8319_v2 = vunpack.i.l.bf16 %v11340_v23  ;;  %v11343_v29 = vpop.permute.xlu0 %8347  ;;  %v5201_v14 = vsel %vm757_vm4, %v8294_v59, %v8295_v3 }
 0x42e   :  { %7285 = vmatprep.subr.bf16.mxu0 %v7284_v48  ;;  %v7294_v53 = vpack.c.bf16 %v5201_v14, %v10670_v7  ;;  %v5489_v7 = vsel %vm1047_vm6, %v8304_v13, %v8305_v44  ;;  %v8349_v52 = vunpack.i.l.bf16 %v11343_v29  ;;  %v8320_v14 = vunpack.i.h.bf16 %v11340_v23 }
 0x42f   :  { %6243 = vmatpush1.msra.mxu1 %v5631_v42  ;;  %7287 = vmatpush1.bf16.msra.mxu0 %v7286_v63  ;;  %v4874_v33 = vsel %vm427_vm2, %v8285_v15, %v8319_v2  ;;  %v7298_v26 = vpack.c.bf16 %v5489_v7, %v5345_v25 }
 0x430   :  { %v11359_v61 = vpop.permute.xlu1 %8327  ;;  %v7288_v40 = vpack.c.bf16 %v5018_v31, %v4874_v33  ;;  %6863 = vmatmul.mubr.msk.f32.vlgmr.msra.gmra.mrb[24].mxu1 %vm1440_vm8, %v10865_v10  ;;  %v5634_v33 = vsel %vm1192_vm7, %v11302_v38, %v11305_v9  ;;  %v4875_v24 = vsel %vm427_vm2, %v8319_v2, %v8320_v14 }
 0x431   :  { %v8329_v18 = vunpack.i.l.bf16 %v11359_v61  ;;  %v11364_v35 = vpop.permute.xlu0 %8357  ;;  %6432 = vmatprep.mubr.f32.mxu1 %v11814_v41  ;;  %v8330_v25 = vunpack.i.h.bf16 %v11359_v61 }
 0x432   :  { %7289 = vmatprep.subr.bf16.mxu0 %v7288_v40  ;;  %v5633_v40 = vsel %vm1192_vm7, %v11219_v50, %v11302_v38  ;;  %v4731_v50 = vsel %vm282_vm1, %v8314_v0, %v8315_v62  ;;  %v8325_v38 = vunpack.i.h.bf16 %v11292_v4  ;;  %v8340_v4 = vunpack.i.h.bf16 %v11322_v43 }
 0x433   :  { %7291 = vmatpush1.bf16.msra.mxu0 %v7290_v58  ;;  %v5202_v15 = vsel %vm757_vm4, %v8295_v3, %v8329_v18  ;;  %v4587_v58 = vsel %vm137_vm0, %v8309_v11, %v8310_v46 }
 0x434   :  { %v11376_v36 = vpop.permute.xlu1 %8332  ;;  %v7292_v37 = vpack.c.bf16 %v5202_v15, %v10700_v22  ;;  %v5490_v22 = vsel %vm1047_vm6, %v8305_v44, %v8339_v1 }
 0x435   :  { %v8334_v59 = vunpack.i.l.bf16 %v11376_v36  ;;  %v11381_v49 = vpop.permute.xlu0 %5467 }
 0x436   :  { %7293 = vmatprep.subr.bf16.mxu0 %v7292_v37  ;;  %v4732_v37 = vsel %vm282_vm1, %v8315_v62, %v8349_v52 }
 0x437   :  { %7295 = vmatpush1.bf16.msra.mxu0 %v7294_v53  ;;  %v5346_v48 = vsel %vm902_vm5, %v8300_v17, %v8334_v59  ;;  %v8359_v17 = vunpack.i.l.bf16 %v11364_v35  ;;  %v7302_v53 = vpack.c.bf16 %v4731_v50, %v4587_v58 }
 0x438   :  { %v11395_v63 = vpop.permute.xlu1 %5609  ;;  %v7296_v42 = vpack.c.bf16 %v5490_v22, %v5346_v48 }
 0x439   :  { %v11397_v3 = vpop.permute.xlu0 %5611  ;;  %v5020_v7 = vsel %vm572_vm3, %v8325_v38, %v8359_v17 }
 0x43a   :  { %7297 = vmatprep.subr.bf16.mxu0 %v7296_v42 }
 0x43b   :  { %7299 = vmatpush1.bf16.msra.mxu0 %v7298_v26  ;;  %v5019_v26 = vsel %vm572_vm3, %v8324_v32, %v8325_v38 }
 0x43c   :  { %v8343_v31 = vpop.permute.xlu1 %8342  ;;  %6313 = vmatprep.subr.mxu0 %v5634_v33  ;;  %v7306_v2 = vpack.c.bf16 %v5019_v26, %v4875_v24  ;;  %v8335_v33 = vunpack.i.h.bf16 %v11376_v36  ;;  %v5491_v24 = vsel %vm1047_vm6, %v8339_v1, %v8340_v4 }
 0x43d   :  { %v8344_v13 = vunpack.i.l.bf16 %v8343_v31  ;;  %v11405_v30 = vpop.permute.xlu0 %8362  ;;  %v8345_v58 = vunpack.i.h.bf16 %v8343_v31 }
 0x43e   :  { %v8364_v15 = vunpack.i.l.bf16 %v11405_v30 }
 0x43f   :  { %6314 = vmatpush1.msra.mxu0 %v5633_v40  ;;  %v4588_v44 = vsel %vm137_vm0, %v8310_v46, %v8344_v13  ;;  %v5203_v40 = vsel %vm757_vm4, %v8329_v18, %v8330_v25  ;;  %v5492_v18 = vsel %vm1047_vm6, %v8340_v4, %v11381_v49  ;;  %v4589_v38 = vsel %vm137_vm0, %v8344_v13, %v8345_v58 }
 0x440   :  { %v8353_v8 = vpop.permute.xlu1 %8352  ;;  %6864 = vmatmul.mubr.msk.f32.vlgmr.msra.gmra.mrb[26].mxu0 %vm1440_vm8, %v10865_v10  ;;  %v7300_v11 = vpack.c.bf16 %v4732_v37, %v4588_v44  ;;  %v5204_v42 = vsel %vm757_vm4, %v8330_v25, %v8364_v15  ;;  %v8350_v37 = vunpack.i.h.bf16 %v11343_v29  ;;  %v7310_v61 = vpack.c.bf16 %v5203_v40, %v10712_v19 }
 0x441   :  { %v8354_v48 = vunpack.i.l.bf16 %v8353_v8  ;;  %v11427_v22 = vpop.permute.xlu0 %8372  ;;  %6503 = vmatprep.mubr.f32.mxu0 %v11814_v41  ;;  %v5636_v29 = vsel %vm1192_vm7, %v11395_v63, %v11397_v3 }
 0x442   :  { %7301 = vmatprep.subr.bf16.mxu1 %v7300_v11  ;;  %v8374_v32 = vunpack.i.l.bf16 %v11427_v22  ;;  %v8355_v11 = vunpack.i.h.bf16 %v8353_v8  ;;  %v4733_v36 = vsel %vm282_vm1, %v8349_v52, %v8350_v37 }
 0x443   :  { %7303 = vmatpush1.bf16.msra.mxu1 %v7302_v53  ;;  %v4876_v0 = vsel %vm427_vm2, %v8320_v14, %v8354_v48  ;;  %v7308_v14 = vpack.c.bf16 %v5204_v42, %v10735_v55  ;;  %v5347_v55 = vsel %vm902_vm5, %v8334_v59, %v8335_v33  ;;  %v8360_v59 = vunpack.i.h.bf16 %v11364_v35 }
 0x444   :  { %v11443_v46 = vpop.permute.xlu1 %5323  ;;  %v7304_v23 = vpack.c.bf16 %v5020_v7, %v4876_v0  ;;  %v4734_v7 = vsel %vm282_vm1, %v8350_v37, %v8374_v32  ;;  %v7314_v43 = vpack.c.bf16 %v5491_v24, %v5347_v55  ;;  %v7318_v26 = vpack.c.bf16 %v4733_v36, %v4589_v38 }
 0x445   :  { %v11446_v62 = vpop.permute.xlu0 %8382  ;;  %v5348_v44 = vsel %vm902_vm5, %v8335_v33, %v11443_v46  ;;  %v5021_v40 = vsel %vm572_vm3, %v8359_v17, %v8360_v59 }
 0x446   :  { %7305 = vmatprep.subr.bf16.mxu1 %v7304_v23  ;;  %v7312_v53 = vpack.c.bf16 %v5492_v18, %v5348_v44  ;;  %v8384_v0 = vunpack.i.l.bf16 %v11446_v62  ;;  %v4877_v23 = vsel %vm427_vm2, %v8354_v48, %v8355_v11  ;;  %v8385_v17 = vunpack.i.h.bf16 %v11446_v62 }
 0x447   :  { %7307 = vmatpush1.bf16.msra.mxu1 %v7306_v2  ;;  %v8375_v2 = vunpack.i.h.bf16 %v11427_v22  ;;  %v7322_v44 = vpack.c.bf16 %v5021_v40, %v4877_v23 }
 0x448   :  { %v8368_v50 = vpop.permute.xlu1 %8367  ;;  %7309 = vmatprep.subr.bf16.mxu1 %v7308_v14  ;;  %v5022_v33 = vsel %vm572_vm3, %v8360_v59, %v8384_v0  ;;  %v5023_v62 = vsel %vm572_vm3, %v8384_v0, %v8385_v17 }
 0x449   :  { %v8369_v31 = vunpack.i.l.bf16 %v8368_v50  ;;  %v4716_v25 = vpop.permute.xlu0 %4715  ;;  %v8370_v13 = vunpack.i.h.bf16 %v8368_v50  ;;  %v4735_v35 = vsel %vm282_vm1, %v8374_v32, %v8375_v2 }
 0x44a   :  { %v4736_v37 = vsel %vm282_vm1, %v8375_v2, %v4716_v25 }
 0x44b   :  { %7311 = vmatpush1.bf16.msra.mxu1 %v7310_v61  ;;  %v4590_v19 = vsel %vm137_vm0, %v8345_v58, %v8369_v31  ;;  %v4591_v58 = vsel %vm137_vm0, %v8369_v31, %v8370_v13  ;;  %v5635_v61 = vsel %vm1192_vm7, %v11305_v9, %v11395_v63  ;;  %v8365_v63 = vunpack.i.h.bf16 %v11405_v30 }
 0x44c   :  { %v8378_v8 = vpop.permute.xlu1 %8377  ;;  %7313 = vmatprep.subr.bf16.mxu1 %v7312_v53  ;;  %v7316_v42 = vpack.c.bf16 %v4734_v7, %v4590_v19  ;;  %v7334_v31 = vpack.c.bf16 %v4735_v35, %v4591_v58 }
 0x44d   :  { %v8379_v1 = vunpack.i.l.bf16 %v8378_v8  ;;  %v8380_v48 = vunpack.i.h.bf16 %v8378_v8  ;;  %v5004_v14 = vpop.permute.xlu0 %5003 }
 0x44e   :  { %7317 = vmatprep.subr.bf16.mxu0 %v7316_v42 }
 0x44f   :  { %7315 = vmatpush1.bf16.msra.mxu1 %v7314_v43  ;;  %7319 = vmatpush1.bf16.msra.mxu0 %v7318_v26  ;;  %v4878_v52 = vsel %vm427_vm2, %v8355_v11, %v8379_v1  ;;  %v4879_v55 = vsel %vm427_vm2, %v8379_v1, %v8380_v48  ;;  %v5024_v11 = vsel %vm572_vm3, %v8385_v17, %v5004_v14 }
 0x450   :  { %v4572_v22 = vpop.permute.xlu1 %4571  ;;  %6384 = vmatprep.subr.mxu1 %v5636_v29  ;;  %v7320_v4 = vpack.c.bf16 %v5022_v33, %v4878_v52  ;;  %v7338_v25 = vpack.c.bf16 %v5023_v62, %v4879_v55 }
 0x451   :  { %v4592_v50 = vsel %vm137_vm0, %v8370_v13, %v4572_v22  ;;  %v8398_v32 = vpop.permute.xlu0 %8397 }
 0x452   :  { %v7332_v18 = vpack.c.bf16 %v4736_v37, %v4592_v50  ;;  %7321 = vmatprep.subr.bf16.mxu0 %v7320_v4  ;;  %v8400_v36 = vunpack.i.h.bf16 %v8398_v32  ;;  %v8399_v59 = vunpack.i.l.bf16 %v8398_v32 }
 0x453   :  { %6385 = vmatpush1.msra.mxu1 %v5635_v61  ;;  %7323 = vmatpush1.bf16.msra.mxu0 %v7322_v44 }
 0x454   :  { %v4860_v38 = vpop.permute.xlu1 %4859  ;;  %6865 = vmatmul.mubr.msk.f32.vlgmr.msra.gmra.mrb[26].mxu1 %vm1440_vm8, %v10865_v10  ;;  %7333 = vmatprep.subr.bf16.mxu1 %v7332_v18  ;;  %v5205_v10 = vsel %vm757_vm4, %v8364_v15, %v8365_v63  ;;  %v5493_v2 = vsel %vm1047_vm6, %v11381_v49, %v8399_v59  ;;  %v5494_v29 = vsel %vm1047_vm6, %v8399_v59, %v8400_v36  ;;  %v8416_v18 = vld [vmem:[%s11697_s6] sm:$0xff] }
 0x455   :  { %v4880_v9 = vsel %vm427_vm2, %v8380_v48, %v4860_v38  ;;  %7335 = vmatpush1.bf16.msra.mxu1 %v7334_v31  ;;  %6574 = vmatprep.mubr.f32.mxu1 %v11814_v41  ;;  %v8408_v8 = vpop.permute.xlu0 %8407  ;;  %v7326_v30 = vpack.c.bf16 %v5205_v10, %v10756_v5 }
 0x456   :  { %v7336_v53 = vpack.c.bf16 %v5024_v11, %v4880_v9  ;;  %v8409_v52 = vunpack.i.l.bf16 %v8408_v8 }
 0x458   :  { %v8388_v24 = vpop.permute.xlu1 %8387  ;;  %7337 = vmatprep.subr.bf16.mxu1 %v7336_v53  ;;  %v5495_v49 = vsel %vm1047_vm6, %v8400_v36, %v8409_v52 }
 0x459   :  { %v8390_v19 = vunpack.i.h.bf16 %v8388_v24  ;;  %v8389_v7 = vunpack.i.l.bf16 %v8388_v24  ;;  %7339 = vmatpush1.bf16.msra.mxu1 %v7338_v25  ;;  %v5616_v48 = vpop.permute.xlu0 %5615 }
 0x45b   :  { %v5207_v41 = vsel %vm757_vm4, %v8389_v7, %v8390_v19  ;;  %v5206_v13 = vsel %vm757_vm4, %v8365_v63, %v8389_v7  ;;  %v5208_v0 = vsel %vm757_vm4, %v8390_v19, %v10660_v45  ;;  %v8410_v45 = vunpack.i.h.bf16 %v8408_v8 }
 0x45c   :  { %v7342_v42 = vpack.c.bf16 %v5207_v41, %v10834_v34  ;;  %v8393_v43 = vpop.permute.xlu1 %8392  ;;  %v7324_v26 = vpack.c.bf16 %v5206_v13, %v10820_v60  ;;  %v7340_v1 = vpack.c.bf16 %v5208_v0, %v10915_v21 }
 0x45d   :  { %v8395_v15 = vunpack.i.h.bf16 %v8393_v43  ;;  %v8394_v23 = vunpack.i.l.bf16 %v8393_v43  ;;  %v5620_v35 = vpop.permute.xlu0 %5619 }
 0x45e   :  { %7325 = vmatprep.subr.bf16.mxu0 %v7324_v26  ;;  %7341 = vmatprep.subr.bf16.mxu1 %v7340_v1 }
 0x45f   :  { %v5349_v34 = vsel %vm902_vm5, %v11443_v46, %v8394_v23  ;;  %7327 = vmatpush1.bf16.msra.mxu0 %v7326_v30  ;;  %7343 = vmatpush1.bf16.msra.mxu1 %v7342_v42  ;;  %v5350_v60 = vsel %vm902_vm5, %v8394_v23, %v8395_v15  ;;  %v5496_v46 = vsel %vm1047_vm6, %v8409_v52, %v8410_v45 }
 0x460   :  { %v7330_v21 = vpack.c.bf16 %v5493_v2, %v5349_v34  ;;  %v8403_v5 = vpop.permute.xlu1 %8402  ;;  %v7328_v33 = vpack.c.bf16 %v5494_v29, %v5350_v60 }
 0x461   :  { %v8405_v40 = vunpack.i.h.bf16 %v8403_v5  ;;  %v8404_v58 = vunpack.i.l.bf16 %v8403_v5 }
 0x462   :  { %7329 = vmatprep.subr.bf16.mxu0 %v7328_v33 }
 0x463   :  { %v5351_v14 = vsel %vm902_vm5, %v8395_v15, %v8404_v58  ;;  %7331 = vmatpush1.bf16.msra.mxu0 %v7330_v21  ;;  %v5352_v22 = vsel %vm902_vm5, %v8404_v58, %v8405_v40 }
 0x464   :  { %v7346_v4 = vpack.c.bf16 %v5495_v49, %v5351_v14  ;;  %v5614_v44 = vpop.permute.xlu1 %5613  ;;  %v7344_v37 = vpack.c.bf16 %v5496_v46, %v5352_v22 }
 0x465   :  { %v5637_v50 = vsel %vm1192_vm7, %v11397_v3, %v5614_v44  ;;  %v5638_v61 = vsel %vm1192_vm7, %v5614_v44, %v5616_v48 }
 0x466   :  { %6455 = vmatprep.subr.mxu0 %v5638_v61  ;;  %7345 = vmatprep.subr.bf16.mxu1 %v7344_v37 }
 0x467   :  { %6456 = vmatpush1.msra.mxu0 %v5637_v50  ;;  %7347 = vmatpush1.bf16.msra.mxu1 %v7346_v4 }
 0x468   :  { %v5618_v17 = vpop.permute.xlu1 %5617  ;;  %6866 = vmatmul.mubr.msk.f32.vlgmr.msra.gmra.mrb[28].mxu0 %vm1440_vm8, %v8416_v18 }
 0x469   :  { %v5639_v31 = vsel %vm1192_vm7, %v5616_v48, %v5618_v17  ;;  %v5640_v55 = vsel %vm1192_vm7, %v5618_v17, %v5620_v35 }
 0x46a   :  { %6526 = vmatprep.subr.mxu1 %v5640_v55 }
 0x46b   :  { %6527 = vmatpush1.msra.mxu1 %v5639_v31 }
 0x46c   :  { %6867 = vmatmul.mubr.msk.f32.vlgmr.msra.gmra.mrb[28].mxu1 %vm1440_vm8, %v8416_v18 }
 0x47a   :  { %v11531_v19 = vpop.permute.xlu1 %5865 }
 0x4a3   :  { %v5937_v3 = vpop.f32.mrb[20].mxu0 }
 0x4a4   :  { %v5939_v38 = vpop.f32.mrb[21].mxu0  ;;  %v11534_v7 = vadd.f32 %v5937_v3, %v11531_v19 }
 0x4a5   :  { %v11537_v10 = vadd.f32 %v5939_v38, %v11531_v19 }
 0x4a6   :  { %v6581_v59 = vmul.f32 %v11534_v7, %v9445_v28 }
 0x4a7   :  { %v6582_v41 = vmul.f32 %v11537_v10, %v9449_v6 }
 0x4a8   :  { %v6622_v8 = vmul.f32 %v6581_v59, %v6581_v59 }
 0x4a9   :  { %v6623_v42 = vmul.f32 %v6582_v41, %v6582_v41  ;;  %v6601_v1 = vadd.f32 %v6582_v41, %v6581_v59  ;;  %v11865_v41 = vld [vmem:[#allocation30_spill] sm:$0xff] }
 0x4ab   :  { %v6642_v30 = vadd.f32 %v6623_v42, %v6622_v8 }
 0x4b8   :  { %v6008_v11 = vpop.f32.mrb[20].mxu1 }
 0x4b9   :  { %v6010_v9 = vpop.f32.mrb[21].mxu1  ;;  %v11544_v13 = vadd.f32 %v6008_v11, %v11531_v19 }
 0x4ba   :  { %v11549_v26 = vadd.f32 %v6010_v9, %v11531_v19  ;;  %v11863_v9 = vld [vmem:[#allocation25_spill] sm:$0xff] }
 0x4bb   :  { %v6583_v43 = vmul.f32 %v11544_v13, %v9420_v16 }
 0x4bc   :  { %v6584_v28 = vmul.f32 %v11549_v26, %v9476_v39 }
 0x4bd   :  { %v6624_v15 = vmul.f32 %v6583_v43, %v6583_v43  ;;  %v6602_v23 = vadd.f32 %v6601_v1, %v6583_v43 }
 0x4be   :  { %v6625_v29 = vmul.f32 %v6584_v28, %v6584_v28 }
 0x4bf   :  { %v6643_v2 = vadd.f32 %v6642_v30, %v6624_v15  ;;  %v6603_v52 = vadd.f32 %v6602_v23, %v6584_v28  ;;  %v11866_v28 = vld [vmem:[#allocation34_spill] sm:$0xff] }
 0x4c1   :  { %v6644_v60 = vadd.f32 %v6643_v2, %v6625_v29 }
 0x4cc   :  { %v6079_v63 = vpop.f32.mrb[22].mxu0 }
 0x4cd   :  { %v6081_v62 = vpop.f32.mrb[23].mxu0  ;;  %v11554_v6 = vadd.f32 %v6079_v63, %v11531_v19 }
 0x4ce   :  { %v11559_v16 = vadd.f32 %v6081_v62, %v11531_v19 }
 0x4cf   :  { %v6585_v45 = vmul.f32 %v11554_v6, %v9494_v47 }
 0x4d0   :  { %v6586_v5 = vmul.f32 %v11559_v16, %v11828_v27 }
 0x4d1   :  { %v6626_v21 = vmul.f32 %v6585_v45, %v6585_v45  ;;  %v6604_v40 = vadd.f32 %v6603_v52, %v6585_v45  ;;  %v11867_v45 = vld [vmem:[#allocation33_spill] sm:$0xff] }
 0x4d2   :  { %v6627_v48 = vmul.f32 %v6586_v5, %v6586_v5 }
 0x4d3   :  { %v6645_v58 = vadd.f32 %v6644_v60, %v6626_v21  ;;  %v6605_v14 = vadd.f32 %v6604_v40, %v6586_v5  ;;  %v11868_v40 = vld [vmem:[#allocation36_spill] sm:$0xff] }
 0x4d5   :  { %v6646_v22 = vadd.f32 %v6645_v58, %v6627_v48 }
 0x4df   :  { %v6150_v32 = vpop.f32.mrb[22].mxu1 }
 0x4e0   :  { %v6152_v53 = vpop.f32.mrb[23].mxu1  ;;  %v11564_v39 = vadd.f32 %v6150_v32, %v11531_v19 }
 0x4e1   :  { %v11569_v49 = vadd.f32 %v6152_v53, %v11531_v19 }
 0x4e2   :  { %v6587_v47 = vmul.f32 %v11564_v39, %v11829_v12 }
 0x4e3   :  { %v6588_v4 = vmul.f32 %v11569_v49, %v11830_v57 }
 0x4e4   :  { %v6628_v46 = vmul.f32 %v6587_v47, %v6587_v47  ;;  %v6606_v44 = vadd.f32 %v6605_v14, %v6587_v47 }
 0x4e5   :  { %v6629_v50 = vmul.f32 %v6588_v4, %v6588_v4 }
 0x4e6   :  { %v6647_v37 = vadd.f32 %v6646_v22, %v6628_v46  ;;  %v6607_v35 = vadd.f32 %v6606_v44, %v6588_v4 }
 0x4e8   :  { %v6648_v17 = vadd.f32 %v6647_v37, %v6629_v50 }
 0x4ef   :  { %v6221_v25 = vpop.f32.mrb[24].mxu0 }
 0x4f0   :  { %v6223_v24 = vpop.f32.mrb[25].mxu0  ;;  %v11574_v27 = vadd.f32 %v6221_v25, %v11531_v19 }
 0x4f1   :  { %v11579_v12 = vadd.f32 %v6223_v24, %v11531_v19  ;;  %v11864_v24 = vld [vmem:[#allocation28_spill] sm:$0xff] }
 0x4f2   :  { %v6589_v61 = vmul.f32 %v11574_v27, %v11831_v51 }
 0x4f3   :  { %v6590_v31 = vmul.f32 %v11579_v12, %v11832_v20 }
 0x4f4   :  { %v6630_v18 = vmul.f32 %v6589_v61, %v6589_v61  ;;  %v6608_v55 = vadd.f32 %v6607_v35, %v6589_v61  ;;  %v11869_v61 = vld [vmem:[#allocation38_spill] sm:$0xff] }
 0x4f5   :  { %v6631_v11 = vmul.f32 %v6590_v31, %v6590_v31 }
 0x4f6   :  { %v6649_v38 = vadd.f32 %v6648_v17, %v6630_v18  ;;  %v6609_v32 = vadd.f32 %v6608_v55, %v6590_v31  ;;  %v11870_v17 = vld [vmem:[#allocation42_spill] sm:$0xff] }
 0x4f8   :  { %v6650_v25 = vadd.f32 %v6649_v38, %v6631_v11 }
 0x503   :  { %v6292_v36 = vpop.f32.mrb[24].mxu1 }
 0x504   :  { %v6294_v0 = vpop.f32.mrb[25].mxu1  ;;  %v11584_v57 = vadd.f32 %v6292_v36, %v11531_v19 }
 0x505   :  { %v11589_v51 = vadd.f32 %v6294_v0, %v11531_v19 }
 0x506   :  { %v6591_v63 = vmul.f32 %v11584_v57, %v11863_v9 }
 0x507   :  { %v6592_v36 = vmul.f32 %v11589_v51, %v11864_v24 }
 0x508   :  { %v6632_v20 = vmul.f32 %v6591_v63, %v6591_v63  ;;  %v6610_v59 = vadd.f32 %v6609_v32, %v6591_v63 }
 0x509   :  { %v6633_v0 = vmul.f32 %v6592_v36, %v6592_v36 }
 0x50a   :  { %v6651_v43 = vadd.f32 %v6650_v25, %v6632_v20  ;;  %v6611_v30 = vadd.f32 %v6610_v59, %v6592_v36 }
 0x50c   :  { %v6652_v2 = vadd.f32 %v6651_v43, %v6633_v0 }
 0x513   :  { %v6363_v34 = vpop.f32.mrb[26].mxu0 }
 0x514   :  { %v6365_v33 = vpop.f32.mrb[27].mxu0  ;;  %v11592_v53 = vadd.f32 %v6363_v34, %v11531_v19 }
 0x515   :  { %v11599_v42 = vadd.f32 %v6365_v33, %v11531_v19 }
 0x516   :  { %v6593_v8 = vmul.f32 %v11592_v53, %v11865_v41 }
 0x517   :  { %v6594_v23 = vmul.f32 %v11599_v42, %v11866_v28 }
 0x518   :  { %v6634_v15 = vmul.f32 %v6593_v8, %v6593_v8  ;;  %v6612_v29 = vadd.f32 %v6611_v30, %v6593_v8 }
 0x519   :  { %v6635_v21 = vmul.f32 %v6594_v23, %v6594_v23 }
 0x51a   :  { %v6653_v60 = vadd.f32 %v6652_v2, %v6634_v15  ;;  %v6613_v5 = vadd.f32 %v6612_v29, %v6594_v23 }
 0x51c   :  { %v6654_v48 = vadd.f32 %v6653_v60, %v6635_v21 }
 0x527   :  { %v6434_v3 = vpop.f32.mrb[26].mxu1 }
 0x528   :  { %v6436_v62 = vpop.f32.mrb[27].mxu1  ;;  %v11602_v1 = vadd.f32 %v6434_v3, %v11531_v19 }
 0x529   :  { %v11609_v34 = vadd.f32 %v6436_v62, %v11531_v19 }
 0x52a   :  { %v6595_v52 = vmul.f32 %v11602_v1, %v11867_v45 }
 0x52b   :  { %v6596_v58 = vmul.f32 %v11609_v34, %v11868_v40 }
 0x52c   :  { %v6636_v33 = vmul.f32 %v6595_v52, %v6595_v52  ;;  %v6614_v47 = vadd.f32 %v6613_v5, %v6595_v52  ;;  %v6670_v52 = vld [vmem:[%s11699_s8] sm:$0xff]  ;;  %s8476_s8 = smov [#allocation7]  }
 0x52d   :  { %v6637_v46 = vmul.f32 %v6596_v58, %v6596_v58 }
 0x52e   :  { %v6655_v22 = vadd.f32 %v6654_v48, %v6636_v33  ;;  %v6615_v50 = vadd.f32 %v6614_v47, %v6596_v58 }
 0x530   :  { %v6656_v55 = vadd.f32 %v6655_v22, %v6637_v46 }
 0x53b   :  { %v6505_v14 = vpop.f32.mrb[28].mxu0 }
 0x53c   :  { %v11614_v4 = vadd.f32 %v6505_v14, %v11531_v19  ;;  %v6507_v44 = vpop.f32.mrb[29].mxu0 }
 0x53d   :  { %v11617_v37 = vadd.f32 %v6507_v44, %v11531_v19 }
 0x53e   :  { %v6597_v35 = vmul.f32 %v11614_v4, %v11869_v61 }
 0x53f   :  { %v6598_v18 = vmul.f32 %v11617_v37, %v11870_v17  ;;  %v6576_v31 = vpop.f32.mrb[28].mxu1 }
 0x540   :  { %v6616_v3 = vadd.f32 %v6615_v50, %v6597_v35  ;;  %v6638_v38 = vmul.f32 %v6597_v35, %v6597_v35  ;;  %v11624_v11 = vadd.f32 %v6576_v31, %v11531_v19  ;;  %v6578_v9 = vpop.f32.mrb[29].mxu1 }
 0x541   :  { %v6639_v63 = vmul.f32 %v6598_v18, %v6598_v18  ;;  %v11627_v62 = vadd.f32 %v6578_v9, %v11531_v19  ;;  %v6717_v19 = vld [vmem:[%s11700_s9] sm:$0xff]  ;;  %s6829_s9 = sshll.u32 %s8476_s8, 4  ;;  %s6830_s9 = int_to_ptr.vmem [resolvable:$true] %s6829_s9 }
 0x542   :  { %v6657_v32 = vadd.f32 %v6656_v55, %v6638_v38  ;;  %v6617_v25 = vadd.f32 %v6616_v3, %v6598_v18  ;;  %v6599_v20 = vmul.f32 %v11624_v11, %v11841_v54  ;;  %s8439_s30 = scalar_lea.vmem %s6830_s9, 2560  ;;  %p8444_p9 = scmp.lt.s32.totalorder %s6830_s9, %s6830_s9 }
 0x543   :  { %v6600_v24 = vmul.f32 %v11627_v62, %v11847_v56  ;;  %p8440_p8 = scmp.ne.s32.totalorder %s6830_s9, %s8439_s30  ;;  %p8445_p10 = scmp.lt.s32.totalorder %s8439_s30, %s8439_s30 }
 0x544   :  { %v6658_v36 = vadd.f32 %v6657_v32, %v6639_v63  ;;  %v6618_v59 = vadd.f32 %v6617_v25, %v6599_v20  ;;  %v6640_v41 = vmul.f32 %v6599_v20, %v6599_v20 }
 0x545   :  { %v6641_v8 = vmul.f32 %v6600_v24, %v6600_v24  ;;  %p8446_p11 = por %p8445_p10, %p8444_p9 }
 0x546   :  { %v6619_v43 = vadd.f32 %v6618_v59, %v6600_v24  ;;  %v6659_v0 = vadd.f32 %v6658_v36, %v6640_v41 }
 0x547   :  { %p8447_p12 = pnand %p8446_p11, %p8440_p8 }
 0x548   :  { %6620 = vadd.xlane.f32.xlu0 %v6619_v43  ;;  %v6660_v30 = vadd.f32 %v6659_v0, %v6641_v8 }
 0x54a   :  { %6661 = vadd.xlane.f32.xlu1 %v6660_v30 }
 0x55b   :  { %6720 = vperm.xlu1 %8411, %v6717_v19  }
 0x5d5   :  { %v6621_v15 = vpop.xlane.xlu0 %6620 }
 0x5d6   :  { %v6663_v28 = vmul.f32 0.00045913682, %v6621_v15 }
 0x5d7   :  { %v6662_v54 = vpop.xlane.xlu1 %6661 }
 0x5d8   :  { %v6664_v23 = vmul.f32 0.00045913682, %v6662_v54  ;;  %v6665_v2 = vmul.f32 %v6663_v28, %v6663_v28  ;;  %v6672_v5 = vsub.f32 %v11534_v7, %v6663_v28  ;;  %v6673_v33 = vsub.f32 %v11537_v10, %v6663_v28 }
 0x5d9   :  { %v6674_v40 = vsub.f32 %v11544_v13, %v6663_v28  ;;  %v6675_v58 = vsub.f32 %v11549_v26, %v6663_v28  ;;  %v6676_v48 = vsub.f32 %v11554_v6, %v6663_v28  ;;  %v6677_v47 = vsub.f32 %v11559_v16, %v6663_v28 }
 0x5da   :  { %v6666_v56 = vsub.f32 %v6664_v23, %v6665_v2  ;;  %v6678_v14 = vsub.f32 %v11564_v39, %v6663_v28  ;;  %v6679_v22 = vsub.f32 %v11569_v49, %v6663_v28  ;;  %v6680_v46 = vsub.f32 %v11574_v27, %v6663_v28 }
 0x5db   :  { %v6681_v44 = vsub.f32 %v11579_v12, %v6663_v28  ;;  %v6682_v7 = vsub.f32 %v11584_v57, %v6663_v28  ;;  %v6683_v10 = vsub.f32 %v11589_v51, %v6663_v28  ;;  %v6684_v13 = vsub.f32 %v11592_v53, %v6663_v28 }
 0x5dc   :  { %v6667_v29 = vmax.f32 %v6666_v56, 0.0  ;;  %v6685_v26 = vsub.f32 %v11599_v42, %v6663_v28  ;;  %v6686_v6 = vsub.f32 %v11602_v1, %v6663_v28  ;;  %v6687_v16 = vsub.f32 %v11609_v34, %v6663_v28 }
 0x5dd   :  { %v6688_v39 = vsub.f32 %v11614_v4, %v6663_v28  ;;  %v6689_v49 = vsub.f32 %v11617_v37, %v6663_v28  ;;  %v6690_v27 = vsub.f32 %v11624_v11, %v6663_v28  ;;  %v6691_v12 = vsub.f32 %v11627_v62, %v6663_v28  ;;  %v6721_v11 = vpop.permute.xlu1 %6720 }
 0x5de   :  { %v6668_v45 = vadd.f32 1e-05, %v6667_v29 }
 0x5e0   :  { %8412 = vrsqrt.f32 %v6668_v45 }
 0x5ea   :  { %v8413_v60 = vpop.eup %8412 }
 0x5eb   :  { %v6671_v21 = vmul.f32 %v8413_v60, %v6670_v52 }
 0x5ed   :  { %6694 = vperm.xlu0 %7710, %v6671_v21  }
 0x66c   :  { %v6695_v50 = vpop.permute.xlu0 %6694 }
 0x66d   :  { %v6697_v57 = vmul.f32 %v6695_v50, %v6672_v5  ;;  %v6698_v61 = vmul.f32 %v6695_v50, %v6673_v33  ;;  %v6699_v51 = vmul.f32 %v6695_v50, %v6674_v40  ;;  %v6700_v35 = vmul.f32 %v6695_v50, %v6675_v58 }
 0x66e   :  { %v6701_v53 = vmul.f32 %v6695_v50, %v6676_v48  ;;  %v6702_v17 = vmul.f32 %v6695_v50, %v6677_v47  ;;  %v6703_v42 = vmul.f32 %v6695_v50, %v6678_v14  ;;  %v6704_v18 = vmul.f32 %v6695_v50, %v6679_v22 }
 0x66f   :  { %v6705_v1 = vmul.f32 %v6695_v50, %v6680_v46  ;;  %v6706_v31 = vmul.f32 %v6695_v50, %v6681_v44  ;;  %v6707_v34 = vmul.f32 %v6695_v50, %v6682_v7  ;;  %v6708_v55 = vmul.f32 %v6695_v50, %v6683_v10 }
 0x670   :  { %v6709_v4 = vmul.f32 %v6695_v50, %v6684_v13  ;;  %v6710_v3 = vmul.f32 %v6695_v50, %v6685_v26  ;;  %v6711_v37 = vmul.f32 %v6695_v50, %v6686_v6  ;;  %v6712_v38 = vmul.f32 %v6695_v50, %v6687_v16 }
 0x671   :  { %v6713_v9 = vmul.f32 %v6695_v50, %v6688_v39  ;;  %v6714_v63 = vmul.f32 %v6695_v50, %v6689_v49  ;;  %v6715_v62 = vmul.f32 %v6695_v50, %v6690_v27  ;;  %v6716_v32 = vmul.f32 %v6695_v50, %v6691_v12  ;;  %v11871_v27 = vld [vmem:[#allocation12_spill] sm:$0xff]  ;;  %v11872_v50 = vld [vmem:[#allocation11_spill] sm:$0xff] }
 0x672   :  { %v6723_v25 = vadd.f32 %v6721_v11, %v6697_v57  ;;  %v6724_v20 = vadd.f32 %v6721_v11, %v6698_v61  ;;  %v6725_v24 = vadd.f32 %v6721_v11, %v6699_v51  ;;  %v6726_v36 = vadd.f32 %v6721_v11, %v6700_v35  ;;  %v11873_v61 = vld [vmem:[#allocation10_spill] sm:$0xff]  ;;  %v11874_v35 = vld [vmem:[#allocation13_spill] sm:$0xff] }
 0x673   :  { %v6727_v59 = vadd.f32 %v6721_v11, %v6701_v53  ;;  %v6728_v41 = vadd.f32 %v6721_v11, %v6702_v17  ;;  %v6729_v8 = vadd.f32 %v6721_v11, %v6703_v42  ;;  %v6730_v43 = vadd.f32 %v6721_v11, %v6704_v18  ;;  %v11875_v17 = vld [vmem:[#allocation14_spill] sm:$0xff]  ;;  %v11876_v18 = vld [vmem:[#allocation15_spill] sm:$0xff] }
 0x674   :  { %v6731_v0 = vadd.f32 %v6721_v11, %v6705_v1  ;;  %v6732_v30 = vadd.f32 %v6721_v11, %v6706_v31  ;;  %v6733_v19 = vadd.f32 %v6721_v11, %v6707_v34  ;;  %v6734_v15 = vadd.f32 %v6721_v11, %v6708_v55  ;;  %v11877_v31 = vld [vmem:[#allocation17_spill] sm:$0xff]  ;;  %v11878_v55 = vld [vmem:[#allocation19_spill] sm:$0xff] }
 0x675   :  { %v6735_v28 = vadd.f32 %v6721_v11, %v6709_v4  ;;  %v6736_v54 = vadd.f32 %v6721_v11, %v6710_v3  ;;  %v6737_v23 = vadd.f32 %v6721_v11, %v6711_v37  ;;  %v6738_v2 = vadd.f32 %v6721_v11, %v6712_v38  ;;  %v11879_v3 = vld [vmem:[#allocation21_spill] sm:$0xff]  ;;  %v11880_v38 = vld [vmem:[#allocation24_spill] sm:$0xff] }
 0x676   :  { %v6739_v56 = vadd.f32 %v6721_v11, %v6713_v9  ;;  %v6740_v29 = vadd.f32 %v6721_v11, %v6714_v63  ;;  %v6741_v45 = vadd.f32 %v6721_v11, %v6715_v62  ;;  %v6742_v52 = vadd.f32 %v6721_v11, %v6716_v32  ;;  %v11881_v9 = vld [vmem:[#allocation23_spill] sm:$0xff] }
 0x677   :  { %v6743_v60 = vmax.f32 %v6723_v25, 0.0  ;;  %v6744_v21 = vmax.f32 %v6724_v20, 0.0  ;;  %v6745_v5 = vmax.f32 %v6725_v24, 0.0  ;;  %v6746_v33 = vmax.f32 %v6726_v36, 0.0  ;;  %v11882_v62 = vld [vmem:[#allocation27_spill] sm:$0xff]  ;;  %v11883_v25 = vld [vmem:[#allocation29_spill] sm:$0xff] }
 0x678   :  { %v6747_v40 = vmax.f32 %v6727_v59, 0.0  ;;  %v6748_v58 = vmax.f32 %v6728_v41, 0.0  ;;  %v6749_v48 = vmax.f32 %v6729_v8, 0.0  ;;  %v6750_v47 = vmax.f32 %v6730_v43, 0.0  ;;  %v11884_v24 = vld [vmem:[#allocation32_spill] sm:$0xff]  ;;  %v11885_v59 = vld [vmem:[#allocation31_spill] sm:$0xff] }
 0x679   :  { %v6751_v14 = vmax.f32 %v6731_v0, 0.0  ;;  %v6752_v22 = vmax.f32 %v6732_v30, 0.0  ;;  %v6753_v46 = vmax.f32 %v6733_v19, 0.0  ;;  %v6754_v44 = vmax.f32 %v6734_v15, 0.0  ;;  %v11886_v8 = vld [vmem:[#allocation35_spill] sm:$0xff]  ;;  %v11887_v0 = vld [vmem:[#allocation37_spill] sm:$0xff] }
 0x67a   :  { %v6755_v7 = vmax.f32 %v6735_v28, 0.0  ;;  %v6756_v10 = vmax.f32 %v6736_v54, 0.0  ;;  %v6757_v13 = vmax.f32 %v6737_v23, 0.0  ;;  %v6758_v26 = vmax.f32 %v6738_v2, 0.0  ;;  %v11888_v19 = vld [vmem:[#allocation40_spill] sm:$0xff]  ;;  %v11889_v28 = vld [vmem:[#allocation39_spill] sm:$0xff] }
 0x67b   :  { %v6759_v6 = vmax.f32 %v6739_v56, 0.0  ;;  %v6760_v16 = vmax.f32 %v6740_v29, 0.0  ;;  %v6761_v39 = vmax.f32 %v6741_v45, 0.0  ;;  %v6762_v49 = vmax.f32 %v6742_v52, 0.0  ;;  %v11890_v23 = vld [vmem:[#allocation43_spill] sm:$0xff] }
 0x67c   :  { %v6783_v12 = vadd.f32 %v6743_v60, %v11871_v27  ;;  %v6784_v57 = vadd.f32 %v6744_v21, %v11872_v50  ;;  %v6785_v51 = vadd.f32 %v6745_v5, %v11873_v61  ;;  %v6786_v53 = vadd.f32 %v6746_v33, %v11874_v35 }
 0x67d   :  { %v6787_v42 = vadd.f32 %v6747_v40, %v11875_v17  ;;  %v6788_v1 = vadd.f32 %v6748_v58, %v11876_v18  ;;  %v6789_v34 = vadd.f32 %v6749_v48, %v11877_v31  ;;  %v6790_v4 = vadd.f32 %v6750_v47, %v11878_v55 }
 0x67e   :  { %v6791_v37 = vadd.f32 %v6751_v14, %v11879_v3  ;;  %v6792_v11 = vadd.f32 %v6752_v22, %v11880_v38  ;;  %v6793_v63 = vadd.f32 %v6753_v46, %v11881_v9  ;;  %v6794_v32 = vadd.f32 %v6754_v44, %v11882_v62  ;;  %6803 = vst [vmem:[#allocation7] sm:$0xff] %v6783_v12 }
 0x67f   :  { %6804 = vst [vmem:[#allocation7 + $0x8] sm:$0xff] %v6784_v57  ;;  %6805 = vst [vmem:[#allocation7 + $0x10] sm:$0xff] %v6785_v51  ;;  %v6795_v20 = vadd.f32 %v6755_v7, %v11883_v25  ;;  %v6796_v36 = vadd.f32 %v6756_v10, %v11884_v24  ;;  %v6797_v41 = vadd.f32 %v6757_v13, %v11885_v59 }
 0x680   :  { %6806 = vst [vmem:[#allocation7 + $0x18] sm:$0xff] %v6786_v53  ;;  %v6798_v43 = vadd.f32 %v6758_v26, %v11886_v8  ;;  %6807 = vst [vmem:[#allocation7 + $0x20] sm:$0xff] %v6787_v42  ;;  %v6799_v30 = vadd.f32 %v6759_v6, %v11887_v0  ;;  %v6800_v15 = vadd.f32 %v6760_v16, %v11888_v19 }
 0x681   :  { %6808 = vst [vmem:[#allocation7 + $0x28] sm:$0xff] %v6788_v1  ;;  %6809 = vst [vmem:[#allocation7 + $0x30] sm:$0xff] %v6789_v34  ;;  %v6801_v54 = vadd.f32 %v6761_v39, %v11889_v28  ;;  %v6802_v2 = vadd.f32 %v6762_v49, %v11890_v23 }
 0x682   :  { %6810 = vst [vmem:[#allocation7 + $0x38] sm:$0xff] %v6790_v4  ;;  %6811 = vst [vmem:[#allocation7 + $0x40] sm:$0xff] %v6791_v37 }
 0x683   :  { %6812 = vst [vmem:[#allocation7 + $0x48] sm:$0xff] %v6792_v11  ;;  %6813 = vst [vmem:[#allocation7 + $0x50] sm:$0xff] %v6793_v63 }
 0x684   :  { %6814 = vst [vmem:[#allocation7 + $0x58] sm:$0xff] %v6794_v32  ;;  %6815 = vst [vmem:[#allocation7 + $0x60] sm:$0xff] %v6795_v20 }
 0x685   :  { %6816 = vst [vmem:[#allocation7 + $0x68] sm:$0xff] %v6796_v36  ;;  %6817 = vst [vmem:[#allocation7 + $0x70] sm:$0xff] %v6797_v41 }
 0x686   :  { %6818 = vst [vmem:[#allocation7 + $0x78] sm:$0xff] %v6798_v43  ;;  %6819 = vst [vmem:[#allocation7 + $0x80] sm:$0xff] %v6799_v30 }
 0x687   :  { %6820 = vst [vmem:[#allocation7 + $0x88] sm:$0xff] %v6800_v15  ;;  %6821 = vst [vmem:[#allocation7 + $0x90] sm:$0xff] %v6801_v54 }
 0x688   :  { %6822 = vst [vmem:[#allocation7 + $0x98] sm:$0xff] %v6802_v2 }
 0x689   :  { %8450 = shalt.err (!%p8447_p12)
}
 0x68a   :  { %s8451_s15 = scalar_lea.hbm %s11701_s10, 2560 }
 0x68b   :  { %p8452_p13 = scmp.ne.s32.totalorder %s11701_s10, %s8451_s15  ;;  %p8455_p0 = scmp.lt.u32.totalorder %s8451_s15, %s11701_s10 }
 0x68d   :  { %p8457_p1 = pnand %p8455_p0, %p8452_p13 }
 0x68f   :  { %8460 = shalt.err (!%p8457_p1)
}
 0x690   :  { %6832 = dma.vmem_to_hbm [thread:$0]  %s6830_s9, 2560, %s11701_s10, [#allocation6]  }
 0x691   :  { %8463 = dma.done.wait [#allocation6], 2560  }
 0x692   :  { %8464 = vsyncadd [#allocation6], 4294964736 }
 0x693   :  { %6836 = vsyncpa [#allocation5], 1 }
 0x694   :  { %6837 = vsyncpa [#allocation6], 1 }

</bundles_post_ra>
